<compile_context>
chip_gen: v7x
topology: tpu7x:2x2x1
jax: 0.10.0
libtpu: 0.0.40
codegen_flags: <defaults>
</compile_context>

<pallas_src>
import jax
import jax.numpy as jnp
from jax.experimental import pallas as pl
from jax.experimental.pallas import tpu as pltpu

NPAD = 128  # lane-dense output-channel padding for the conv stages


def _round_up(v, m):
    return ((v + m - 1) // m) * m


# ----------------------------- Pallas kernels ------------------------------

def _conv_pool_relu_kernel(p_ref, w_ref, b_ref, o_ref):
    """p_ref: [4, tm, Kp]  four 2x2-pool phases of im2col patch rows
       w_ref: [Kp, NPAD]   zero-padded conv weight (rows in (c,ky,kx) order)
       b_ref: [1, NPAD]    zero-padded bias
       o_ref: [tm, NPAD]   relu(max_pool2x2(conv)) rows in (b, hp, wp) order."""
    ph, tm, kp = p_ref.shape
    npad = o_ref.shape[-1]
    # Collapse the phase axis into M: one big MXU matmul (single RHS push)
    # instead of four small ones.  tm % 8 == 0, so the reshape is free.
    p = p_ref[...].reshape(ph * tm, kp)
    m = jnp.dot(p, w_ref[...], preferred_element_type=jnp.float32)
    m = jnp.max(m.reshape(ph, tm, npad), axis=0)          # VPU max over phases
    # Bias is constant within the pooling max, so adding it afterwards is
    # equivalent to conv-bias-then-pool.
    o_ref[...] = jnp.maximum(m + b_ref[...], 0.0)


def conv_pool_relu(patches4, w, b):
    """patches4: [4, Q, Kp]; w: [Kp, NPAD]; b: [1, NPAD] -> [Q, NPAD]."""
    _, Q, Kp = patches4.shape
    Npad = w.shape[1]
    # Pad rows to a sublane multiple so every block is (8,128)-aligned.
    Qp = _round_up(Q, 8)
    if Qp != Q:
        patches4 = jnp.pad(patches4, ((0, 0), (0, Qp - Q), (0, 0)))
    # Tile M: cap at 512 rows/block for big batches; otherwise split in two
    # so both v7x TensorCores stay busy ("parallel" grid axis).
    if Qp > 1024:
        tm = 512
        rem = (-Qp) % tm
        if rem:
            patches4 = jnp.pad(patches4, ((0, 0), (0, rem), (0, 0)))
            Qp += rem
    elif Qp % 16 == 0 and Qp > 16:
        tm = Qp // 2
    else:
        tm = Qp
    grid = (Qp // tm,)
    out = pl.pallas_call(
        _conv_pool_relu_kernel,
        out_shape=jax.ShapeDtypeStruct((Qp, Npad), jnp.float32),
        grid=grid,
        in_specs=[
            pl.BlockSpec((4, tm, Kp), lambda i: (0, i, 0)),
            pl.BlockSpec((Kp, Npad), lambda i: (0, 0)),
            pl.BlockSpec((1, Npad), lambda i: (0, 0)),
        ],
        out_specs=pl.BlockSpec((tm, Npad), lambda i: (i, 0)),
        compiler_params=pltpu.CompilerParams(
            dimension_semantics=("parallel",)),
    )(patches4, w, b)
    return out[:Q]


def _fc_fused_kernel(x_ref, w1_ref, b1_ref, w2_ref, b2_ref, o_ref):
    h = jnp.dot(x_ref[...], w1_ref[...], preferred_element_type=jnp.float32)
    h = jnp.maximum(h + b1_ref[...], 0.0)
    # F.dropout: eval-mode identity.
    o = jnp.dot(h, w2_ref[...], preferred_element_type=jnp.float32)
    o_ref[...] = o + b2_ref[...]


def fc_fused(x, w1, b1, w2, b2):
    """relu(x @ w1 + b1) @ w2 + b2 in one kernel (hidden act never leaves VMEM)."""
    M, K1 = x.shape
    N1 = w1.shape[1]
    N2 = w2.shape[1]
    return pl.pallas_call(
        _fc_fused_kernel,
        out_shape=jax.ShapeDtypeStruct((M, N2), jnp.float32),
        grid=(1,),
        in_specs=[
            pl.BlockSpec((M, K1), lambda i: (0, 0)),
            pl.BlockSpec((K1, N1), lambda i: (0, 0)),
            pl.BlockSpec((1, N1), lambda i: (0, 0)),
            pl.BlockSpec((N1, N2), lambda i: (0, 0)),
            pl.BlockSpec((1, N2), lambda i: (0, 0)),
        ],
        out_specs=pl.BlockSpec((M, N2), lambda i: (0, 0)),
        compiler_params=pltpu.CompilerParams(
            dimension_semantics=("arbitrary",)),
    )(x, w1, b1, w2, b2)


# ------------------------------- JAX glue ----------------------------------

def _im2col_pool_phases(x, k):
    """x: [BN, H, W, C] -> patches [4, BN*Hp*Wp, C*k*k] split into the four
    2x2-pooling phases (dy, dx). Column order (c, ky, kx) matches the torch
    conv weight reshape; rows are in (b, hp, wp) order."""
    BN, H, W, C = x.shape
    Ho, Wo = H - k + 1, W - k + 1
    Hp, Wp = Ho // 2, Wo // 2
    slabs = [x[:, ky:ky + Ho, kx:kx + Wo, :] for ky in range(k) for kx in range(k)]
    patches = jnp.stack(slabs, axis=3)                  # [BN, Ho, Wo, k*k, C]
    patches = jnp.transpose(patches, (0, 1, 2, 4, 3))   # -> (c, ky, kx) col order
    patches = patches.reshape(BN, Ho, Wo, C * k * k)
    phases = [patches[:, dy::2, dx::2, :].reshape(BN * Hp * Wp, C * k * k)
              for dy in range(2) for dx in range(2)]
    return jnp.stack(phases, axis=0), (BN, Hp, Wp)


def _pad_last(a, target):
    pad = target - a.shape[-1]
    if pad:
        a = jnp.pad(a, [(0, 0)] * (a.ndim - 1) + [(0, pad)])
    return a


def prepare_params(p):
    """One-time weight preprocessing: matmul layout, K/N padding, fc1 row permute."""
    # conv1: [10, C, 5, 5] -> [C*25, 10] rows in (c,ky,kx) order -> pad K to 8-mult, N to 128.
    co1, ci1, kh1, kw1 = p["conv1_w"].shape
    k1 = ci1 * kh1 * kw1
    w1 = jnp.transpose(p["conv1_w"], (1, 2, 3, 0)).reshape(k1, co1)
    w1 = jnp.pad(w1, ((0, _round_up(k1, 8) - k1), (0, NPAD - co1)))
    b1 = jnp.pad(p["conv1_b"], (0, NPAD - co1)).reshape(1, NPAD)
    # conv2: [20, 10, 5, 5] -> [250, 20] -> pad to [256, 128].
    co2, ci2, kh2, kw2 = p["conv2_w"].shape
    k2 = ci2 * kh2 * kw2
    w2 = jnp.transpose(p["conv2_w"], (1, 2, 3, 0)).reshape(k2, co2)
    w2 = jnp.pad(w2, ((0, _round_up(k2, 8) - k2), (0, NPAD - co2)))
    b2 = jnp.pad(p["conv2_b"], (0, NPAD - co2)).reshape(1, NPAD)
    # fc1: permute rows from torch's (c,h,w) flatten order to our (h,w,c) order
    # so no activation transpose is needed on the critical path.
    fc_dim, n1 = p["fc1_w"].shape
    side = int(round((fc_dim // co2) ** 0.5))
    fc1_w = p["fc1_w"].reshape(co2, side, side, n1)
    fc1_w = jnp.transpose(fc1_w, (1, 2, 0, 3)).reshape(fc_dim, n1)
    return {
        "w1": w1, "b1": b1, "w2": w2, "b2": b2,
        "fc1_w": fc1_w, "fc1_b": p["fc1_b"].reshape(1, -1),
        "fc2_w": p["fc2_w"], "fc2_b": p["fc2_b"].reshape(1, -1),
    }


def conv_encoder_forward(x, pp):
    """x: [B, N, H, W] single-channel images -> [B, N, h_dim]."""
    B, N, H, W = x.shape
    BN = B * N
    xb = x.reshape(BN, H, W, 1).astype(jnp.float32)

    # conv1 (C->10, k=5) + maxpool2x2 + relu, fused in one kernel.
    p1, (_, H1, W1) = _im2col_pool_phases(xb, 5)
    y1 = conv_pool_relu(_pad_last(p1, pp["w1"].shape[0]), pp["w1"], pp["b1"])
    y1 = y1[:, :10].reshape(BN, H1, W1, 10)

    # conv2 (10->20, k=5) + dropout2d (eval identity) + maxpool2x2 + relu.
    p2, (_, H2, W2) = _im2col_pool_phases(y1, 5)
    y2 = conv_pool_relu(_pad_last(p2, pp["w2"].shape[0]), pp["w2"], pp["b2"])

    # flatten in (h, w, c) order; fc1_w rows were pre-permuted to match.
    flat = y2[:, :20].reshape(BN, H2 * W2 * 20)
    Mp = _round_up(BN, 8)
    flat = jnp.pad(flat, ((0, Mp - BN), (0, 0)))

    out = fc_fused(flat, pp["fc1_w"], pp["fc1_b"], pp["fc2_w"], pp["fc2_b"])
    return out[:BN].reshape(B, N, -1)


forward = jax.jit(conv_encoder_forward)


# --------------------------- pure-JAX reference -----------------------------

def reference_forward(x, p):
    B, N, H, W = x.shape
    xb = x.reshape(B * N, H, W, 1).astype(jnp.float32)

    def conv(inp, w, b):
        out = jax.lax.conv_general_dilated(
            inp, jnp.transpose(w, (2, 3, 1, 0)), (1, 1), "VALID",
            dimension_numbers=("NHWC", "HWIO", "NHWC"))
        return out + b

    def pool_relu(y):
        Bn, Ho, Wo, C = y.shape
        y = y.reshape(Bn, Ho // 2, 2, Wo // 2, 2, C).max(axis=(2, 4))
        return jnp.maximum(y, 0.0)

    y1 = pool_relu(conv(xb, p["conv1_w"], p["conv1_b"]))
    y2 = pool_relu(conv(y1, p["conv2_w"], p["conv2_b"]))
    flat = jnp.transpose(y2, (0, 3, 1, 2)).reshape(B * N, -1)   # torch (c,h,w) order
    h = jnp.maximum(flat @ p["fc1_w"] + p["fc1_b"], 0.0)
    out = h @ p["fc2_w"] + p["fc2_b"]
    return out.reshape(B, N, -1)


# --------------------------------- main -------------------------------------

if __name__ == "__main__":
    # params: img_sz=28 (-> fc_dim=320), channels=1, h_dim=32
    B, N, IMG, H_DIM = 2, 3, 28, 32

    key = jax.random.PRNGKey(0)
    ks = jax.random.split(key, 9)
    params = {
        "conv1_w": 0.10 * jax.random.normal(ks[0], (10, 1, 5, 5), jnp.float32),
        "conv1_b": 0.10 * jax.random.normal(ks[1], (10,), jnp.float32),
        "conv2_w": 0.10 * jax.random.normal(ks[2], (20, 10, 5, 5), jnp.float32),
        "conv2_b": 0.10 * jax.random.normal(ks[3], (20,), jnp.float32),
        "fc1_w":   0.05 * jax.random.normal(ks[4], (320, 256), jnp.float32),
        "fc1_b":   0.05 * jax.random.normal(ks[5], (256,), jnp.float32),
        "fc2_w":   0.05 * jax.random.normal(ks[6], (256, H_DIM), jnp.float32),
        "fc2_b":   0.05 * jax.random.normal(ks[7], (H_DIM,), jnp.float32),
    }

    x = jax.random.normal(ks[8], (B, N, IMG, IMG), jnp.float32)

    pp = prepare_params(params)          # one-time weight prep (outside jit)
    out = forward(x, pp)
    out = jax.block_until_ready(out)

    assert out.shape == (B, N, H_DIM), out.shape
    assert bool(jnp.all(jnp.isfinite(out)))
    ref = reference_forward(x, params)
    assert bool(jnp.allclose(out, ref, atol=5e-2, rtol=5e-2)), (
        float(jnp.max(jnp.abs(out - ref))))
    print("KERNEL_OK")
</pallas_src>

<mosaic_0001>
module attributes {stable_mosaic.version = 11 : i64} {
  func.func @_conv_pool_relu_kernel(%arg0: i32, %arg1: memref<4x432x32xf32, #tpu.memory_space<vmem>>, %arg2: memref<32x128xf32, #tpu.memory_space<vmem>>, %arg3: memref<1x128xf32, #tpu.memory_space<vmem>>, %arg4: memref<432x128xf32, #tpu.memory_space<vmem>>) attributes {dimension_semantics = [#tpu.dimension_semantics<parallel>], iteration_bounds = array<i64: 2>, scalar_prefetch = 0 : i64, scratch_operands = 0 : i64, tpu.core_type = #tpu.core_type<tc>, window_params = [{transform_indices = @transform_0, window_bounds = array<i64: 4, 432, 32>}, {pipeline_mode = #tpu.pipeline_mode<synchronous>, transform_indices = @transform_1, window_bounds = array<i64: 32, 128>}, {pipeline_mode = #tpu.pipeline_mode<synchronous>, transform_indices = @transform_2, window_bounds = array<i64: 1, 128>}, {transform_indices = @transform_3, window_bounds = array<i64: 432, 128>}]} {
    %c0 = arith.constant 0 : index
    %c0_0 = arith.constant 0 : index
    %c0_1 = arith.constant 0 : index
    %0 = vector.load %arg1[%c0, %c0_0, %c0_1] : memref<4x432x32xf32, #tpu.memory_space<vmem>>, vector<4x432x32xf32>
    %1 = vector.shape_cast %0 : vector<4x432x32xf32> to vector<1728x32xf32>
    %c0_2 = arith.constant 0 : index
    %c0_3 = arith.constant 0 : index
    %2 = vector.load %arg2[%c0_2, %c0_3] : memref<32x128xf32, #tpu.memory_space<vmem>>, vector<32x128xf32>
    %cst = arith.constant dense<0.000000e+00> : vector<1728x128xf32>
    %3 = tpu.matmul %1, %2, %cst {dimension_numbers = #tpu.dot_dimension_numbers<[1], [0], [0], [1], [0, 0, 1, 1], [], []>} : vector<1728x32xf32>, vector<32x128xf32>, vector<1728x128xf32> -> vector<1728x128xf32>
    %4 = vector.shape_cast %3 : vector<1728x128xf32> to vector<4x432x128xf32>
    %cst_4 = arith.constant dense<0xFF800000> : vector<432x128xf32>
    %5 = vector.multi_reduction <maximumf>, %4, %cst_4 [0] : vector<4x432x128xf32> to vector<432x128xf32>
    %c0_5 = arith.constant 0 : index
    %c0_6 = arith.constant 0 : index
    %6 = vector.load %arg3[%c0_5, %c0_6] : memref<1x128xf32, #tpu.memory_space<vmem>>, vector<1x128xf32>
    %7 = vector.broadcast %6 : vector<1x128xf32> to vector<432x128xf32>
    %8 = arith.addf %5, %7 : vector<432x128xf32>
    %cst_7 = arith.constant 0.000000e+00 : f32
    %9 = vector.broadcast %cst_7 : f32 to vector<432x128xf32>
    %10 = arith.maximumf %8, %9 : vector<432x128xf32>
    %c0_8 = arith.constant 0 : index
    %c0_9 = arith.constant 0 : index
    %11 = vector.load %arg4[%c0_8, %c0_9] : memref<432x128xf32, #tpu.memory_space<vmem>>, vector<432x128xf32>
    tpu.vector_store %arg4[%c0_8, %c0_9], %10 {strides = array<i32>} : memref<432x128xf32, #tpu.memory_space<vmem>>, vector<432x128xf32>,
    return
  }
  func.func @transform_0(%arg0: i32) -> (i32, i32, i32) {
    %c0_i32 = arith.constant 0 : i32
    %c0_i32_0 = arith.constant 0 : i32
    %c0_i32_1 = arith.constant 0 : i32
    return %c0_i32, %arg0, %c0_i32_0 : i32, i32, i32
  }
  func.func @transform_1(%arg0: i32) -> (i32, i32) {
    %c0_i32 = arith.constant 0 : i32
    %c0_i32_0 = arith.constant 0 : i32
    %c0_i32_1 = arith.constant 0 : i32
    return %c0_i32, %c0_i32_0 : i32, i32
  }
  func.func @transform_2(%arg0: i32) -> (i32, i32) {
    %c0_i32 = arith.constant 0 : i32
    %c0_i32_0 = arith.constant 0 : i32
    %c0_i32_1 = arith.constant 0 : i32
    return %c0_i32, %c0_i32_0 : i32, i32
  }
  func.func @transform_3(%arg0: i32) -> (i32, i32) {
    %c0_i32 = arith.constant 0 : i32
    %c0_i32_0 = arith.constant 0 : i32
    return %arg0, %c0_i32 : i32, i32
  }
}

module attributes {stable_mosaic.version = 11 : i64} {
  func.func @_conv_pool_relu_kernel(%arg0: i32, %arg1: memref<4x48x256xf32, #tpu.memory_space<vmem>>, %arg2: memref<256x128xf32, #tpu.memory_space<vmem>>, %arg3: memref<1x128xf32, #tpu.memory_space<vmem>>, %arg4: memref<48x128xf32, #tpu.memory_space<vmem>>) attributes {dimension_semantics = [#tpu.dimension_semantics<parallel>], iteration_bounds = array<i64: 2>, scalar_prefetch = 0 : i64, scratch_operands = 0 : i64, tpu.core_type = #tpu.core_type<tc>, window_params = [{transform_indices = @transform_0, window_bounds = array<i64: 4, 48, 256>}, {pipeline_mode = #tpu.pipeline_mode<synchronous>, transform_indices = @transform_1, window_bounds = array<i64: 256, 128>}, {pipeline_mode = #tpu.pipeline_mode<synchronous>, transform_indices = @transform_2, window_bounds = array<i64: 1, 128>}, {transform_indices = @transform_3, window_bounds = array<i64: 48, 128>}]} {
    %c0 = arith.constant 0 : index
    %c0_0 = arith.constant 0 : index
    %c0_1 = arith.constant 0 : index
    %0 = vector.load %arg1[%c0, %c0_0, %c0_1] : memref<4x48x256xf32, #tpu.memory_space<vmem>>, vector<4x48x256xf32>
    %1 = vector.shape_cast %0 : vector<4x48x256xf32> to vector<192x256xf32>
    %c0_2 = arith.constant 0 : index
    %c0_3 = arith.constant 0 : index
    %2 = vector.load %arg2[%c0_2, %c0_3] : memref<256x128xf32, #tpu.memory_space<vmem>>, vector<256x128xf32>
    %cst = arith.constant dense<0.000000e+00> : vector<192x128xf32>
    %3 = tpu.matmul %1, %2, %cst {dimension_numbers = #tpu.dot_dimension_numbers<[1], [0], [0], [1], [0, 0, 1, 1], [], []>} : vector<192x256xf32>, vector<256x128xf32>, vector<192x128xf32> -> vector<192x128xf32>
    %4 = vector.shape_cast %3 : vector<192x128xf32> to vector<4x48x128xf32>
    %cst_4 = arith.constant dense<0xFF800000> : vector<48x128xf32>
    %5 = vector.multi_reduction <maximumf>, %4, %cst_4 [0] : vector<4x48x128xf32> to vector<48x128xf32>
    %c0_5 = arith.constant 0 : index
    %c0_6 = arith.constant 0 : index
    %6 = vector.load %arg3[%c0_5, %c0_6] : memref<1x128xf32, #tpu.memory_space<vmem>>, vector<1x128xf32>
    %7 = vector.broadcast %6 : vector<1x128xf32> to vector<48x128xf32>
    %8 = arith.addf %5, %7 : vector<48x128xf32>
    %cst_7 = arith.constant 0.000000e+00 : f32
    %9 = vector.broadcast %cst_7 : f32 to vector<48x128xf32>
    %10 = arith.maximumf %8, %9 : vector<48x128xf32>
    %c0_8 = arith.constant 0 : index
    %c0_9 = arith.constant 0 : index
    %11 = vector.load %arg4[%c0_8, %c0_9] : memref<48x128xf32, #tpu.memory_space<vmem>>, vector<48x128xf32>
    tpu.vector_store %arg4[%c0_8, %c0_9], %10 {strides = array<i32>} : memref<48x128xf32, #tpu.memory_space<vmem>>, vector<48x128xf32>,
    return
  }
  func.func @transform_0(%arg0: i32) -> (i32, i32, i32) {
    %c0_i32 = arith.constant 0 : i32
    %c0_i32_0 = arith.constant 0 : i32
    %c0_i32_1 = arith.constant 0 : i32
    return %c0_i32, %arg0, %c0_i32_0 : i32, i32, i32
  }
  func.func @transform_1(%arg0: i32) -> (i32, i32) {
    %c0_i32 = arith.constant 0 : i32
    %c0_i32_0 = arith.constant 0 : i32
    %c0_i32_1 = arith.constant 0 : i32
    return %c0_i32, %c0_i32_0 : i32, i32
  }
  func.func @transform_2(%arg0: i32) -> (i32, i32) {
    %c0_i32 = arith.constant 0 : i32
    %c0_i32_0 = arith.constant 0 : i32
    %c0_i32_1 = arith.constant 0 : i32
    return %c0_i32, %c0_i32_0 : i32, i32
  }
  func.func @transform_3(%arg0: i32) -> (i32, i32) {
    %c0_i32 = arith.constant 0 : i32
    %c0_i32_0 = arith.constant 0 : i32
    return %arg0, %c0_i32 : i32, i32
  }
}

module attributes {stable_mosaic.version = 11 : i64} {
  func.func @_fc_fused_kernel(%arg0: i32, %arg1: memref<8x320xf32, #tpu.memory_space<vmem>>, %arg2: memref<320x256xf32, #tpu.memory_space<vmem>>, %arg3: memref<1x256xf32, #tpu.memory_space<vmem>>, %arg4: memref<256x32xf32, #tpu.memory_space<vmem>>, %arg5: memref<1x32xf32, #tpu.memory_space<vmem>>, %arg6: memref<8x32xf32, #tpu.memory_space<vmem>>) attributes {dimension_semantics = [#tpu.dimension_semantics<arbitrary>], iteration_bounds = array<i64: 1>, scalar_prefetch = 0 : i64, scratch_operands = 0 : i64, tpu.core_type = #tpu.core_type<tc>, window_params = [{pipeline_mode = #tpu.pipeline_mode<synchronous>, transform_indices = @transform_0, window_bounds = array<i64: 8, 320>}, {pipeline_mode = #tpu.pipeline_mode<synchronous>, transform_indices = @transform_1, window_bounds = array<i64: 320, 256>}, {pipeline_mode = #tpu.pipeline_mode<synchronous>, transform_indices = @transform_2, window_bounds = array<i64: 1, 256>}, {pipeline_mode = #tpu.pipeline_mode<synchronous>, transform_indices = @transform_3, window_bounds = array<i64: 256, 32>}, {pipeline_mode = #tpu.pipeline_mode<synchronous>, transform_indices = @transform_4, window_bounds = array<i64: 1, 32>}, {pipeline_mode = #tpu.pipeline_mode<synchronous>, transform_indices = @transform_5, window_bounds = array<i64: 8, 32>}]} {
    %c0 = arith.constant 0 : index
    %c0_0 = arith.constant 0 : index
    %0 = vector.load %arg1[%c0, %c0_0] : memref<8x320xf32, #tpu.memory_space<vmem>>, vector<8x320xf32>
    %c0_1 = arith.constant 0 : index
    %c0_2 = arith.constant 0 : index
    %1 = vector.load %arg2[%c0_1, %c0_2] : memref<320x256xf32, #tpu.memory_space<vmem>>, vector<320x256xf32>
    %cst = arith.constant dense<0.000000e+00> : vector<8x256xf32>
    %2 = tpu.matmul %0, %1, %cst {dimension_numbers = #tpu.dot_dimension_numbers<[1], [0], [0], [1], [0, 0, 1, 1], [], []>} : vector<8x320xf32>, vector<320x256xf32>, vector<8x256xf32> -> vector<8x256xf32>
    %c0_3 = arith.constant 0 : index
    %c0_4 = arith.constant 0 : index
    %3 = vector.load %arg3[%c0_3, %c0_4] : memref<1x256xf32, #tpu.memory_space<vmem>>, vector<1x256xf32>
    %4 = vector.broadcast %3 : vector<1x256xf32> to vector<8x256xf32>
    %5 = arith.addf %2, %4 : vector<8x256xf32>
    %cst_5 = arith.constant 0.000000e+00 : f32
    %6 = vector.broadcast %cst_5 : f32 to vector<8x256xf32>
    %7 = arith.maximumf %5, %6 : vector<8x256xf32>
    %c0_6 = arith.constant 0 : index
    %c0_7 = arith.constant 0 : index
    %8 = vector.load %arg4[%c0_6, %c0_7] : memref<256x32xf32, #tpu.memory_space<vmem>>, vector<256x32xf32>
    %cst_8 = arith.constant dense<0.000000e+00> : vector<8x32xf32>
    %9 = tpu.matmul %7, %8, %cst_8 {dimension_numbers = #tpu.dot_dimension_numbers<[1], [0], [0], [1], [0, 0, 1, 1], [], []>} : vector<8x256xf32>, vector<256x32xf32>, vector<8x32xf32> -> vector<8x32xf32>
    %c0_9 = arith.constant 0 : index
    %c0_10 = arith.constant 0 : index
    %10 = vector.load %arg5[%c0_9, %c0_10] : memref<1x32xf32, #tpu.memory_space<vmem>>, vector<1x32xf32>
    %11 = vector.broadcast %10 : vector<1x32xf32> to vector<8x32xf32>
    %12 = arith.addf %9, %11 : vector<8x32xf32>
    %c0_11 = arith.constant 0 : index
    %c0_12 = arith.constant 0 : index
    %13 = vector.load %arg6[%c0_11, %c0_12] : memref<8x32xf32, #tpu.memory_space<vmem>>, vector<8x32xf32>
    tpu.vector_store %arg6[%c0_11, %c0_12], %12 {strides = array<i32>} : memref<8x32xf32, #tpu.memory_space<vmem>>, vector<8x32xf32>,
    return
  }
  func.func @transform_0(%arg0: i32) -> (i32, i32) {
    %c0_i32 = arith.constant 0 : i32
    %c0_i32_0 = arith.constant 0 : i32
    %c0_i32_1 = arith.constant 0 : i32
    return %c0_i32, %c0_i32_0 : i32, i32
  }
  func.func @transform_1(%arg0: i32) -> (i32, i32) {
    %c0_i32 = arith.constant 0 : i32
    %c0_i32_0 = arith.constant 0 : i32
    %c0_i32_1 = arith.constant 0 : i32
    return %c0_i32, %c0_i32_0 : i32, i32
  }
  func.func @transform_2(%arg0: i32) -> (i32, i32) {
    %c0_i32 = arith.constant 0 : i32
    %c0_i32_0 = arith.constant 0 : i32
    %c0_i32_1 = arith.constant 0 : i32
    return %c0_i32, %c0_i32_0 : i32, i32
  }
  func.func @transform_3(%arg0: i32) -> (i32, i32) {
    %c0_i32 = arith.constant 0 : i32
    %c0_i32_0 = arith.constant 0 : i32
    %c0_i32_1 = arith.constant 0 : i32
    return %c0_i32, %c0_i32_0 : i32, i32
  }
  func.func @transform_4(%arg0: i32) -> (i32, i32) {
    %c0_i32 = arith.constant 0 : i32
    %c0_i32_0 = arith.constant 0 : i32
    %c0_i32_1 = arith.constant 0 : i32
    return %c0_i32, %c0_i32_0 : i32, i32
  }
  func.func @transform_5(%arg0: i32) -> (i32, i32) {
    %c0_i32 = arith.constant 0 : i32
    %c0_i32_0 = arith.constant 0 : i32
    %c0_i32_1 = arith.constant 0 : i32
    return %c0_i32, %c0_i32_0 : i32, i32
  }
}

</mosaic_0001>

<bundles_post_ra>
// kernel: conv_encoder_forward.3
= control target key start
LH: loop header
LB: loop body
LE: loop exit
PB: predicated region body
PF: predicated region fallthrough
CT: control target
= control target key end

     0   :  { %s4336_s12 = smov 0   ;;  %s4338_s13 = smov 0   ;;  %s5709_s0 = inlined_call_operand.vmem [shape: f32[4,864,32], index: 0, kind: input, shape index: {}]   ;;  %s5710_s1 = inlined_call_operand.vmem [shape: f32[32,128], index: 1, kind: input, shape index: {}]   ;;  %s5711_s2 = inlined_call_operand.vmem [shape: f32[1,128], index: 2, kind: input, shape index: {}]   ;;  %s5712_s3 = inlined_call_operand.vmem [shape: f32[864,128], index: 3, kind: output, shape index: {}]  }
   0x1   :  { %s4340_s14 = smov 0  }
   0x2 LB: > { %s3475_s15 = sadd.s32 4294967295, %s4314_s14   ;;  %s4353_s16 = sadd.s32 1, %s4314_s14   ;;  %s4314_s14 = sphi %s4340_s14, %s5831_s14   ;;  %s4310_s13 = sphi %s4338_s13, %s5830_s13   ;;  %s4306_s12 = sphi %s4336_s12, %s5829_s12  }
   0x3   : > { %s17_s17 = ssub.s32 %s4314_s14, %s4353_s16  ;;  %s20_s18 = sadd.s32 1, %s4310_s13 }
   0x4   : > { %p18_p0 = scmp.eq.s32.totalorder %s17_s17, 0  ;;  %p27_p1 = scmp.ne.s32.totalorder %s4310_s13, %s4306_s12 }
   0x5   : > { %p28_p2 = scmp.eq.s32.totalorder %s4314_s14, 0  ;;  %p3478_p4 = scmp.ge.s32.totalorder %s4314_s14, 2 }
   0x6   : > { %s4362_s19 = scalar_select %p18_p0, %s4310_s13, %s20_s18  }
   0x7   : > { %p29_p3 = por %p28_p2, %p27_p1  ;;  %127 = sbr.rel (%p3478_p4) target bundleno = 127 (0x7f), region = 24 }
   0xe   : > { %130 = sbr.rel (!%p29_p3) target bundleno = 127 (0x7f), region = 28  ;;  %s132_s20 = sand.u32 (%p29_p3), 1, %s4310_s13  }
   0xf   : > { %s3701_s21 = smul.u32 (%p29_p3), 432, %s4314_s14 }
  0x10   : > { %s4266_s22 = smul.u32 (%p29_p3), 1728, %s132_s20 }
  0x11   : > { %s4370_s25 = scalar_lea.vmem (%p29_p3), %s5709_s0, %s3701_s21 }
  0x12   : > { %v595_v0 = vld [vmem:[%s4370_s25] sm:$0xff] (%p29_p3)  ;;  %v597_v1 = vld [vmem:[%s4370_s25 + $0x8] sm:$0xff] (%p29_p3)  ;;  %v599_v2 = vld [vmem:[%s4370_s25 + $0x10] sm:$0xff] (%p29_p3)  ;;  %s4375_s26 = scalar_lea.vmem (%p29_p3), [#allocation2], %s4266_s22 }
  0x13   : > { %596 = vst [vmem:[%s4375_s26] sm:$0xff] (%p29_p3), %v595_v0  ;;  %598 = vst [vmem:[%s4375_s26 + $0x8] sm:$0xff] (%p29_p3), %v597_v1  ;;  %v601_v3 = vld [vmem:[%s4370_s25 + $0x18] sm:$0xff] (%p29_p3)  ;;  %v603_v4 = vld [vmem:[%s4370_s25 + $0x20] sm:$0xff] (%p29_p3) }
  0x14   : > { %600 = vst [vmem:[%s4375_s26 + $0x10] sm:$0xff] (%p29_p3), %v599_v2  ;;  %v605_v5 = vld [vmem:[%s4370_s25 + $0x28] sm:$0xff] (%p29_p3)  ;;  %602 = vst [vmem:[%s4375_s26 + $0x18] sm:$0xff] (%p29_p3), %v601_v3  ;;  %v607_v6 = vld [vmem:[%s4370_s25 + $0x30] sm:$0xff] (%p29_p3) }
  0x15   : > { %604 = vst [vmem:[%s4375_s26 + $0x20] sm:$0xff] %v603_v4  ;;  %606 = vst [vmem:[%s4375_s26 + $0x28] sm:$0xff] %v605_v5  ;;  %v609_v7 = vld [vmem:[%s4370_s25 + $0x38] sm:$0xff]  ;;  %v611_v8 = vld [vmem:[%s4370_s25 + $0x40] sm:$0xff] }
  0x16   : > { %608 = vst [vmem:[%s4375_s26 + $0x30] sm:$0xff] %v607_v6  ;;  %610 = vst [vmem:[%s4375_s26 + $0x38] sm:$0xff] %v609_v7  ;;  %v613_v9 = vld [vmem:[%s4370_s25 + $0x48] sm:$0xff]  ;;  %v615_v10 = vld [vmem:[%s4370_s25 + $0x50] sm:$0xff] }
  0x17   : > { %612 = vst [vmem:[%s4375_s26 + $0x40] sm:$0xff] %v611_v8  ;;  %v617_v11 = vld [vmem:[%s4370_s25 + $0x58] sm:$0xff]  ;;  %614 = vst [vmem:[%s4375_s26 + $0x48] sm:$0xff] %v613_v9  ;;  %v619_v12 = vld [vmem:[%s4370_s25 + $0x60] sm:$0xff] }
  0x18   : > { %616 = vst [vmem:[%s4375_s26 + $0x50] sm:$0xff] %v615_v10  ;;  %618 = vst [vmem:[%s4375_s26 + $0x58] sm:$0xff] %v617_v11  ;;  %v621_v13 = vld [vmem:[%s4370_s25 + $0x68] sm:$0xff]  ;;  %v623_v14 = vld [vmem:[%s4370_s25 + $0x70] sm:$0xff] }
  0x19   : > { %620 = vst [vmem:[%s4375_s26 + $0x60] sm:$0xff] %v619_v12  ;;  %622 = vst [vmem:[%s4375_s26 + $0x68] sm:$0xff] %v621_v13  ;;  %v625_v15 = vld [vmem:[%s4370_s25 + $0x78] sm:$0xff]  ;;  %v627_v16 = vld [vmem:[%s4370_s25 + $0x80] sm:$0xff] }
  0x1a   : > { %624 = vst [vmem:[%s4375_s26 + $0x70] sm:$0xff] %v623_v14  ;;  %v629_v17 = vld [vmem:[%s4370_s25 + $0x88] sm:$0xff]  ;;  %626 = vst [vmem:[%s4375_s26 + $0x78] sm:$0xff] %v625_v15  ;;  %v631_v18 = vld [vmem:[%s4370_s25 + $0x90] sm:$0xff] }
  0x1b   : > { %628 = vst [vmem:[%s4375_s26 + $0x80] sm:$0xff] %v627_v16  ;;  %630 = vst [vmem:[%s4375_s26 + $0x88] sm:$0xff] %v629_v17  ;;  %v633_v19 = vld [vmem:[%s4370_s25 + $0x98] sm:$0xff]  ;;  %v635_v20 = vld [vmem:[%s4370_s25 + $0xa0] sm:$0xff] }
  0x1c   : > { %632 = vst [vmem:[%s4375_s26 + $0x90] sm:$0xff] %v631_v18  ;;  %634 = vst [vmem:[%s4375_s26 + $0x98] sm:$0xff] %v633_v19  ;;  %v637_v21 = vld [vmem:[%s4370_s25 + $0xa8] sm:$0xff]  ;;  %v639_v22 = vld [vmem:[%s4370_s25 + $0xb0] sm:$0xff] }
  0x1d   : > { %636 = vst [vmem:[%s4375_s26 + $0xa0] sm:$0xff] %v635_v20  ;;  %v641_v23 = vld [vmem:[%s4370_s25 + $0xb8] sm:$0xff]  ;;  %638 = vst [vmem:[%s4375_s26 + $0xa8] sm:$0xff] %v637_v21  ;;  %v643_v24 = vld [vmem:[%s4370_s25 + $0xc0] sm:$0xff] }
  0x1e   : > { %640 = vst [vmem:[%s4375_s26 + $0xb0] sm:$0xff] %v639_v22  ;;  %642 = vst [vmem:[%s4375_s26 + $0xb8] sm:$0xff] %v641_v23  ;;  %v645_v25 = vld [vmem:[%s4370_s25 + $0xc8] sm:$0xff]  ;;  %v647_v26 = vld [vmem:[%s4370_s25 + $0xd0] sm:$0xff] }
  0x1f   : > { %644 = vst [vmem:[%s4375_s26 + $0xc0] sm:$0xff] %v643_v24  ;;  %646 = vst [vmem:[%s4375_s26 + $0xc8] sm:$0xff] %v645_v25  ;;  %v649_v27 = vld [vmem:[%s4370_s25 + $0xd8] sm:$0xff]  ;;  %v651_v28 = vld [vmem:[%s4370_s25 + $0xe0] sm:$0xff] }
  0x20   : > { %648 = vst [vmem:[%s4375_s26 + $0xd0] sm:$0xff] %v647_v26  ;;  %v653_v29 = vld [vmem:[%s4370_s25 + $0xe8] sm:$0xff]  ;;  %650 = vst [vmem:[%s4375_s26 + $0xd8] sm:$0xff] %v649_v27  ;;  %v655_v30 = vld [vmem:[%s4370_s25 + $0xf0] sm:$0xff] }
  0x21   : > { %652 = vst [vmem:[%s4375_s26 + $0xe0] sm:$0xff] %v651_v28  ;;  %654 = vst [vmem:[%s4375_s26 + $0xe8] sm:$0xff] %v653_v29  ;;  %v657_v31 = vld [vmem:[%s4370_s25 + $0xf8] sm:$0xff]  ;;  %v659_v32 = vld [vmem:[%s4370_s25 + $0x100] sm:$0xff] }
  0x22   : > { %656 = vst [vmem:[%s4375_s26 + $0xf0] sm:$0xff] %v655_v30  ;;  %658 = vst [vmem:[%s4375_s26 + $0xf8] sm:$0xff] %v657_v31  ;;  %v661_v33 = vld [vmem:[%s4370_s25 + $0x108] sm:$0xff]  ;;  %v663_v34 = vld [vmem:[%s4370_s25 + $0x110] sm:$0xff] }
  0x23   : > { %660 = vst [vmem:[%s4375_s26 + $0x100] sm:$0xff] %v659_v32  ;;  %v665_v35 = vld [vmem:[%s4370_s25 + $0x118] sm:$0xff]  ;;  %662 = vst [vmem:[%s4375_s26 + $0x108] sm:$0xff] %v661_v33  ;;  %v667_v36 = vld [vmem:[%s4370_s25 + $0x120] sm:$0xff] }
  0x24   : > { %664 = vst [vmem:[%s4375_s26 + $0x110] sm:$0xff] %v663_v34  ;;  %666 = vst [vmem:[%s4375_s26 + $0x118] sm:$0xff] %v665_v35  ;;  %v669_v37 = vld [vmem:[%s4370_s25 + $0x128] sm:$0xff]  ;;  %v671_v38 = vld [vmem:[%s4370_s25 + $0x130] sm:$0xff] }
  0x25   : > { %668 = vst [vmem:[%s4375_s26 + $0x120] sm:$0xff] %v667_v36  ;;  %670 = vst [vmem:[%s4375_s26 + $0x128] sm:$0xff] %v669_v37  ;;  %v673_v39 = vld [vmem:[%s4370_s25 + $0x138] sm:$0xff]  ;;  %v675_v40 = vld [vmem:[%s4370_s25 + $0x140] sm:$0xff] }
  0x26   : > { %672 = vst [vmem:[%s4375_s26 + $0x130] sm:$0xff] %v671_v38  ;;  %v677_v41 = vld [vmem:[%s4370_s25 + $0x148] sm:$0xff]  ;;  %674 = vst [vmem:[%s4375_s26 + $0x138] sm:$0xff] %v673_v39  ;;  %v679_v42 = vld [vmem:[%s4370_s25 + $0x150] sm:$0xff] }
  0x27   : > { %676 = vst [vmem:[%s4375_s26 + $0x140] sm:$0xff] %v675_v40  ;;  %678 = vst [vmem:[%s4375_s26 + $0x148] sm:$0xff] %v677_v41  ;;  %v681_v43 = vld [vmem:[%s4370_s25 + $0x158] sm:$0xff]  ;;  %v683_v44 = vld [vmem:[%s4370_s25 + $0x160] sm:$0xff] }
  0x28   : > { %680 = vst [vmem:[%s4375_s26 + $0x150] sm:$0xff] %v679_v42  ;;  %682 = vst [vmem:[%s4375_s26 + $0x158] sm:$0xff] %v681_v43  ;;  %v685_v45 = vld [vmem:[%s4370_s25 + $0x168] sm:$0xff]  ;;  %v687_v46 = vld [vmem:[%s4370_s25 + $0x170] sm:$0xff] }
  0x29   : > { %684 = vst [vmem:[%s4375_s26 + $0x160] sm:$0xff] %v683_v44  ;;  %v689_v47 = vld [vmem:[%s4370_s25 + $0x178] sm:$0xff]  ;;  %686 = vst [vmem:[%s4375_s26 + $0x168] sm:$0xff] %v685_v45  ;;  %v691_v48 = vld [vmem:[%s4370_s25 + $0x180] sm:$0xff] }
  0x2a   : > { %688 = vst [vmem:[%s4375_s26 + $0x170] sm:$0xff] %v687_v46  ;;  %690 = vst [vmem:[%s4375_s26 + $0x178] sm:$0xff] %v689_v47  ;;  %v693_v49 = vld [vmem:[%s4370_s25 + $0x188] sm:$0xff]  ;;  %v695_v50 = vld [vmem:[%s4370_s25 + $0x190] sm:$0xff] }
  0x2b   : > { %692 = vst [vmem:[%s4375_s26 + $0x180] sm:$0xff] %v691_v48  ;;  %694 = vst [vmem:[%s4375_s26 + $0x188] sm:$0xff] %v693_v49  ;;  %v697_v51 = vld [vmem:[%s4370_s25 + $0x198] sm:$0xff]  ;;  %v699_v52 = vld [vmem:[%s4370_s25 + $0x1a0] sm:$0xff] }
  0x2c   : > { %696 = vst [vmem:[%s4375_s26 + $0x190] sm:$0xff] %v695_v50  ;;  %v701_v53 = vld [vmem:[%s4370_s25 + $0x1a8] sm:$0xff]  ;;  %698 = vst [vmem:[%s4375_s26 + $0x198] sm:$0xff] %v697_v51  ;;  %v703_v54 = vld [vmem:[%s4370_s25 + $0x360] sm:$0xff] }
  0x2d   : > { %700 = vst [vmem:[%s4375_s26 + $0x1a0] sm:$0xff] %v699_v52  ;;  %702 = vst [vmem:[%s4375_s26 + $0x1a8] sm:$0xff] %v701_v53  ;;  %v705_v55 = vld [vmem:[%s4370_s25 + $0x368] sm:$0xff]  ;;  %v707_v56 = vld [vmem:[%s4370_s25 + $0x370] sm:$0xff] }
  0x2e   : > { %704 = vst [vmem:[%s4375_s26 + $0x1b0] sm:$0xff] %v703_v54  ;;  %706 = vst [vmem:[%s4375_s26 + $0x1b8] sm:$0xff] %v705_v55  ;;  %v709_v57 = vld [vmem:[%s4370_s25 + $0x378] sm:$0xff]  ;;  %v711_v58 = vld [vmem:[%s4370_s25 + $0x380] sm:$0xff] }
  0x2f   : > { %708 = vst [vmem:[%s4375_s26 + $0x1c0] sm:$0xff] %v707_v56  ;;  %v713_v59 = vld [vmem:[%s4370_s25 + $0x388] sm:$0xff]  ;;  %710 = vst [vmem:[%s4375_s26 + $0x1c8] sm:$0xff] %v709_v57  ;;  %v715_v60 = vld [vmem:[%s4370_s25 + $0x390] sm:$0xff] }
  0x30   : > { %712 = vst [vmem:[%s4375_s26 + $0x1d0] sm:$0xff] %v711_v58  ;;  %714 = vst [vmem:[%s4375_s26 + $0x1d8] sm:$0xff] %v713_v59  ;;  %v717_v61 = vld [vmem:[%s4370_s25 + $0x398] sm:$0xff]  ;;  %v719_v62 = vld [vmem:[%s4370_s25 + $0x3a0] sm:$0xff] }
  0x31   : > { %716 = vst [vmem:[%s4375_s26 + $0x1e0] sm:$0xff] %v715_v60  ;;  %718 = vst [vmem:[%s4375_s26 + $0x1e8] sm:$0xff] %v717_v61  ;;  %v721_v63 = vld [vmem:[%s4370_s25 + $0x3a8] sm:$0xff]  ;;  %v723_v0 = vld [vmem:[%s4370_s25 + $0x3b0] sm:$0xff] }
  0x32   : > { %720 = vst [vmem:[%s4375_s26 + $0x1f0] sm:$0xff] %v719_v62  ;;  %v725_v1 = vld [vmem:[%s4370_s25 + $0x3b8] sm:$0xff]  ;;  %722 = vst [vmem:[%s4375_s26 + $0x1f8] sm:$0xff] %v721_v63  ;;  %v727_v2 = vld [vmem:[%s4370_s25 + $0x3c0] sm:$0xff] }
  0x33   : > { %724 = vst [vmem:[%s4375_s26 + $0x200] sm:$0xff] %v723_v0  ;;  %726 = vst [vmem:[%s4375_s26 + $0x208] sm:$0xff] %v725_v1  ;;  %v729_v3 = vld [vmem:[%s4370_s25 + $0x3c8] sm:$0xff]  ;;  %v731_v4 = vld [vmem:[%s4370_s25 + $0x3d0] sm:$0xff] }
  0x34   : > { %728 = vst [vmem:[%s4375_s26 + $0x210] sm:$0xff] %v727_v2  ;;  %730 = vst [vmem:[%s4375_s26 + $0x218] sm:$0xff] %v729_v3  ;;  %v733_v5 = vld [vmem:[%s4370_s25 + $0x3d8] sm:$0xff]  ;;  %v735_v6 = vld [vmem:[%s4370_s25 + $0x3e0] sm:$0xff] }
  0x35   : > { %732 = vst [vmem:[%s4375_s26 + $0x220] sm:$0xff] %v731_v4  ;;  %v737_v7 = vld [vmem:[%s4370_s25 + $0x3e8] sm:$0xff]  ;;  %734 = vst [vmem:[%s4375_s26 + $0x228] sm:$0xff] %v733_v5  ;;  %v739_v8 = vld [vmem:[%s4370_s25 + $0x3f0] sm:$0xff] }
  0x36   : > { %736 = vst [vmem:[%s4375_s26 + $0x230] sm:$0xff] %v735_v6  ;;  %738 = vst [vmem:[%s4375_s26 + $0x238] sm:$0xff] %v737_v7  ;;  %v741_v9 = vld [vmem:[%s4370_s25 + $0x3f8] sm:$0xff]  ;;  %v743_v10 = vld [vmem:[%s4370_s25 + $0x400] sm:$0xff] }
  0x37   : > { %740 = vst [vmem:[%s4375_s26 + $0x240] sm:$0xff] %v739_v8  ;;  %742 = vst [vmem:[%s4375_s26 + $0x248] sm:$0xff] %v741_v9  ;;  %v745_v11 = vld [vmem:[%s4370_s25 + $0x408] sm:$0xff]  ;;  %v747_v12 = vld [vmem:[%s4370_s25 + $0x410] sm:$0xff] }
  0x38   : > { %744 = vst [vmem:[%s4375_s26 + $0x250] sm:$0xff] %v743_v10  ;;  %v749_v13 = vld [vmem:[%s4370_s25 + $0x418] sm:$0xff]  ;;  %746 = vst [vmem:[%s4375_s26 + $0x258] sm:$0xff] %v745_v11  ;;  %v751_v14 = vld [vmem:[%s4370_s25 + $0x420] sm:$0xff] }
  0x39   : > { %748 = vst [vmem:[%s4375_s26 + $0x260] sm:$0xff] %v747_v12  ;;  %750 = vst [vmem:[%s4375_s26 + $0x268] sm:$0xff] %v749_v13  ;;  %v753_v15 = vld [vmem:[%s4370_s25 + $0x428] sm:$0xff]  ;;  %v755_v16 = vld [vmem:[%s4370_s25 + $0x430] sm:$0xff] }
  0x3a   : > { %752 = vst [vmem:[%s4375_s26 + $0x270] sm:$0xff] %v751_v14  ;;  %754 = vst [vmem:[%s4375_s26 + $0x278] sm:$0xff] %v753_v15  ;;  %v757_v17 = vld [vmem:[%s4370_s25 + $0x438] sm:$0xff]  ;;  %v759_v18 = vld [vmem:[%s4370_s25 + $0x440] sm:$0xff] }
  0x3b   : > { %756 = vst [vmem:[%s4375_s26 + $0x280] sm:$0xff] %v755_v16  ;;  %v761_v19 = vld [vmem:[%s4370_s25 + $0x448] sm:$0xff]  ;;  %758 = vst [vmem:[%s4375_s26 + $0x288] sm:$0xff] %v757_v17  ;;  %v763_v20 = vld [vmem:[%s4370_s25 + $0x450] sm:$0xff] }
  0x3c   : > { %760 = vst [vmem:[%s4375_s26 + $0x290] sm:$0xff] %v759_v18  ;;  %762 = vst [vmem:[%s4375_s26 + $0x298] sm:$0xff] %v761_v19  ;;  %v765_v21 = vld [vmem:[%s4370_s25 + $0x458] sm:$0xff]  ;;  %v767_v22 = vld [vmem:[%s4370_s25 + $0x460] sm:$0xff] }
  0x3d   : > { %764 = vst [vmem:[%s4375_s26 + $0x2a0] sm:$0xff] %v763_v20  ;;  %766 = vst [vmem:[%s4375_s26 + $0x2a8] sm:$0xff] %v765_v21  ;;  %v769_v23 = vld [vmem:[%s4370_s25 + $0x468] sm:$0xff]  ;;  %v771_v24 = vld [vmem:[%s4370_s25 + $0x470] sm:$0xff] }
  0x3e   : > { %768 = vst [vmem:[%s4375_s26 + $0x2b0] sm:$0xff] %v767_v22  ;;  %v773_v25 = vld [vmem:[%s4370_s25 + $0x478] sm:$0xff]  ;;  %770 = vst [vmem:[%s4375_s26 + $0x2b8] sm:$0xff] %v769_v23  ;;  %v775_v26 = vld [vmem:[%s4370_s25 + $0x480] sm:$0xff] }
  0x3f   : > { %772 = vst [vmem:[%s4375_s26 + $0x2c0] sm:$0xff] %v771_v24  ;;  %774 = vst [vmem:[%s4375_s26 + $0x2c8] sm:$0xff] %v773_v25  ;;  %v777_v27 = vld [vmem:[%s4370_s25 + $0x488] sm:$0xff]  ;;  %v779_v28 = vld [vmem:[%s4370_s25 + $0x490] sm:$0xff] }
  0x40   : > { %776 = vst [vmem:[%s4375_s26 + $0x2d0] sm:$0xff] %v775_v26  ;;  %778 = vst [vmem:[%s4375_s26 + $0x2d8] sm:$0xff] %v777_v27  ;;  %v781_v29 = vld [vmem:[%s4370_s25 + $0x498] sm:$0xff]  ;;  %v783_v30 = vld [vmem:[%s4370_s25 + $0x4a0] sm:$0xff] }
  0x41   : > { %780 = vst [vmem:[%s4375_s26 + $0x2e0] sm:$0xff] %v779_v28  ;;  %v785_v31 = vld [vmem:[%s4370_s25 + $0x4a8] sm:$0xff]  ;;  %782 = vst [vmem:[%s4375_s26 + $0x2e8] sm:$0xff] %v781_v29  ;;  %v787_v32 = vld [vmem:[%s4370_s25 + $0x4b0] sm:$0xff] }
  0x42   : > { %784 = vst [vmem:[%s4375_s26 + $0x2f0] sm:$0xff] %v783_v30  ;;  %786 = vst [vmem:[%s4375_s26 + $0x2f8] sm:$0xff] %v785_v31  ;;  %v789_v33 = vld [vmem:[%s4370_s25 + $0x4b8] sm:$0xff]  ;;  %v791_v34 = vld [vmem:[%s4370_s25 + $0x4c0] sm:$0xff] }
  0x43   : > { %788 = vst [vmem:[%s4375_s26 + $0x300] sm:$0xff] %v787_v32  ;;  %790 = vst [vmem:[%s4375_s26 + $0x308] sm:$0xff] %v789_v33  ;;  %v793_v35 = vld [vmem:[%s4370_s25 + $0x4c8] sm:$0xff]  ;;  %v795_v36 = vld [vmem:[%s4370_s25 + $0x4d0] sm:$0xff] }
  0x44   : > { %792 = vst [vmem:[%s4375_s26 + $0x310] sm:$0xff] %v791_v34  ;;  %v797_v37 = vld [vmem:[%s4370_s25 + $0x4d8] sm:$0xff]  ;;  %794 = vst [vmem:[%s4375_s26 + $0x318] sm:$0xff] %v793_v35  ;;  %v799_v38 = vld [vmem:[%s4370_s25 + $0x4e0] sm:$0xff] }
  0x45   : > { %796 = vst [vmem:[%s4375_s26 + $0x320] sm:$0xff] %v795_v36  ;;  %798 = vst [vmem:[%s4375_s26 + $0x328] sm:$0xff] %v797_v37  ;;  %v801_v39 = vld [vmem:[%s4370_s25 + $0x4e8] sm:$0xff]  ;;  %v803_v40 = vld [vmem:[%s4370_s25 + $0x4f0] sm:$0xff] }
  0x46   : > { %800 = vst [vmem:[%s4375_s26 + $0x330] sm:$0xff] %v799_v38  ;;  %802 = vst [vmem:[%s4375_s26 + $0x338] sm:$0xff] %v801_v39  ;;  %v805_v41 = vld [vmem:[%s4370_s25 + $0x4f8] sm:$0xff]  ;;  %v807_v42 = vld [vmem:[%s4370_s25 + $0x500] sm:$0xff] }
  0x47   : > { %804 = vst [vmem:[%s4375_s26 + $0x340] sm:$0xff] %v803_v40  ;;  %v809_v43 = vld [vmem:[%s4370_s25 + $0x508] sm:$0xff]  ;;  %806 = vst [vmem:[%s4375_s26 + $0x348] sm:$0xff] %v805_v41  ;;  %v811_v44 = vld [vmem:[%s4370_s25 + $0x6c0] sm:$0xff] }
  0x48   : > { %808 = vst [vmem:[%s4375_s26 + $0x350] sm:$0xff] %v807_v42  ;;  %810 = vst [vmem:[%s4375_s26 + $0x358] sm:$0xff] %v809_v43  ;;  %v813_v45 = vld [vmem:[%s4370_s25 + $0x6c8] sm:$0xff]  ;;  %v815_v46 = vld [vmem:[%s4370_s25 + $0x6d0] sm:$0xff] }
  0x49   : > { %812 = vst [vmem:[%s4375_s26 + $0x360] sm:$0xff] %v811_v44  ;;  %814 = vst [vmem:[%s4375_s26 + $0x368] sm:$0xff] %v813_v45  ;;  %v817_v47 = vld [vmem:[%s4370_s25 + $0x6d8] sm:$0xff]  ;;  %v819_v48 = vld [vmem:[%s4370_s25 + $0x6e0] sm:$0xff] }
  0x4a   : > { %816 = vst [vmem:[%s4375_s26 + $0x370] sm:$0xff] %v815_v46  ;;  %v821_v49 = vld [vmem:[%s4370_s25 + $0x6e8] sm:$0xff]  ;;  %818 = vst [vmem:[%s4375_s26 + $0x378] sm:$0xff] %v817_v47  ;;  %v823_v50 = vld [vmem:[%s4370_s25 + $0x6f0] sm:$0xff] }
  0x4b   : > { %820 = vst [vmem:[%s4375_s26 + $0x380] sm:$0xff] %v819_v48  ;;  %822 = vst [vmem:[%s4375_s26 + $0x388] sm:$0xff] %v821_v49  ;;  %v825_v51 = vld [vmem:[%s4370_s25 + $0x6f8] sm:$0xff]  ;;  %v827_v52 = vld [vmem:[%s4370_s25 + $0x700] sm:$0xff] }
  0x4c   : > { %824 = vst [vmem:[%s4375_s26 + $0x390] sm:$0xff] %v823_v50  ;;  %826 = vst [vmem:[%s4375_s26 + $0x398] sm:$0xff] %v825_v51  ;;  %v829_v53 = vld [vmem:[%s4370_s25 + $0x708] sm:$0xff]  ;;  %v831_v54 = vld [vmem:[%s4370_s25 + $0x710] sm:$0xff] }
  0x4d   : > { %828 = vst [vmem:[%s4375_s26 + $0x3a0] sm:$0xff] %v827_v52  ;;  %v833_v55 = vld [vmem:[%s4370_s25 + $0x718] sm:$0xff]  ;;  %830 = vst [vmem:[%s4375_s26 + $0x3a8] sm:$0xff] %v829_v53  ;;  %v835_v56 = vld [vmem:[%s4370_s25 + $0x720] sm:$0xff] }
  0x4e   : > { %832 = vst [vmem:[%s4375_s26 + $0x3b0] sm:$0xff] %v831_v54  ;;  %834 = vst [vmem:[%s4375_s26 + $0x3b8] sm:$0xff] %v833_v55  ;;  %v837_v57 = vld [vmem:[%s4370_s25 + $0x728] sm:$0xff]  ;;  %v839_v58 = vld [vmem:[%s4370_s25 + $0x730] sm:$0xff] }
  0x4f   : > { %836 = vst [vmem:[%s4375_s26 + $0x3c0] sm:$0xff] %v835_v56  ;;  %838 = vst [vmem:[%s4375_s26 + $0x3c8] sm:$0xff] %v837_v57  ;;  %v841_v59 = vld [vmem:[%s4370_s25 + $0x738] sm:$0xff]  ;;  %v843_v60 = vld [vmem:[%s4370_s25 + $0x740] sm:$0xff] }
  0x50   : > { %840 = vst [vmem:[%s4375_s26 + $0x3d0] sm:$0xff] %v839_v58  ;;  %v845_v61 = vld [vmem:[%s4370_s25 + $0x748] sm:$0xff]  ;;  %842 = vst [vmem:[%s4375_s26 + $0x3d8] sm:$0xff] %v841_v59  ;;  %v847_v62 = vld [vmem:[%s4370_s25 + $0x750] sm:$0xff] }
  0x51   : > { %844 = vst [vmem:[%s4375_s26 + $0x3e0] sm:$0xff] %v843_v60  ;;  %846 = vst [vmem:[%s4375_s26 + $0x3e8] sm:$0xff] %v845_v61  ;;  %v849_v63 = vld [vmem:[%s4370_s25 + $0x758] sm:$0xff]  ;;  %v851_v0 = vld [vmem:[%s4370_s25 + $0x760] sm:$0xff] }
  0x52   : > { %848 = vst [vmem:[%s4375_s26 + $0x3f0] sm:$0xff] %v847_v62  ;;  %850 = vst [vmem:[%s4375_s26 + $0x3f8] sm:$0xff] %v849_v63  ;;  %v853_v1 = vld [vmem:[%s4370_s25 + $0x768] sm:$0xff]  ;;  %v855_v2 = vld [vmem:[%s4370_s25 + $0x770] sm:$0xff] }
  0x53   : > { %852 = vst [vmem:[%s4375_s26 + $0x400] sm:$0xff] %v851_v0  ;;  %v857_v3 = vld [vmem:[%s4370_s25 + $0x778] sm:$0xff]  ;;  %854 = vst [vmem:[%s4375_s26 + $0x408] sm:$0xff] %v853_v1  ;;  %v859_v4 = vld [vmem:[%s4370_s25 + $0x780] sm:$0xff] }
  0x54   : > { %856 = vst [vmem:[%s4375_s26 + $0x410] sm:$0xff] %v855_v2  ;;  %858 = vst [vmem:[%s4375_s26 + $0x418] sm:$0xff] %v857_v3  ;;  %v861_v5 = vld [vmem:[%s4370_s25 + $0x788] sm:$0xff]  ;;  %v863_v6 = vld [vmem:[%s4370_s25 + $0x790] sm:$0xff] }
  0x55   : > { %860 = vst [vmem:[%s4375_s26 + $0x420] sm:$0xff] %v859_v4  ;;  %862 = vst [vmem:[%s4375_s26 + $0x428] sm:$0xff] %v861_v5  ;;  %v865_v7 = vld [vmem:[%s4370_s25 + $0x798] sm:$0xff]  ;;  %v867_v8 = vld [vmem:[%s4370_s25 + $0x7a0] sm:$0xff] }
  0x56   : > { %864 = vst [vmem:[%s4375_s26 + $0x430] sm:$0xff] %v863_v6  ;;  %v869_v9 = vld [vmem:[%s4370_s25 + $0x7a8] sm:$0xff]  ;;  %866 = vst [vmem:[%s4375_s26 + $0x438] sm:$0xff] %v865_v7  ;;  %v871_v10 = vld [vmem:[%s4370_s25 + $0x7b0] sm:$0xff] }
  0x57   : > { %868 = vst [vmem:[%s4375_s26 + $0x440] sm:$0xff] %v867_v8  ;;  %870 = vst [vmem:[%s4375_s26 + $0x448] sm:$0xff] %v869_v9  ;;  %v873_v11 = vld [vmem:[%s4370_s25 + $0x7b8] sm:$0xff]  ;;  %v875_v12 = vld [vmem:[%s4370_s25 + $0x7c0] sm:$0xff] }
  0x58   : > { %872 = vst [vmem:[%s4375_s26 + $0x450] sm:$0xff] %v871_v10  ;;  %874 = vst [vmem:[%s4375_s26 + $0x458] sm:$0xff] %v873_v11  ;;  %v877_v13 = vld [vmem:[%s4370_s25 + $0x7c8] sm:$0xff]  ;;  %v879_v14 = vld [vmem:[%s4370_s25 + $0x7d0] sm:$0xff] }
  0x59   : > { %876 = vst [vmem:[%s4375_s26 + $0x460] sm:$0xff] %v875_v12  ;;  %v881_v15 = vld [vmem:[%s4370_s25 + $0x7d8] sm:$0xff]  ;;  %878 = vst [vmem:[%s4375_s26 + $0x468] sm:$0xff] %v877_v13  ;;  %v883_v16 = vld [vmem:[%s4370_s25 + $0x7e0] sm:$0xff] }
  0x5a   : > { %880 = vst [vmem:[%s4375_s26 + $0x470] sm:$0xff] %v879_v14  ;;  %882 = vst [vmem:[%s4375_s26 + $0x478] sm:$0xff] %v881_v15  ;;  %v885_v17 = vld [vmem:[%s4370_s25 + $0x7e8] sm:$0xff]  ;;  %v887_v18 = vld [vmem:[%s4370_s25 + $0x7f0] sm:$0xff] }
  0x5b   : > { %884 = vst [vmem:[%s4375_s26 + $0x480] sm:$0xff] %v883_v16  ;;  %886 = vst [vmem:[%s4375_s26 + $0x488] sm:$0xff] %v885_v17  ;;  %v889_v19 = vld [vmem:[%s4370_s25 + $0x7f8] sm:$0xff]  ;;  %v891_v20 = vld [vmem:[%s4370_s25 + $0x800] sm:$0xff] }
  0x5c   : > { %888 = vst [vmem:[%s4375_s26 + $0x490] sm:$0xff] %v887_v18  ;;  %v893_v21 = vld [vmem:[%s4370_s25 + $0x808] sm:$0xff]  ;;  %890 = vst [vmem:[%s4375_s26 + $0x498] sm:$0xff] %v889_v19  ;;  %v895_v22 = vld [vmem:[%s4370_s25 + $0x810] sm:$0xff] }
  0x5d   : > { %892 = vst [vmem:[%s4375_s26 + $0x4a0] sm:$0xff] %v891_v20  ;;  %894 = vst [vmem:[%s4375_s26 + $0x4a8] sm:$0xff] %v893_v21  ;;  %v897_v23 = vld [vmem:[%s4370_s25 + $0x818] sm:$0xff]  ;;  %v899_v24 = vld [vmem:[%s4370_s25 + $0x820] sm:$0xff] }
  0x5e   : > { %896 = vst [vmem:[%s4375_s26 + $0x4b0] sm:$0xff] %v895_v22  ;;  %898 = vst [vmem:[%s4375_s26 + $0x4b8] sm:$0xff] %v897_v23  ;;  %v901_v25 = vld [vmem:[%s4370_s25 + $0x828] sm:$0xff]  ;;  %v903_v26 = vld [vmem:[%s4370_s25 + $0x830] sm:$0xff] }
  0x5f   : > { %900 = vst [vmem:[%s4375_s26 + $0x4c0] sm:$0xff] %v899_v24  ;;  %v905_v27 = vld [vmem:[%s4370_s25 + $0x838] sm:$0xff]  ;;  %902 = vst [vmem:[%s4375_s26 + $0x4c8] sm:$0xff] %v901_v25  ;;  %v907_v28 = vld [vmem:[%s4370_s25 + $0x840] sm:$0xff] }
  0x60   : > { %904 = vst [vmem:[%s4375_s26 + $0x4d0] sm:$0xff] %v903_v26  ;;  %906 = vst [vmem:[%s4375_s26 + $0x4d8] sm:$0xff] %v905_v27  ;;  %v909_v29 = vld [vmem:[%s4370_s25 + $0x848] sm:$0xff]  ;;  %v911_v30 = vld [vmem:[%s4370_s25 + $0x850] sm:$0xff] }
  0x61   : > { %908 = vst [vmem:[%s4375_s26 + $0x4e0] sm:$0xff] %v907_v28  ;;  %910 = vst [vmem:[%s4375_s26 + $0x4e8] sm:$0xff] %v909_v29  ;;  %v913_v31 = vld [vmem:[%s4370_s25 + $0x858] sm:$0xff]  ;;  %v915_v32 = vld [vmem:[%s4370_s25 + $0x860] sm:$0xff] }
  0x62   : > { %912 = vst [vmem:[%s4375_s26 + $0x4f0] sm:$0xff] %v911_v30  ;;  %v917_v33 = vld [vmem:[%s4370_s25 + $0x868] sm:$0xff]  ;;  %914 = vst [vmem:[%s4375_s26 + $0x4f8] sm:$0xff] %v913_v31  ;;  %v919_v34 = vld [vmem:[%s4370_s25 + $0xa20] sm:$0xff] }
  0x63   : > { %916 = vst [vmem:[%s4375_s26 + $0x500] sm:$0xff] %v915_v32  ;;  %918 = vst [vmem:[%s4375_s26 + $0x508] sm:$0xff] %v917_v33  ;;  %v921_v35 = vld [vmem:[%s4370_s25 + $0xa28] sm:$0xff]  ;;  %v923_v36 = vld [vmem:[%s4370_s25 + $0xa30] sm:$0xff] }
  0x64   : > { %920 = vst [vmem:[%s4375_s26 + $0x510] sm:$0xff] %v919_v34  ;;  %922 = vst [vmem:[%s4375_s26 + $0x518] sm:$0xff] %v921_v35  ;;  %v925_v37 = vld [vmem:[%s4370_s25 + $0xa38] sm:$0xff]  ;;  %v927_v38 = vld [vmem:[%s4370_s25 + $0xa40] sm:$0xff] }
  0x65   : > { %924 = vst [vmem:[%s4375_s26 + $0x520] sm:$0xff] %v923_v36  ;;  %v929_v39 = vld [vmem:[%s4370_s25 + $0xa48] sm:$0xff]  ;;  %926 = vst [vmem:[%s4375_s26 + $0x528] sm:$0xff] %v925_v37  ;;  %v931_v40 = vld [vmem:[%s4370_s25 + $0xa50] sm:$0xff] }
  0x66   : > { %928 = vst [vmem:[%s4375_s26 + $0x530] sm:$0xff] %v927_v38  ;;  %930 = vst [vmem:[%s4375_s26 + $0x538] sm:$0xff] %v929_v39  ;;  %v933_v41 = vld [vmem:[%s4370_s25 + $0xa58] sm:$0xff]  ;;  %v935_v42 = vld [vmem:[%s4370_s25 + $0xa60] sm:$0xff] }
  0x67   : > { %932 = vst [vmem:[%s4375_s26 + $0x540] sm:$0xff] %v931_v40  ;;  %934 = vst [vmem:[%s4375_s26 + $0x548] sm:$0xff] %v933_v41  ;;  %v937_v43 = vld [vmem:[%s4370_s25 + $0xa68] sm:$0xff]  ;;  %v939_v44 = vld [vmem:[%s4370_s25 + $0xa70] sm:$0xff] }
  0x68   : > { %936 = vst [vmem:[%s4375_s26 + $0x550] sm:$0xff] %v935_v42  ;;  %v941_v45 = vld [vmem:[%s4370_s25 + $0xa78] sm:$0xff]  ;;  %938 = vst [vmem:[%s4375_s26 + $0x558] sm:$0xff] %v937_v43  ;;  %v943_v46 = vld [vmem:[%s4370_s25 + $0xa80] sm:$0xff] }
  0x69   : > { %940 = vst [vmem:[%s4375_s26 + $0x560] sm:$0xff] %v939_v44  ;;  %942 = vst [vmem:[%s4375_s26 + $0x568] sm:$0xff] %v941_v45  ;;  %v945_v47 = vld [vmem:[%s4370_s25 + $0xa88] sm:$0xff]  ;;  %v947_v48 = vld [vmem:[%s4370_s25 + $0xa90] sm:$0xff] }
  0x6a   : > { %944 = vst [vmem:[%s4375_s26 + $0x570] sm:$0xff] %v943_v46  ;;  %946 = vst [vmem:[%s4375_s26 + $0x578] sm:$0xff] %v945_v47  ;;  %v949_v49 = vld [vmem:[%s4370_s25 + $0xa98] sm:$0xff]  ;;  %v951_v50 = vld [vmem:[%s4370_s25 + $0xaa0] sm:$0xff] }
  0x6b   : > { %948 = vst [vmem:[%s4375_s26 + $0x580] sm:$0xff] %v947_v48  ;;  %v953_v51 = vld [vmem:[%s4370_s25 + $0xaa8] sm:$0xff]  ;;  %950 = vst [vmem:[%s4375_s26 + $0x588] sm:$0xff] %v949_v49  ;;  %v955_v52 = vld [vmem:[%s4370_s25 + $0xab0] sm:$0xff] }
  0x6c   : > { %952 = vst [vmem:[%s4375_s26 + $0x590] sm:$0xff] %v951_v50  ;;  %954 = vst [vmem:[%s4375_s26 + $0x598] sm:$0xff] %v953_v51  ;;  %v957_v53 = vld [vmem:[%s4370_s25 + $0xab8] sm:$0xff]  ;;  %v959_v54 = vld [vmem:[%s4370_s25 + $0xac0] sm:$0xff] }
  0x6d   : > { %956 = vst [vmem:[%s4375_s26 + $0x5a0] sm:$0xff] %v955_v52  ;;  %958 = vst [vmem:[%s4375_s26 + $0x5a8] sm:$0xff] %v957_v53  ;;  %v961_v55 = vld [vmem:[%s4370_s25 + $0xac8] sm:$0xff]  ;;  %v963_v56 = vld [vmem:[%s4370_s25 + $0xad0] sm:$0xff] }
  0x6e   : > { %960 = vst [vmem:[%s4375_s26 + $0x5b0] sm:$0xff] %v959_v54  ;;  %v965_v57 = vld [vmem:[%s4370_s25 + $0xad8] sm:$0xff]  ;;  %962 = vst [vmem:[%s4375_s26 + $0x5b8] sm:$0xff] %v961_v55  ;;  %v967_v58 = vld [vmem:[%s4370_s25 + $0xae0] sm:$0xff] }
  0x6f   : > { %964 = vst [vmem:[%s4375_s26 + $0x5c0] sm:$0xff] %v963_v56  ;;  %966 = vst [vmem:[%s4375_s26 + $0x5c8] sm:$0xff] %v965_v57  ;;  %v969_v59 = vld [vmem:[%s4370_s25 + $0xae8] sm:$0xff]  ;;  %v971_v60 = vld [vmem:[%s4370_s25 + $0xaf0] sm:$0xff] }
  0x70   : > { %968 = vst [vmem:[%s4375_s26 + $0x5d0] sm:$0xff] %v967_v58  ;;  %970 = vst [vmem:[%s4375_s26 + $0x5d8] sm:$0xff] %v969_v59  ;;  %v973_v61 = vld [vmem:[%s4370_s25 + $0xaf8] sm:$0xff]  ;;  %v975_v62 = vld [vmem:[%s4370_s25 + $0xb00] sm:$0xff] }
  0x71   : > { %972 = vst [vmem:[%s4375_s26 + $0x5e0] sm:$0xff] %v971_v60  ;;  %v977_v63 = vld [vmem:[%s4370_s25 + $0xb08] sm:$0xff]  ;;  %974 = vst [vmem:[%s4375_s26 + $0x5e8] sm:$0xff] %v973_v61  ;;  %v979_v0 = vld [vmem:[%s4370_s25 + $0xb10] sm:$0xff] }
  0x72   : > { %976 = vst [vmem:[%s4375_s26 + $0x5f0] sm:$0xff] %v975_v62  ;;  %978 = vst [vmem:[%s4375_s26 + $0x5f8] sm:$0xff] %v977_v63  ;;  %v981_v1 = vld [vmem:[%s4370_s25 + $0xb18] sm:$0xff]  ;;  %v983_v2 = vld [vmem:[%s4370_s25 + $0xb20] sm:$0xff] }
  0x73   : > { %980 = vst [vmem:[%s4375_s26 + $0x600] sm:$0xff] %v979_v0  ;;  %982 = vst [vmem:[%s4375_s26 + $0x608] sm:$0xff] %v981_v1  ;;  %v985_v3 = vld [vmem:[%s4370_s25 + $0xb28] sm:$0xff]  ;;  %v987_v4 = vld [vmem:[%s4370_s25 + $0xb30] sm:$0xff] }
  0x74   : > { %984 = vst [vmem:[%s4375_s26 + $0x610] sm:$0xff] %v983_v2  ;;  %v989_v5 = vld [vmem:[%s4370_s25 + $0xb38] sm:$0xff]  ;;  %986 = vst [vmem:[%s4375_s26 + $0x618] sm:$0xff] %v985_v3  ;;  %v991_v6 = vld [vmem:[%s4370_s25 + $0xb40] sm:$0xff] }
  0x75   : > { %988 = vst [vmem:[%s4375_s26 + $0x620] sm:$0xff] %v987_v4  ;;  %990 = vst [vmem:[%s4375_s26 + $0x628] sm:$0xff] %v989_v5  ;;  %v993_v7 = vld [vmem:[%s4370_s25 + $0xb48] sm:$0xff]  ;;  %v995_v8 = vld [vmem:[%s4370_s25 + $0xb50] sm:$0xff] }
  0x76   : > { %992 = vst [vmem:[%s4375_s26 + $0x630] sm:$0xff] %v991_v6  ;;  %994 = vst [vmem:[%s4375_s26 + $0x638] sm:$0xff] %v993_v7  ;;  %v997_v9 = vld [vmem:[%s4370_s25 + $0xb58] sm:$0xff]  ;;  %v999_v10 = vld [vmem:[%s4370_s25 + $0xb60] sm:$0xff] }
  0x77   : > { %996 = vst [vmem:[%s4375_s26 + $0x640] sm:$0xff] %v995_v8  ;;  %v1001_v11 = vld [vmem:[%s4370_s25 + $0xb68] sm:$0xff]  ;;  %998 = vst [vmem:[%s4375_s26 + $0x648] sm:$0xff] %v997_v9  ;;  %v1003_v12 = vld [vmem:[%s4370_s25 + $0xb70] sm:$0xff] }
  0x78   : > { %1000 = vst [vmem:[%s4375_s26 + $0x650] sm:$0xff] %v999_v10  ;;  %1002 = vst [vmem:[%s4375_s26 + $0x658] sm:$0xff] %v1001_v11  ;;  %v1005_v13 = vld [vmem:[%s4370_s25 + $0xb78] sm:$0xff]  ;;  %v1007_v14 = vld [vmem:[%s4370_s25 + $0xb80] sm:$0xff] }
  0x79   : > { %1004 = vst [vmem:[%s4375_s26 + $0x660] sm:$0xff] %v1003_v12  ;;  %1006 = vst [vmem:[%s4375_s26 + $0x668] sm:$0xff] %v1005_v13  ;;  %v1009_v15 = vld [vmem:[%s4370_s25 + $0xb88] sm:$0xff]  ;;  %v1011_v16 = vld [vmem:[%s4370_s25 + $0xb90] sm:$0xff] }
  0x7a   : > { %1008 = vst [vmem:[%s4375_s26 + $0x670] sm:$0xff] %v1007_v14  ;;  %v1013_v17 = vld [vmem:[%s4370_s25 + $0xb98] sm:$0xff]  ;;  %1010 = vst [vmem:[%s4375_s26 + $0x678] sm:$0xff] %v1009_v15  ;;  %v1015_v18 = vld [vmem:[%s4370_s25 + $0xba0] sm:$0xff] }
  0x7b   : > { %1012 = vst [vmem:[%s4375_s26 + $0x680] sm:$0xff] %v1011_v16  ;;  %1014 = vst [vmem:[%s4375_s26 + $0x688] sm:$0xff] %v1013_v17  ;;  %v1017_v19 = vld [vmem:[%s4370_s25 + $0xba8] sm:$0xff]  ;;  %v1019_v20 = vld [vmem:[%s4370_s25 + $0xbb0] sm:$0xff] }
  0x7c   : > { %1016 = vst [vmem:[%s4375_s26 + $0x690] sm:$0xff] %v1015_v18  ;;  %1018 = vst [vmem:[%s4375_s26 + $0x698] sm:$0xff] %v1017_v19  ;;  %v1021_v21 = vld [vmem:[%s4370_s25 + $0xbb8] sm:$0xff]  ;;  %v1023_v22 = vld [vmem:[%s4370_s25 + $0xbc0] sm:$0xff] }
  0x7d   : > { %1020 = vst [vmem:[%s4375_s26 + $0x6a0] sm:$0xff] %v1019_v20  ;;  %v1025_v23 = vld [vmem:[%s4370_s25 + $0xbc8] sm:$0xff]  ;;  %1022 = vst [vmem:[%s4375_s26 + $0x6a8] sm:$0xff] %v1021_v21 }
  0x7e   : > { %1024 = vst [vmem:[%s4375_s26 + $0x6b0] sm:$0xff] %v1023_v22  ;;  %1026 = vst [vmem:[%s4375_s26 + $0x6b8] sm:$0xff] %v1025_v23 }
  0x7f PF: > { %p3480_p5 = scmp.ge.s32.totalorder %s4314_s14, 1  ;;  %p1031_p6 = scmp.lt.s32.totalorder %s4314_s14, 3 }
  0x81   : > { %p1032_p7 = pnand %p3480_p5, %p1031_p6 }
  0x83   : > { %1035 = sbr.rel (%p1032_p7) target bundleno = 585 (0x249), region = 66 }
  0x8a   : > { %v1284_v24 = vld [vmem:[%s5710_s1] sm:$0xff]  ;;  %v1285_v25 = vld [vmem:[%s5710_s1 + $0x8] sm:$0xff]  ;;  %v1286_v26 = vld [vmem:[%s5710_s1 + $0x10] sm:$0xff]  ;;  %s1038_s6 = sand.u32 1, %s4306_s12   ;;  %vm1288_vm0 = vcmask 261120   ;;  %s1062_s11 = smul.u32 54, %s3475_s15 }
  0x8b   : > { %v4254_v27 = vpack.c.bf16 %v1285_v25, %v1284_v24  ;;  %v1287_v28 = vld [vmem:[%s5710_s1 + $0x18] sm:$0xff]  ;;  %s4267_s9 = smul.u32 1728, %s1038_s6 }
  0x8c   : > { %v4258_v29 = vpack.c.bf16 %v1287_v28, %v1286_v26  ;;  %p1063_p8 = scmp.lt.s32.totalorder %s1062_s11, 107 }
  0x8d   : > { %4255 = vmatprep.subr.bf16.mxu0 %v4254_v27  ;;  %4262 = vmatprep.subr.bf16.mxu1 %v4254_v27  ;;  %s4821_s10 = scalar_lea.vmem [#allocation2], %s4267_s9 }
  0x8e   : > { %4257 = vmatpush3.bf16.msra.mxu0 %v4254_v27  ;;  %4264 = vmatpush3.bf16.msra.mxu1 %v4254_v27  ;;  %v1068_v30 = vld [vmem:[%s4821_s10] sm:$0xff]  ;;  %v1069_v32 = vld [vmem:[%s4821_s10 + $0x8] sm:$0xff]  ;;  %v1070_v34 = vld [vmem:[%s4821_s10 + $0x10] sm:$0xff]  ;;  %s5833_s11 = smov (!%p1063_p8, %s1062_s11), 107 }
  0x8f   : > { %v1176_v31 = vld [vmem:[%s4821_s10 + $0x360] sm:$0xff]  ;;  %4259 = vmatprep.subr.bf16.mxu0 %v4258_v29  ;;  %4263 = vmatprep.subr.bf16.mxu1 %v4258_v29  ;;  %v1177_v33 = vld [vmem:[%s4821_s10 + $0x368] sm:$0xff]  ;;  %v1178_v35 = vld [vmem:[%s4821_s10 + $0x370] sm:$0xff]  ;;  %s3481_s15 = sshll.u32 %s5833_s11, 3 }
  0x90   : > { %3930 = vmatprep.mubr.msk.f32.mxu0 %vm1288_vm0, %v1068_v30  ;;  %4092 = vmatprep.mubr.msk.f32.mxu1 %vm1288_vm0, %v1176_v31  ;;  %v1071_v36 = vld [vmem:[%s4821_s10 + $0x18] sm:$0xff]  ;;  %v1072_v38 = vld [vmem:[%s4821_s10 + $0x20] sm:$0xff]  ;;  %v1073_v40 = vld [vmem:[%s4821_s10 + $0x28] sm:$0xff]  ;;  %s5489_s20 = scalar_lea.vmem %s5712_s3, %s3481_s15 }
  0x91   : > { %v1179_v37 = vld [vmem:[%s4821_s10 + $0x378] sm:$0xff]  ;;  %v1180_v39 = vld [vmem:[%s4821_s10 + $0x380] sm:$0xff]  ;;  %v1181_v41 = vld [vmem:[%s4821_s10 + $0x388] sm:$0xff] }
  0x92   : > { %4261 = vmatpush3.bf16.msra.mxu0 %v4258_v29  ;;  %4265 = vmatpush3.bf16.msra.mxu1 %v4258_v29  ;;  %v1074_v42 = vld [vmem:[%s4821_s10 + $0x30] sm:$0xff]  ;;  %v1075_v44 = vld [vmem:[%s4821_s10 + $0x38] sm:$0xff]  ;;  %v1076_v46 = vld [vmem:[%s4821_s10 + $0x40] sm:$0xff] }
  0x93   : > { %v1182_v43 = vld [vmem:[%s4821_s10 + $0x390] sm:$0xff]  ;;  %v1183_v45 = vld [vmem:[%s4821_s10 + $0x398] sm:$0xff]  ;;  %v1184_v47 = vld [vmem:[%s4821_s10 + $0x3a0] sm:$0xff] }
  0x94   : > { %v1077_v48 = vld [vmem:[%s4821_s10 + $0x48] sm:$0xff]  ;;  %v1078_v50 = vld [vmem:[%s4821_s10 + $0x50] sm:$0xff]  ;;  %v1079_v52 = vld [vmem:[%s4821_s10 + $0x58] sm:$0xff] }
  0x95   : > { %3931 = vmatmul.mubr.msk.f32.vlgmr.msra.gmra.mrb[0].mxu0 %vm1288_vm0, %v1069_v32  ;;  %4093 = vmatmul.mubr.msk.f32.vlgmr.msra.gmra.mrb[0].mxu1 %vm1288_vm0, %v1177_v33  ;;  %v1185_v49 = vld [vmem:[%s4821_s10 + $0x3a8] sm:$0xff]  ;;  %v1186_v51 = vld [vmem:[%s4821_s10 + $0x3b0] sm:$0xff]  ;;  %v1187_v53 = vld [vmem:[%s4821_s10 + $0x3b8] sm:$0xff] }
  0x96   : > { %3933 = vmatprep.mubr.msk.f32.mxu0 %vm1288_vm0, %v1070_v34  ;;  %4095 = vmatprep.mubr.msk.f32.mxu1 %vm1288_vm0, %v1178_v35  ;;  %v1080_v54 = vld [vmem:[%s4821_s10 + $0x60] sm:$0xff]  ;;  %v1081_v56 = vld [vmem:[%s4821_s10 + $0x68] sm:$0xff]  ;;  %v1082_v58 = vld [vmem:[%s4821_s10 + $0x70] sm:$0xff] }
  0x97   : > { %v1188_v55 = vld [vmem:[%s4821_s10 + $0x3c0] sm:$0xff]  ;;  %v1189_v57 = vld [vmem:[%s4821_s10 + $0x3c8] sm:$0xff]  ;;  %v1190_v59 = vld [vmem:[%s4821_s10 + $0x3d0] sm:$0xff] }
  0x98   : > { %v1083_v60 = vld [vmem:[%s4821_s10 + $0x78] sm:$0xff]  ;;  %v1084_v62 = vld [vmem:[%s4821_s10 + $0x80] sm:$0xff]  ;;  %v1085_v0 = vld [vmem:[%s4821_s10 + $0x88] sm:$0xff] }
  0x99   : > { %3934 = vmatmul.mubr.msk.f32.gmra.mrb[2].mxu0 %vm1288_vm0, %v1071_v36  ;;  %4096 = vmatmul.mubr.msk.f32.gmra.mrb[2].mxu1 %vm1288_vm0, %v1179_v37  ;;  %v1191_v61 = vld [vmem:[%s4821_s10 + $0x3d8] sm:$0xff]  ;;  %v1192_v63 = vld [vmem:[%s4821_s10 + $0x3e0] sm:$0xff]  ;;  %v1193_v1 = vld [vmem:[%s4821_s10 + $0x3e8] sm:$0xff] }
  0x9a   : > { %3936 = vmatprep.mubr.msk.f32.mxu0 %vm1288_vm0, %v1072_v38  ;;  %4098 = vmatprep.mubr.msk.f32.mxu1 %vm1288_vm0, %v1180_v39  ;;  %v1086_v2 = vld [vmem:[%s4821_s10 + $0x90] sm:$0xff]  ;;  %v1087_v4 = vld [vmem:[%s4821_s10 + $0x98] sm:$0xff]  ;;  %v1088_v6 = vld [vmem:[%s4821_s10 + $0xa0] sm:$0xff] }
  0x9b   : > { %v1194_v3 = vld [vmem:[%s4821_s10 + $0x3f0] sm:$0xff]  ;;  %v1195_v5 = vld [vmem:[%s4821_s10 + $0x3f8] sm:$0xff]  ;;  %v1196_v7 = vld [vmem:[%s4821_s10 + $0x400] sm:$0xff] }
  0x9c   : > { %v1089_v8 = vld [vmem:[%s4821_s10 + $0xa8] sm:$0xff]  ;;  %v1090_v10 = vld [vmem:[%s4821_s10 + $0xb0] sm:$0xff]  ;;  %v1091_v12 = vld [vmem:[%s4821_s10 + $0xb8] sm:$0xff] }
  0x9d   : > { %3937 = vmatmul.mubr.msk.f32.gmra.mrb[4].mxu0 %vm1288_vm0, %v1073_v40  ;;  %4099 = vmatmul.mubr.msk.f32.gmra.mrb[4].mxu1 %vm1288_vm0, %v1181_v41  ;;  %v1197_v9 = vld [vmem:[%s4821_s10 + $0x408] sm:$0xff]  ;;  %v1198_v11 = vld [vmem:[%s4821_s10 + $0x410] sm:$0xff]  ;;  %v1199_v13 = vld [vmem:[%s4821_s10 + $0x418] sm:$0xff] }
  0x9e   : > { %3939 = vmatprep.mubr.msk.f32.mxu0 %vm1288_vm0, %v1074_v42  ;;  %4101 = vmatprep.mubr.msk.f32.mxu1 %vm1288_vm0, %v1182_v43  ;;  %v1092_v14 = vld [vmem:[%s4821_s10 + $0xc0] sm:$0xff]  ;;  %v1093_v16 = vld [vmem:[%s4821_s10 + $0xc8] sm:$0xff]  ;;  %v1094_v18 = vld [vmem:[%s4821_s10 + $0xd0] sm:$0xff] }
  0x9f   : > { %v1200_v15 = vld [vmem:[%s4821_s10 + $0x420] sm:$0xff]  ;;  %v1201_v17 = vld [vmem:[%s4821_s10 + $0x428] sm:$0xff]  ;;  %v1202_v19 = vld [vmem:[%s4821_s10 + $0x430] sm:$0xff] }
  0xa0   : > { %v1095_v20 = vld [vmem:[%s4821_s10 + $0xd8] sm:$0xff]  ;;  %v1096_v22 = vld [vmem:[%s4821_s10 + $0xe0] sm:$0xff]  ;;  %v1097_v24 = vld [vmem:[%s4821_s10 + $0xe8] sm:$0xff] }
  0xa1   : > { %3940 = vmatmul.mubr.msk.f32.gmra.mrb[6].mxu0 %vm1288_vm0, %v1075_v44  ;;  %4102 = vmatmul.mubr.msk.f32.gmra.mrb[6].mxu1 %vm1288_vm0, %v1183_v45  ;;  %v1203_v21 = vld [vmem:[%s4821_s10 + $0x438] sm:$0xff]  ;;  %v1204_v23 = vld [vmem:[%s4821_s10 + $0x440] sm:$0xff]  ;;  %v1205_v25 = vld [vmem:[%s4821_s10 + $0x448] sm:$0xff] }
  0xa2   : > { %3942 = vmatprep.mubr.msk.f32.mxu0 %vm1288_vm0, %v1076_v46  ;;  %4104 = vmatprep.mubr.msk.f32.mxu1 %vm1288_vm0, %v1184_v47  ;;  %v1098_v26 = vld [vmem:[%s4821_s10 + $0xf0] sm:$0xff]  ;;  %v1099_v28 = vld [vmem:[%s4821_s10 + $0xf8] sm:$0xff]  ;;  %v1100_v30 = vld [vmem:[%s4821_s10 + $0x100] sm:$0xff] }
  0xa3   : > { %v1206_v27 = vld [vmem:[%s4821_s10 + $0x450] sm:$0xff]  ;;  %v1207_v29 = vld [vmem:[%s4821_s10 + $0x458] sm:$0xff]  ;;  %v1208_v31 = vld [vmem:[%s4821_s10 + $0x460] sm:$0xff] }
  0xa4   : > { %v1101_v32 = vld [vmem:[%s4821_s10 + $0x108] sm:$0xff]  ;;  %v1102_v34 = vld [vmem:[%s4821_s10 + $0x110] sm:$0xff]  ;;  %v1103_v36 = vld [vmem:[%s4821_s10 + $0x118] sm:$0xff] }
  0xa5   : > { %3943 = vmatmul.mubr.msk.f32.gmra.mrb[8].mxu0 %vm1288_vm0, %v1077_v48  ;;  %4105 = vmatmul.mubr.msk.f32.gmra.mrb[8].mxu1 %vm1288_vm0, %v1185_v49  ;;  %v1209_v33 = vld [vmem:[%s4821_s10 + $0x468] sm:$0xff]  ;;  %v1210_v35 = vld [vmem:[%s4821_s10 + $0x470] sm:$0xff]  ;;  %v1211_v37 = vld [vmem:[%s4821_s10 + $0x478] sm:$0xff] }
  0xa6   : > { %3945 = vmatprep.mubr.msk.f32.mxu0 %vm1288_vm0, %v1078_v50  ;;  %4107 = vmatprep.mubr.msk.f32.mxu1 %vm1288_vm0, %v1186_v51  ;;  %v1104_v38 = vld [vmem:[%s4821_s10 + $0x120] sm:$0xff]  ;;  %v1105_v40 = vld [vmem:[%s4821_s10 + $0x128] sm:$0xff]  ;;  %v1106_v42 = vld [vmem:[%s4821_s10 + $0x130] sm:$0xff] }
  0xa7   : > { %v1212_v39 = vld [vmem:[%s4821_s10 + $0x480] sm:$0xff]  ;;  %v1213_v41 = vld [vmem:[%s4821_s10 + $0x488] sm:$0xff]  ;;  %v1214_v43 = vld [vmem:[%s4821_s10 + $0x490] sm:$0xff] }
  0xa8   : > { %v1107_v44 = vld [vmem:[%s4821_s10 + $0x138] sm:$0xff]  ;;  %v1108_v46 = vld [vmem:[%s4821_s10 + $0x140] sm:$0xff]  ;;  %v1109_v48 = vld [vmem:[%s4821_s10 + $0x148] sm:$0xff] }
  0xa9   : > { %3946 = vmatmul.mubr.msk.f32.gmra.mrb[10].mxu0 %vm1288_vm0, %v1079_v52  ;;  %4108 = vmatmul.mubr.msk.f32.gmra.mrb[10].mxu1 %vm1288_vm0, %v1187_v53  ;;  %v1215_v45 = vld [vmem:[%s4821_s10 + $0x498] sm:$0xff]  ;;  %v1216_v47 = vld [vmem:[%s4821_s10 + $0x4a0] sm:$0xff]  ;;  %v1217_v49 = vld [vmem:[%s4821_s10 + $0x4a8] sm:$0xff] }
  0xaa   : > { %3948 = vmatprep.mubr.msk.f32.mxu0 %vm1288_vm0, %v1080_v54  ;;  %4110 = vmatprep.mubr.msk.f32.mxu1 %vm1288_vm0, %v1188_v55  ;;  %v1110_v50 = vld [vmem:[%s4821_s10 + $0x150] sm:$0xff]  ;;  %v1111_v52 = vld [vmem:[%s4821_s10 + $0x158] sm:$0xff]  ;;  %v1112_v54 = vld [vmem:[%s4821_s10 + $0x160] sm:$0xff] }
  0xab   : > { %v1218_v51 = vld [vmem:[%s4821_s10 + $0x4b0] sm:$0xff]  ;;  %v1219_v53 = vld [vmem:[%s4821_s10 + $0x4b8] sm:$0xff]  ;;  %v1220_v55 = vld [vmem:[%s4821_s10 + $0x4c0] sm:$0xff] }
  0xad   : > { %3949 = vmatmul.mubr.msk.f32.gmra.mrb[12].mxu0 %vm1288_vm0, %v1081_v56  ;;  %4111 = vmatmul.mubr.msk.f32.gmra.mrb[12].mxu1 %vm1288_vm0, %v1189_v57  ;;  %v1113_v56 = vld [vmem:[%s4821_s10 + $0x168] sm:$0xff] }
  0xae   : > { %3951 = vmatprep.mubr.msk.f32.mxu0 %vm1288_vm0, %v1082_v58  ;;  %4113 = vmatprep.mubr.msk.f32.mxu1 %vm1288_vm0, %v1190_v59  ;;  %v1221_v57 = vld [vmem:[%s4821_s10 + $0x4c8] sm:$0xff]  ;;  %v1114_v58 = vld [vmem:[%s4821_s10 + $0x170] sm:$0xff] }
  0xaf   : > { %v1222_v59 = vld [vmem:[%s4821_s10 + $0x4d0] sm:$0xff] }
  0xb1   : > { %3952 = vmatmul.mubr.msk.f32.gmra.mrb[14].mxu0 %vm1288_vm0, %v1083_v60  ;;  %4114 = vmatmul.mubr.msk.f32.gmra.mrb[14].mxu1 %vm1288_vm0, %v1191_v61  ;;  %v1115_v60 = vld [vmem:[%s4821_s10 + $0x178] sm:$0xff] }
  0xb2   : > { %3954 = vmatprep.mubr.msk.f32.mxu0 %vm1288_vm0, %v1084_v62  ;;  %4116 = vmatprep.mubr.msk.f32.mxu1 %vm1288_vm0, %v1192_v63  ;;  %v1223_v61 = vld [vmem:[%s4821_s10 + $0x4d8] sm:$0xff]  ;;  %v1116_v62 = vld [vmem:[%s4821_s10 + $0x180] sm:$0xff] }
  0xb3   : > { %v1224_v63 = vld [vmem:[%s4821_s10 + $0x4e0] sm:$0xff] }
  0xb5   : > { %3955 = vmatmul.mubr.msk.f32.gmra.mrb[16].mxu0 %vm1288_vm0, %v1085_v0  ;;  %4117 = vmatmul.mubr.msk.f32.gmra.mrb[16].mxu1 %vm1288_vm0, %v1193_v1  ;;  %v1117_v0 = vld [vmem:[%s4821_s10 + $0x188] sm:$0xff] }
  0xb6   : > { %3957 = vmatprep.mubr.msk.f32.mxu0 %vm1288_vm0, %v1086_v2  ;;  %4119 = vmatprep.mubr.msk.f32.mxu1 %vm1288_vm0, %v1194_v3  ;;  %v1225_v1 = vld [vmem:[%s4821_s10 + $0x4e8] sm:$0xff]  ;;  %v1118_v2 = vld [vmem:[%s4821_s10 + $0x190] sm:$0xff] }
  0xb7   : > { %v1226_v3 = vld [vmem:[%s4821_s10 + $0x4f0] sm:$0xff] }
  0xb9   : > { %3958 = vmatmul.mubr.msk.f32.gmra.mrb[18].mxu0 %vm1288_vm0, %v1087_v4  ;;  %4120 = vmatmul.mubr.msk.f32.gmra.mrb[18].mxu1 %vm1288_vm0, %v1195_v5  ;;  %v1119_v4 = vld [vmem:[%s4821_s10 + $0x198] sm:$0xff] }
  0xba   : > { %3960 = vmatprep.mubr.msk.f32.mxu0 %vm1288_vm0, %v1088_v6  ;;  %4122 = vmatprep.mubr.msk.f32.mxu1 %vm1288_vm0, %v1196_v7  ;;  %v1227_v5 = vld [vmem:[%s4821_s10 + $0x4f8] sm:$0xff]  ;;  %v1120_v6 = vld [vmem:[%s4821_s10 + $0x1a0] sm:$0xff] }
  0xbb   : > { %v1228_v7 = vld [vmem:[%s4821_s10 + $0x500] sm:$0xff] }
  0xbd   : > { %3961 = vmatmul.mubr.msk.f32.gmra.mrb[20].mxu0 %vm1288_vm0, %v1089_v8  ;;  %4123 = vmatmul.mubr.msk.f32.gmra.mrb[20].mxu1 %vm1288_vm0, %v1197_v9  ;;  %v1121_v8 = vld [vmem:[%s4821_s10 + $0x1a8] sm:$0xff] }
  0xbe   : > { %3963 = vmatprep.mubr.msk.f32.mxu0 %vm1288_vm0, %v1090_v10  ;;  %4125 = vmatprep.mubr.msk.f32.mxu1 %vm1288_vm0, %v1198_v11  ;;  %v1229_v9 = vld [vmem:[%s4821_s10 + $0x508] sm:$0xff]  ;;  %v1122_v10 = vld [vmem:[%s4821_s10 + $0x1b0] sm:$0xff] }
  0xbf   : > { %v1230_v11 = vld [vmem:[%s4821_s10 + $0x510] sm:$0xff] }
  0xc1   : > { %3964 = vmatmul.mubr.msk.f32.gmra.mrb[22].mxu0 %vm1288_vm0, %v1091_v12  ;;  %4126 = vmatmul.mubr.msk.f32.gmra.mrb[22].mxu1 %vm1288_vm0, %v1199_v13  ;;  %v1123_v12 = vld [vmem:[%s4821_s10 + $0x1b8] sm:$0xff] }
  0xc2   : > { %3966 = vmatprep.mubr.msk.f32.mxu0 %vm1288_vm0, %v1092_v14  ;;  %4128 = vmatprep.mubr.msk.f32.mxu1 %vm1288_vm0, %v1200_v15  ;;  %v1231_v13 = vld [vmem:[%s4821_s10 + $0x518] sm:$0xff]  ;;  %v1124_v14 = vld [vmem:[%s4821_s10 + $0x1c0] sm:$0xff] }
  0xc3   : > { %v1232_v15 = vld [vmem:[%s4821_s10 + $0x520] sm:$0xff] }
  0xc5   : > { %3967 = vmatmul.mubr.msk.f32.gmra.mrb[24].mxu0 %vm1288_vm0, %v1093_v16  ;;  %4129 = vmatmul.mubr.msk.f32.gmra.mrb[24].mxu1 %vm1288_vm0, %v1201_v17  ;;  %v1125_v16 = vld [vmem:[%s4821_s10 + $0x1c8] sm:$0xff] }
  0xc6   : > { %3969 = vmatprep.mubr.msk.f32.mxu0 %vm1288_vm0, %v1094_v18  ;;  %4131 = vmatprep.mubr.msk.f32.mxu1 %vm1288_vm0, %v1202_v19  ;;  %v1233_v17 = vld [vmem:[%s4821_s10 + $0x528] sm:$0xff]  ;;  %v1126_v18 = vld [vmem:[%s4821_s10 + $0x1d0] sm:$0xff] }
  0xc7   : > { %v1234_v19 = vld [vmem:[%s4821_s10 + $0x530] sm:$0xff] }
  0xc9   : > { %3970 = vmatmul.mubr.msk.f32.gmra.mrb[26].mxu0 %vm1288_vm0, %v1095_v20  ;;  %4132 = vmatmul.mubr.msk.f32.gmra.mrb[26].mxu1 %vm1288_vm0, %v1203_v21  ;;  %v1127_v20 = vld [vmem:[%s4821_s10 + $0x1d8] sm:$0xff] }
  0xca   : > { %3972 = vmatprep.mubr.msk.f32.mxu0 %vm1288_vm0, %v1096_v22  ;;  %4134 = vmatprep.mubr.msk.f32.mxu1 %vm1288_vm0, %v1204_v23  ;;  %v1235_v21 = vld [vmem:[%s4821_s10 + $0x538] sm:$0xff]  ;;  %v1128_v22 = vld [vmem:[%s4821_s10 + $0x1e0] sm:$0xff] }
  0xcb   : > { %v1236_v23 = vld [vmem:[%s4821_s10 + $0x540] sm:$0xff] }
  0xcd   : > { %3973 = vmatmul.mubr.msk.f32.gmra.mrb[28].mxu0 %vm1288_vm0, %v1097_v24  ;;  %4135 = vmatmul.mubr.msk.f32.gmra.mrb[28].mxu1 %vm1288_vm0, %v1205_v25  ;;  %v1129_v24 = vld [vmem:[%s4821_s10 + $0x1e8] sm:$0xff] }
  0xce   : > { %3975 = vmatprep.mubr.msk.f32.mxu0 %vm1288_vm0, %v1098_v26  ;;  %4137 = vmatprep.mubr.msk.f32.mxu1 %vm1288_vm0, %v1206_v27  ;;  %v1237_v25 = vld [vmem:[%s4821_s10 + $0x548] sm:$0xff]  ;;  %v1130_v26 = vld [vmem:[%s4821_s10 + $0x1f0] sm:$0xff] }
  0xcf   : > { %v1238_v27 = vld [vmem:[%s4821_s10 + $0x550] sm:$0xff] }
  0xd1   : > { %3976 = vmatmul.mubr.msk.f32.gmra.mrb[30].mxu0 %vm1288_vm0, %v1099_v28  ;;  %4138 = vmatmul.mubr.msk.f32.gmra.mrb[30].mxu1 %vm1288_vm0, %v1207_v29  ;;  %v1131_v28 = vld [vmem:[%s4821_s10 + $0x1f8] sm:$0xff] }
  0xd2   : > { %3978 = vmatprep.mubr.msk.f32.mxu0 %vm1288_vm0, %v1100_v30  ;;  %4140 = vmatprep.mubr.msk.f32.mxu1 %vm1288_vm0, %v1208_v31  ;;  %v1239_v29 = vld [vmem:[%s4821_s10 + $0x558] sm:$0xff]  ;;  %v1132_v30 = vld [vmem:[%s4821_s10 + $0x200] sm:$0xff] }
  0xd3   : > { %v1240_v31 = vld [vmem:[%s4821_s10 + $0x560] sm:$0xff] }
  0xd5   : > { %3979 = vmatmul.mubr.msk.f32.gmra.mrb[32].mxu0 %vm1288_vm0, %v1101_v32  ;;  %4141 = vmatmul.mubr.msk.f32.gmra.mrb[32].mxu1 %vm1288_vm0, %v1209_v33  ;;  %v1133_v32 = vld [vmem:[%s4821_s10 + $0x208] sm:$0xff] }
  0xd6   : > { %3981 = vmatprep.mubr.msk.f32.mxu0 %vm1288_vm0, %v1102_v34  ;;  %4143 = vmatprep.mubr.msk.f32.mxu1 %vm1288_vm0, %v1210_v35  ;;  %v1241_v33 = vld [vmem:[%s4821_s10 + $0x568] sm:$0xff]  ;;  %v1134_v34 = vld [vmem:[%s4821_s10 + $0x210] sm:$0xff] }
  0xd7   : > { %v1242_v35 = vld [vmem:[%s4821_s10 + $0x570] sm:$0xff] }
  0xd9   : > { %3982 = vmatmul.mubr.msk.f32.gmra.mrb[34].mxu0 %vm1288_vm0, %v1103_v36  ;;  %4144 = vmatmul.mubr.msk.f32.gmra.mrb[34].mxu1 %vm1288_vm0, %v1211_v37  ;;  %v1135_v36 = vld [vmem:[%s4821_s10 + $0x218] sm:$0xff] }
  0xda   : > { %3984 = vmatprep.mubr.msk.f32.mxu0 %vm1288_vm0, %v1104_v38  ;;  %4146 = vmatprep.mubr.msk.f32.mxu1 %vm1288_vm0, %v1212_v39  ;;  %v1243_v37 = vld [vmem:[%s4821_s10 + $0x578] sm:$0xff]  ;;  %v1136_v38 = vld [vmem:[%s4821_s10 + $0x220] sm:$0xff] }
  0xdb   : > { %v1244_v39 = vld [vmem:[%s4821_s10 + $0x580] sm:$0xff] }
  0xdd   : > { %3985 = vmatmul.mubr.msk.f32.gmra.mrb[36].mxu0 %vm1288_vm0, %v1105_v40  ;;  %4147 = vmatmul.mubr.msk.f32.gmra.mrb[36].mxu1 %vm1288_vm0, %v1213_v41  ;;  %v1137_v40 = vld [vmem:[%s4821_s10 + $0x228] sm:$0xff] }
  0xde   : > { %3987 = vmatprep.mubr.msk.f32.mxu0 %vm1288_vm0, %v1106_v42  ;;  %4149 = vmatprep.mubr.msk.f32.mxu1 %vm1288_vm0, %v1214_v43  ;;  %v1245_v41 = vld [vmem:[%s4821_s10 + $0x588] sm:$0xff]  ;;  %v1138_v42 = vld [vmem:[%s4821_s10 + $0x230] sm:$0xff] }
  0xdf   : > { %v1246_v43 = vld [vmem:[%s4821_s10 + $0x590] sm:$0xff] }
  0xe1   : > { %3988 = vmatmul.mubr.msk.f32.gmra.mrb[38].mxu0 %vm1288_vm0, %v1107_v44  ;;  %4150 = vmatmul.mubr.msk.f32.gmra.mrb[38].mxu1 %vm1288_vm0, %v1215_v45  ;;  %v1139_v44 = vld [vmem:[%s4821_s10 + $0x238] sm:$0xff] }
  0xe2   : > { %3990 = vmatprep.mubr.msk.f32.mxu0 %vm1288_vm0, %v1108_v46  ;;  %4152 = vmatprep.mubr.msk.f32.mxu1 %vm1288_vm0, %v1216_v47  ;;  %v1247_v45 = vld [vmem:[%s4821_s10 + $0x598] sm:$0xff]  ;;  %v1140_v46 = vld [vmem:[%s4821_s10 + $0x240] sm:$0xff] }
  0xe3   : > { %v1248_v47 = vld [vmem:[%s4821_s10 + $0x5a0] sm:$0xff] }
  0xe5   : > { %3991 = vmatmul.mubr.msk.f32.gmra.mrb[40].mxu0 %vm1288_vm0, %v1109_v48  ;;  %4153 = vmatmul.mubr.msk.f32.gmra.mrb[40].mxu1 %vm1288_vm0, %v1217_v49  ;;  %v1141_v48 = vld [vmem:[%s4821_s10 + $0x248] sm:$0xff] }
  0xe6   : > { %3993 = vmatprep.mubr.msk.f32.mxu0 %vm1288_vm0, %v1110_v50  ;;  %4155 = vmatprep.mubr.msk.f32.mxu1 %vm1288_vm0, %v1218_v51  ;;  %v1249_v49 = vld [vmem:[%s4821_s10 + $0x5a8] sm:$0xff]  ;;  %v1142_v50 = vld [vmem:[%s4821_s10 + $0x250] sm:$0xff] }
  0xe7   : > { %v1250_v51 = vld [vmem:[%s4821_s10 + $0x5b0] sm:$0xff] }
  0xe9   : > { %3994 = vmatmul.mubr.msk.f32.gmra.mrb[42].mxu0 %vm1288_vm0, %v1111_v52  ;;  %4156 = vmatmul.mubr.msk.f32.gmra.mrb[42].mxu1 %vm1288_vm0, %v1219_v53  ;;  %v1143_v52 = vld [vmem:[%s4821_s10 + $0x258] sm:$0xff] }
  0xea   : > { %3996 = vmatprep.mubr.msk.f32.mxu0 %vm1288_vm0, %v1112_v54  ;;  %4158 = vmatprep.mubr.msk.f32.mxu1 %vm1288_vm0, %v1220_v55  ;;  %v1251_v53 = vld [vmem:[%s4821_s10 + $0x5b8] sm:$0xff]  ;;  %v1144_v54 = vld [vmem:[%s4821_s10 + $0x260] sm:$0xff] }
  0xeb   : > { %v1252_v55 = vld [vmem:[%s4821_s10 + $0x5c0] sm:$0xff] }
  0xed   : > { %3997 = vmatmul.mubr.msk.f32.gmra.mrb[44].mxu0 %vm1288_vm0, %v1113_v56  ;;  %4159 = vmatmul.mubr.msk.f32.gmra.mrb[44].mxu1 %vm1288_vm0, %v1221_v57  ;;  %v1145_v56 = vld [vmem:[%s4821_s10 + $0x268] sm:$0xff] }
  0xee   : > { %3999 = vmatprep.mubr.msk.f32.mxu0 %vm1288_vm0, %v1114_v58  ;;  %4161 = vmatprep.mubr.msk.f32.mxu1 %vm1288_vm0, %v1222_v59  ;;  %v1253_v57 = vld [vmem:[%s4821_s10 + $0x5c8] sm:$0xff]  ;;  %v1146_v58 = vld [vmem:[%s4821_s10 + $0x270] sm:$0xff] }
  0xef   : > { %v1254_v59 = vld [vmem:[%s4821_s10 + $0x5d0] sm:$0xff] }
  0xf1   : > { %4000 = vmatmul.mubr.msk.f32.gmra.mrb[46].mxu0 %vm1288_vm0, %v1115_v60  ;;  %4162 = vmatmul.mubr.msk.f32.gmra.mrb[46].mxu1 %vm1288_vm0, %v1223_v61  ;;  %v1147_v60 = vld [vmem:[%s4821_s10 + $0x278] sm:$0xff] }
  0xf2   : > { %4002 = vmatprep.mubr.msk.f32.mxu0 %vm1288_vm0, %v1116_v62  ;;  %4164 = vmatprep.mubr.msk.f32.mxu1 %vm1288_vm0, %v1224_v63  ;;  %v1255_v61 = vld [vmem:[%s4821_s10 + $0x5d8] sm:$0xff]  ;;  %v1148_v62 = vld [vmem:[%s4821_s10 + $0x280] sm:$0xff] }
  0xf3   : > { %v1256_v63 = vld [vmem:[%s4821_s10 + $0x5e0] sm:$0xff] }
  0xf5   : > { %4003 = vmatmul.mubr.msk.f32.gmra.mrb[48].mxu0 %vm1288_vm0, %v1117_v0  ;;  %4165 = vmatmul.mubr.msk.f32.gmra.mrb[48].mxu1 %vm1288_vm0, %v1225_v1  ;;  %v1149_v0 = vld [vmem:[%s4821_s10 + $0x288] sm:$0xff] }
  0xf6   : > { %4005 = vmatprep.mubr.msk.f32.mxu0 %vm1288_vm0, %v1118_v2  ;;  %4167 = vmatprep.mubr.msk.f32.mxu1 %vm1288_vm0, %v1226_v3  ;;  %v1257_v1 = vld [vmem:[%s4821_s10 + $0x5e8] sm:$0xff]  ;;  %v1150_v2 = vld [vmem:[%s4821_s10 + $0x290] sm:$0xff] }
  0xf7   : > { %v1258_v3 = vld [vmem:[%s4821_s10 + $0x5f0] sm:$0xff] }
  0xf9   : > { %4006 = vmatmul.mubr.msk.f32.gmra.mrb[50].mxu0 %vm1288_vm0, %v1119_v4  ;;  %4168 = vmatmul.mubr.msk.f32.gmra.mrb[50].mxu1 %vm1288_vm0, %v1227_v5  ;;  %v1151_v4 = vld [vmem:[%s4821_s10 + $0x298] sm:$0xff] }
  0xfa   : > { %4008 = vmatprep.mubr.msk.f32.mxu0 %vm1288_vm0, %v1120_v6  ;;  %4170 = vmatprep.mubr.msk.f32.mxu1 %vm1288_vm0, %v1228_v7  ;;  %v1259_v5 = vld [vmem:[%s4821_s10 + $0x5f8] sm:$0xff]  ;;  %v1152_v6 = vld [vmem:[%s4821_s10 + $0x2a0] sm:$0xff] }
  0xfb   : > { %v1260_v7 = vld [vmem:[%s4821_s10 + $0x600] sm:$0xff] }
  0xfd   : > { %4009 = vmatmul.mubr.msk.f32.gmra.mrb[52].mxu0 %vm1288_vm0, %v1121_v8  ;;  %4171 = vmatmul.mubr.msk.f32.gmra.mrb[52].mxu1 %vm1288_vm0, %v1229_v9  ;;  %v1153_v8 = vld [vmem:[%s4821_s10 + $0x2a8] sm:$0xff] }
  0xfe   : > { %4011 = vmatprep.mubr.msk.f32.mxu0 %vm1288_vm0, %v1122_v10  ;;  %4173 = vmatprep.mubr.msk.f32.mxu1 %vm1288_vm0, %v1230_v11  ;;  %v1261_v9 = vld [vmem:[%s4821_s10 + $0x608] sm:$0xff]  ;;  %v1154_v10 = vld [vmem:[%s4821_s10 + $0x2b0] sm:$0xff] }
  0xff   : > { %v1262_v11 = vld [vmem:[%s4821_s10 + $0x610] sm:$0xff] }
 0x101   : > { %4012 = vmatmul.mubr.msk.f32.gmra.mrb[54].mxu0 %vm1288_vm0, %v1123_v12  ;;  %4174 = vmatmul.mubr.msk.f32.gmra.mrb[54].mxu1 %vm1288_vm0, %v1231_v13  ;;  %v1155_v12 = vld [vmem:[%s4821_s10 + $0x2b8] sm:$0xff] }
 0x102   : > { %4014 = vmatprep.mubr.msk.f32.mxu0 %vm1288_vm0, %v1124_v14  ;;  %4176 = vmatprep.mubr.msk.f32.mxu1 %vm1288_vm0, %v1232_v15  ;;  %v1263_v13 = vld [vmem:[%s4821_s10 + $0x618] sm:$0xff]  ;;  %v1156_v14 = vld [vmem:[%s4821_s10 + $0x2c0] sm:$0xff] }
 0x103   : > { %v1264_v15 = vld [vmem:[%s4821_s10 + $0x620] sm:$0xff] }
 0x105   : > { %4015 = vmatmul.mubr.msk.f32.gmra.mrb[56].mxu0 %vm1288_vm0, %v1125_v16  ;;  %4177 = vmatmul.mubr.msk.f32.gmra.mrb[56].mxu1 %vm1288_vm0, %v1233_v17  ;;  %v1157_v16 = vld [vmem:[%s4821_s10 + $0x2c8] sm:$0xff] }
 0x106   : > { %4017 = vmatprep.mubr.msk.f32.mxu0 %vm1288_vm0, %v1126_v18  ;;  %4179 = vmatprep.mubr.msk.f32.mxu1 %vm1288_vm0, %v1234_v19  ;;  %v1265_v17 = vld [vmem:[%s4821_s10 + $0x628] sm:$0xff]  ;;  %v1158_v18 = vld [vmem:[%s4821_s10 + $0x2d0] sm:$0xff] }
 0x107   : > { %v1266_v19 = vld [vmem:[%s4821_s10 + $0x630] sm:$0xff] }
 0x109   : > { %4018 = vmatmul.mubr.msk.f32.gmra.mrb[58].mxu0 %vm1288_vm0, %v1127_v20  ;;  %4180 = vmatmul.mubr.msk.f32.gmra.mrb[58].mxu1 %vm1288_vm0, %v1235_v21  ;;  %v1159_v20 = vld [vmem:[%s4821_s10 + $0x2d8] sm:$0xff] }
 0x10a   : > { %4020 = vmatprep.mubr.msk.f32.mxu0 %vm1288_vm0, %v1128_v22  ;;  %4182 = vmatprep.mubr.msk.f32.mxu1 %vm1288_vm0, %v1236_v23  ;;  %v1267_v21 = vld [vmem:[%s4821_s10 + $0x638] sm:$0xff]  ;;  %v1160_v22 = vld [vmem:[%s4821_s10 + $0x2e0] sm:$0xff] }
 0x10b   : > { %v1268_v23 = vld [vmem:[%s4821_s10 + $0x640] sm:$0xff] }
 0x10d   : > { %4021 = vmatmul.mubr.msk.f32.gmra.mrb[60].mxu0 %vm1288_vm0, %v1129_v24  ;;  %4183 = vmatmul.mubr.msk.f32.gmra.mrb[60].mxu1 %vm1288_vm0, %v1237_v25  ;;  %v1161_v24 = vld [vmem:[%s4821_s10 + $0x2e8] sm:$0xff] }
 0x10e   : > { %4023 = vmatprep.mubr.msk.f32.mxu0 %vm1288_vm0, %v1130_v26  ;;  %4185 = vmatprep.mubr.msk.f32.mxu1 %vm1288_vm0, %v1238_v27  ;;  %v1269_v25 = vld [vmem:[%s4821_s10 + $0x648] sm:$0xff]  ;;  %v1162_v26 = vld [vmem:[%s4821_s10 + $0x2f0] sm:$0xff] }
 0x10f   : > { %v1270_v27 = vld [vmem:[%s4821_s10 + $0x650] sm:$0xff] }
 0x111   : > { %4024 = vmatmul.mubr.msk.f32.gmra.mrb[62].mxu0 %vm1288_vm0, %v1131_v28  ;;  %4186 = vmatmul.mubr.msk.f32.gmra.mrb[62].mxu1 %vm1288_vm0, %v1239_v29  ;;  %v1163_v28 = vld [vmem:[%s4821_s10 + $0x2f8] sm:$0xff] }
 0x112   : > { %4026 = vmatprep.mubr.msk.f32.mxu0 %vm1288_vm0, %v1132_v30  ;;  %4188 = vmatprep.mubr.msk.f32.mxu1 %vm1288_vm0, %v1240_v31  ;;  %v1271_v29 = vld [vmem:[%s4821_s10 + $0x658] sm:$0xff]  ;;  %v1164_v30 = vld [vmem:[%s4821_s10 + $0x300] sm:$0xff] }
 0x113   : > { %v1272_v31 = vld [vmem:[%s4821_s10 + $0x660] sm:$0xff] }
 0x115   : > { %4027 = vmatmul.mubr.msk.f32.gmra.mrb[64].mxu0 %vm1288_vm0, %v1133_v32  ;;  %4189 = vmatmul.mubr.msk.f32.gmra.mrb[64].mxu1 %vm1288_vm0, %v1241_v33  ;;  %v1165_v32 = vld [vmem:[%s4821_s10 + $0x308] sm:$0xff] }
 0x116   : > { %4029 = vmatprep.mubr.msk.f32.mxu0 %vm1288_vm0, %v1134_v34  ;;  %4191 = vmatprep.mubr.msk.f32.mxu1 %vm1288_vm0, %v1242_v35  ;;  %v1273_v33 = vld [vmem:[%s4821_s10 + $0x668] sm:$0xff]  ;;  %v1166_v34 = vld [vmem:[%s4821_s10 + $0x310] sm:$0xff] }
 0x117   : > { %v1274_v35 = vld [vmem:[%s4821_s10 + $0x670] sm:$0xff] }
 0x119   : > { %4030 = vmatmul.mubr.msk.f32.gmra.mrb[66].mxu0 %vm1288_vm0, %v1135_v36  ;;  %4192 = vmatmul.mubr.msk.f32.gmra.mrb[66].mxu1 %vm1288_vm0, %v1243_v37  ;;  %v1167_v36 = vld [vmem:[%s4821_s10 + $0x318] sm:$0xff] }
 0x11a   : > { %4032 = vmatprep.mubr.msk.f32.mxu0 %vm1288_vm0, %v1136_v38  ;;  %4194 = vmatprep.mubr.msk.f32.mxu1 %vm1288_vm0, %v1244_v39  ;;  %v1275_v37 = vld [vmem:[%s4821_s10 + $0x678] sm:$0xff]  ;;  %v1168_v38 = vld [vmem:[%s4821_s10 + $0x320] sm:$0xff] }
 0x11b   : > { %v1276_v39 = vld [vmem:[%s4821_s10 + $0x680] sm:$0xff] }
 0x11d   : > { %4033 = vmatmul.mubr.msk.f32.gmra.mrb[68].mxu0 %vm1288_vm0, %v1137_v40  ;;  %4195 = vmatmul.mubr.msk.f32.gmra.mrb[68].mxu1 %vm1288_vm0, %v1245_v41  ;;  %v1169_v40 = vld [vmem:[%s4821_s10 + $0x328] sm:$0xff] }
 0x11e   : > { %4035 = vmatprep.mubr.msk.f32.mxu0 %vm1288_vm0, %v1138_v42  ;;  %4197 = vmatprep.mubr.msk.f32.mxu1 %vm1288_vm0, %v1246_v43  ;;  %v1277_v41 = vld [vmem:[%s4821_s10 + $0x688] sm:$0xff]  ;;  %v1170_v42 = vld [vmem:[%s4821_s10 + $0x330] sm:$0xff] }
 0x11f   : > { %v1278_v43 = vld [vmem:[%s4821_s10 + $0x690] sm:$0xff] }
 0x121   : > { %4036 = vmatmul.mubr.msk.f32.gmra.mrb[70].mxu0 %vm1288_vm0, %v1139_v44  ;;  %4198 = vmatmul.mubr.msk.f32.gmra.mrb[70].mxu1 %vm1288_vm0, %v1247_v45  ;;  %v1171_v44 = vld [vmem:[%s4821_s10 + $0x338] sm:$0xff] }
 0x122   : > { %4038 = vmatprep.mubr.msk.f32.mxu0 %vm1288_vm0, %v1140_v46  ;;  %4200 = vmatprep.mubr.msk.f32.mxu1 %vm1288_vm0, %v1248_v47  ;;  %v1279_v45 = vld [vmem:[%s4821_s10 + $0x698] sm:$0xff]  ;;  %v1172_v46 = vld [vmem:[%s4821_s10 + $0x340] sm:$0xff] }
 0x123   : > { %v1280_v47 = vld [vmem:[%s4821_s10 + $0x6a0] sm:$0xff] }
 0x125   : > { %4039 = vmatmul.mubr.msk.f32.gmra.mrb[72].mxu0 %vm1288_vm0, %v1141_v48  ;;  %4201 = vmatmul.mubr.msk.f32.gmra.mrb[72].mxu1 %vm1288_vm0, %v1249_v49  ;;  %v1173_v48 = vld [vmem:[%s4821_s10 + $0x348] sm:$0xff] }
 0x126   : > { %4041 = vmatprep.mubr.msk.f32.mxu0 %vm1288_vm0, %v1142_v50  ;;  %4203 = vmatprep.mubr.msk.f32.mxu1 %vm1288_vm0, %v1250_v51  ;;  %v1281_v49 = vld [vmem:[%s4821_s10 + $0x6a8] sm:$0xff]  ;;  %v1174_v50 = vld [vmem:[%s4821_s10 + $0x350] sm:$0xff] }
 0x127   : > { %v1282_v51 = vld [vmem:[%s4821_s10 + $0x6b0] sm:$0xff] }
 0x129   : > { %4042 = vmatmul.mubr.msk.f32.gmra.mrb[74].mxu0 %vm1288_vm0, %v1143_v52  ;;  %4204 = vmatmul.mubr.msk.f32.gmra.mrb[74].mxu1 %vm1288_vm0, %v1251_v53  ;;  %v1175_v52 = vld [vmem:[%s4821_s10 + $0x358] sm:$0xff] }
 0x12a   : > { %4044 = vmatprep.mubr.msk.f32.mxu0 %vm1288_vm0, %v1144_v54  ;;  %4206 = vmatprep.mubr.msk.f32.mxu1 %vm1288_vm0, %v1252_v55  ;;  %v1283_v53 = vld [vmem:[%s4821_s10 + $0x6b8] sm:$0xff] }
 0x12d   : > { %4045 = vmatmul.mubr.msk.f32.gmra.mrb[76].mxu0 %vm1288_vm0, %v1145_v56  ;;  %4207 = vmatmul.mubr.msk.f32.gmra.mrb[76].mxu1 %vm1288_vm0, %v1253_v57 }
 0x12e   : > { %4047 = vmatprep.mubr.msk.f32.mxu0 %vm1288_vm0, %v1146_v58  ;;  %4209 = vmatprep.mubr.msk.f32.mxu1 %vm1288_vm0, %v1254_v59 }
 0x131   : > { %4048 = vmatmul.mubr.msk.f32.gmra.mrb[78].mxu0 %vm1288_vm0, %v1147_v60  ;;  %4210 = vmatmul.mubr.msk.f32.gmra.mrb[78].mxu1 %vm1288_vm0, %v1255_v61 }
 0x132   : > { %4050 = vmatprep.mubr.msk.f32.mxu0 %vm1288_vm0, %v1148_v62  ;;  %4212 = vmatprep.mubr.msk.f32.mxu1 %vm1288_vm0, %v1256_v63 }
 0x135   : > { %4051 = vmatmul.mubr.msk.f32.gmra.mrb[80].mxu0 %vm1288_vm0, %v1149_v0  ;;  %4213 = vmatmul.mubr.msk.f32.gmra.mrb[80].mxu1 %vm1288_vm0, %v1257_v1 }
 0x136   : > { %4053 = vmatprep.mubr.msk.f32.mxu0 %vm1288_vm0, %v1150_v2  ;;  %4215 = vmatprep.mubr.msk.f32.mxu1 %vm1288_vm0, %v1258_v3 }
 0x139   : > { %4054 = vmatmul.mubr.msk.f32.gmra.mrb[82].mxu0 %vm1288_vm0, %v1151_v4  ;;  %4216 = vmatmul.mubr.msk.f32.gmra.mrb[82].mxu1 %vm1288_vm0, %v1259_v5 }
 0x13a   : > { %4056 = vmatprep.mubr.msk.f32.mxu0 %vm1288_vm0, %v1152_v6  ;;  %4218 = vmatprep.mubr.msk.f32.mxu1 %vm1288_vm0, %v1260_v7 }
 0x13d   : > { %4057 = vmatmul.mubr.msk.f32.gmra.mrb[84].mxu0 %vm1288_vm0, %v1153_v8  ;;  %4219 = vmatmul.mubr.msk.f32.gmra.mrb[84].mxu1 %vm1288_vm0, %v1261_v9 }
 0x13e   : > { %4059 = vmatprep.mubr.msk.f32.mxu0 %vm1288_vm0, %v1154_v10  ;;  %4221 = vmatprep.mubr.msk.f32.mxu1 %vm1288_vm0, %v1262_v11 }
 0x141   : > { %4060 = vmatmul.mubr.msk.f32.gmra.mrb[86].mxu0 %vm1288_vm0, %v1155_v12  ;;  %4222 = vmatmul.mubr.msk.f32.gmra.mrb[86].mxu1 %vm1288_vm0, %v1263_v13 }
 0x142   : > { %4062 = vmatprep.mubr.msk.f32.mxu0 %vm1288_vm0, %v1156_v14  ;;  %4224 = vmatprep.mubr.msk.f32.mxu1 %vm1288_vm0, %v1264_v15 }
 0x145   : > { %4063 = vmatmul.mubr.msk.f32.gmra.mrb[88].mxu0 %vm1288_vm0, %v1157_v16  ;;  %4225 = vmatmul.mubr.msk.f32.gmra.mrb[88].mxu1 %vm1288_vm0, %v1265_v17 }
 0x146   : > { %4065 = vmatprep.mubr.msk.f32.mxu0 %vm1288_vm0, %v1158_v18  ;;  %4227 = vmatprep.mubr.msk.f32.mxu1 %vm1288_vm0, %v1266_v19 }
 0x149   : > { %4066 = vmatmul.mubr.msk.f32.gmra.mrb[90].mxu0 %vm1288_vm0, %v1159_v20  ;;  %4228 = vmatmul.mubr.msk.f32.gmra.mrb[90].mxu1 %vm1288_vm0, %v1267_v21 }
 0x14a   : > { %4068 = vmatprep.mubr.msk.f32.mxu0 %vm1288_vm0, %v1160_v22  ;;  %4230 = vmatprep.mubr.msk.f32.mxu1 %vm1288_vm0, %v1268_v23 }
 0x14d   : > { %4069 = vmatmul.mubr.msk.f32.gmra.mrb[92].mxu0 %vm1288_vm0, %v1161_v24  ;;  %4231 = vmatmul.mubr.msk.f32.gmra.mrb[92].mxu1 %vm1288_vm0, %v1269_v25 }
 0x14e   : > { %4071 = vmatprep.mubr.msk.f32.mxu0 %vm1288_vm0, %v1162_v26  ;;  %4233 = vmatprep.mubr.msk.f32.mxu1 %vm1288_vm0, %v1270_v27 }
 0x151   : > { %4072 = vmatmul.mubr.msk.f32.gmra.mrb[94].mxu0 %vm1288_vm0, %v1163_v28  ;;  %4234 = vmatmul.mubr.msk.f32.gmra.mrb[94].mxu1 %vm1288_vm0, %v1271_v29 }
 0x152   : > { %4074 = vmatprep.mubr.msk.f32.mxu0 %vm1288_vm0, %v1164_v30  ;;  %4236 = vmatprep.mubr.msk.f32.mxu1 %vm1288_vm0, %v1272_v31 }
 0x155   : > { %4075 = vmatmul.mubr.msk.f32.gmra.mrb[96].mxu0 %vm1288_vm0, %v1165_v32  ;;  %4237 = vmatmul.mubr.msk.f32.gmra.mrb[96].mxu1 %vm1288_vm0, %v1273_v33 }
 0x156   : > { %4077 = vmatprep.mubr.msk.f32.mxu0 %vm1288_vm0, %v1166_v34  ;;  %4239 = vmatprep.mubr.msk.f32.mxu1 %vm1288_vm0, %v1274_v35 }
 0x159   : > { %4078 = vmatmul.mubr.msk.f32.gmra.mrb[98].mxu0 %vm1288_vm0, %v1167_v36  ;;  %4240 = vmatmul.mubr.msk.f32.gmra.mrb[98].mxu1 %vm1288_vm0, %v1275_v37 }
 0x15a   : > { %4080 = vmatprep.mubr.msk.f32.mxu0 %vm1288_vm0, %v1168_v38  ;;  %4242 = vmatprep.mubr.msk.f32.mxu1 %vm1288_vm0, %v1276_v39 }
 0x15d   : > { %4081 = vmatmul.mubr.msk.f32.gmra.mrb[100].mxu0 %vm1288_vm0, %v1169_v40  ;;  %4243 = vmatmul.mubr.msk.f32.gmra.mrb[100].mxu1 %vm1288_vm0, %v1277_v41 }
 0x15e   : > { %4083 = vmatprep.mubr.msk.f32.mxu0 %vm1288_vm0, %v1170_v42  ;;  %4245 = vmatprep.mubr.msk.f32.mxu1 %vm1288_vm0, %v1278_v43 }
 0x161   : > { %4084 = vmatmul.mubr.msk.f32.gmra.mrb[102].mxu0 %vm1288_vm0, %v1171_v44  ;;  %4246 = vmatmul.mubr.msk.f32.gmra.mrb[102].mxu1 %vm1288_vm0, %v1279_v45 }
 0x162   : > { %4086 = vmatprep.mubr.msk.f32.mxu0 %vm1288_vm0, %v1172_v46  ;;  %4248 = vmatprep.mubr.msk.f32.mxu1 %vm1288_vm0, %v1280_v47 }
 0x165   : > { %4087 = vmatmul.mubr.msk.f32.gmra.mrb[104].mxu0 %vm1288_vm0, %v1173_v48  ;;  %4249 = vmatmul.mubr.msk.f32.gmra.mrb[104].mxu1 %vm1288_vm0, %v1281_v49 }
 0x166   : > { %4089 = vmatprep.mubr.msk.f32.mxu0 %vm1288_vm0, %v1174_v50  ;;  %4251 = vmatprep.mubr.msk.f32.mxu1 %vm1288_vm0, %v1282_v51 }
 0x168   : > { %v5253_v54 = vpop.f32.mrb[0].mxu0  ;;  %v5255_v55 = vpop.f32.mrb[0].mxu1 }
 0x169   : > { %v5257_v56 = vpop.f32.mrb[1].mxu0  ;;  %4090 = vmatmul.mubr.msk.f32.gmra.mrb[106].mxu0 %vm1288_vm0, %v1175_v52  ;;  %v5260_v57 = vpop.f32.mrb[1].mxu1  ;;  %4252 = vmatmul.mubr.msk.f32.gmra.mrb[106].mxu1 %vm1288_vm0, %v1283_v53 }
 0x16c   : > { %v5263_v58 = vpop.f32.mrb[2].mxu0  ;;  %v5265_v59 = vpop.f32.mrb[2].mxu1 }
 0x16d   : > { %v5267_v60 = vpop.f32.mrb[3].mxu0  ;;  %v5269_v61 = vpop.f32.mrb[3].mxu1 }
 0x170   : > { %v5271_v62 = vpop.f32.mrb[4].mxu0  ;;  %v5273_v63 = vpop.f32.mrb[4].mxu1 }
 0x171   : > { %v5275_v0 = vpop.f32.mrb[5].mxu0  ;;  %v5277_v1 = vpop.f32.mrb[5].mxu1 }
 0x174   : > { %v5279_v2 = vpop.f32.mrb[6].mxu0  ;;  %v5281_v3 = vpop.f32.mrb[6].mxu1 }
 0x175   : > { %v5283_v4 = vpop.f32.mrb[7].mxu0  ;;  %v5285_v5 = vpop.f32.mrb[7].mxu1 }
 0x178   : > { %v5287_v6 = vpop.f32.mrb[8].mxu0  ;;  %v5289_v7 = vpop.f32.mrb[8].mxu1 }
 0x179   : > { %v5291_v8 = vpop.f32.mrb[9].mxu0  ;;  %v5293_v9 = vpop.f32.mrb[9].mxu1 }
 0x17c   : > { %v5295_v10 = vpop.f32.mrb[10].mxu0  ;;  %v5297_v11 = vpop.f32.mrb[10].mxu1 }
 0x17d   : > { %v5299_v12 = vpop.f32.mrb[11].mxu0  ;;  %v5301_v13 = vpop.f32.mrb[11].mxu1 }
 0x180   : > { %v5303_v14 = vpop.f32.mrb[12].mxu0  ;;  %v5305_v15 = vpop.f32.mrb[12].mxu1 }
 0x181   : > { %v5307_v16 = vpop.f32.mrb[13].mxu0  ;;  %v5309_v17 = vpop.f32.mrb[13].mxu1 }
 0x184   : > { %v5311_v18 = vpop.f32.mrb[14].mxu0  ;;  %v5313_v19 = vpop.f32.mrb[14].mxu1 }
 0x185   : > { %v5315_v20 = vpop.f32.mrb[15].mxu0  ;;  %v5317_v21 = vpop.f32.mrb[15].mxu1 }
 0x188   : > { %v5319_v22 = vpop.f32.mrb[16].mxu0  ;;  %v5321_v23 = vpop.f32.mrb[16].mxu1 }
 0x189   : > { %v5323_v24 = vpop.f32.mrb[17].mxu0  ;;  %v5325_v25 = vpop.f32.mrb[17].mxu1 }
 0x18c   : > { %v5327_v26 = vpop.f32.mrb[18].mxu0  ;;  %v5329_v27 = vpop.f32.mrb[18].mxu1 }
 0x18d   : > { %v5331_v28 = vpop.f32.mrb[19].mxu0  ;;  %v5333_v29 = vpop.f32.mrb[19].mxu1 }
 0x190   : > { %v5335_v30 = vpop.f32.mrb[20].mxu0  ;;  %v5337_v31 = vpop.f32.mrb[20].mxu1 }
 0x191   : > { %v5339_v32 = vpop.f32.mrb[21].mxu0  ;;  %v5341_v33 = vpop.f32.mrb[21].mxu1 }
 0x194   : > { %v5343_v34 = vpop.f32.mrb[22].mxu0  ;;  %v5345_v35 = vpop.f32.mrb[22].mxu1 }
 0x195   : > { %v5347_v36 = vpop.f32.mrb[23].mxu0  ;;  %v5349_v37 = vpop.f32.mrb[23].mxu1 }
 0x198   : > { %v5351_v38 = vpop.f32.mrb[24].mxu0  ;;  %v5353_v39 = vpop.f32.mrb[24].mxu1 }
 0x199   : > { %5713 = vst [vmem:[#allocation3_spill] sm:$0xff] %v5353_v39  ;;  %v5355_v40 = vpop.f32.mrb[25].mxu0  ;;  %v5357_v41 = vpop.f32.mrb[25].mxu1 }
 0x19a   : > { %5714 = vst [vmem:[#allocation4_spill] sm:$0xff] %v5357_v41 }
 0x19c   : > { %v5359_v42 = vpop.f32.mrb[26].mxu0  ;;  %v5361_v43 = vpop.f32.mrb[26].mxu1 }
 0x19d   : > { %5715 = vst [vmem:[#allocation5_spill] sm:$0xff] %v5359_v42  ;;  %5716 = vst [vmem:[#allocation6_spill] sm:$0xff] %v5361_v43  ;;  %v5363_v44 = vpop.f32.mrb[27].mxu0  ;;  %v5365_v45 = vpop.f32.mrb[27].mxu1 }
 0x19e   : > { %5717 = vst [vmem:[#allocation7_spill] sm:$0xff] %v5363_v44  ;;  %5718 = vst [vmem:[#allocation8_spill] sm:$0xff] %v5365_v45 }
 0x1a0   : > { %v5367_v46 = vpop.f32.mrb[28].mxu0  ;;  %v5369_v47 = vpop.f32.mrb[28].mxu1 }
 0x1a1   : > { %5719 = vst [vmem:[#allocation9_spill] sm:$0xff] %v5367_v46  ;;  %5720 = vst [vmem:[#allocation10_spill] sm:$0xff] %v5369_v47  ;;  %v5371_v48 = vpop.f32.mrb[29].mxu0  ;;  %v5373_v49 = vpop.f32.mrb[29].mxu1 }
 0x1a2   : > { %5721 = vst [vmem:[#allocation11_spill] sm:$0xff] %v5371_v48  ;;  %5722 = vst [vmem:[#allocation12_spill] sm:$0xff] %v5373_v49 }
 0x1a4   : > { %v5375_v50 = vpop.f32.mrb[30].mxu0  ;;  %v5377_v51 = vpop.f32.mrb[30].mxu1 }
 0x1a5   : > { %5723 = vst [vmem:[#allocation13_spill] sm:$0xff] %v5375_v50  ;;  %5724 = vst [vmem:[#allocation14_spill] sm:$0xff] %v5377_v51  ;;  %v5379_v52 = vpop.f32.mrb[31].mxu0  ;;  %v5381_v53 = vpop.f32.mrb[31].mxu1 }
 0x1a6   : > { %5725 = vst [vmem:[#allocation15_spill] sm:$0xff] %v5379_v52  ;;  %5726 = vst [vmem:[#allocation16_spill] sm:$0xff] %v5381_v53 }
 0x1a8   : > { %v5383_v43 = vpop.f32.mrb[32].mxu0  ;;  %v5385_v44 = vpop.f32.mrb[32].mxu1 }
 0x1a9   : > { %5727 = vst [vmem:[#allocation17_spill] sm:$0xff] %v5383_v43  ;;  %5728 = vst [vmem:[#allocation18_spill] sm:$0xff] %v5385_v44  ;;  %v5387_v45 = vpop.f32.mrb[33].mxu0  ;;  %v5389_v46 = vpop.f32.mrb[33].mxu1 }
 0x1aa   : > { %5729 = vst [vmem:[#allocation19_spill] sm:$0xff] %v5387_v45  ;;  %5730 = vst [vmem:[#allocation20_spill] sm:$0xff] %v5389_v46 }
 0x1ac   : > { %v5391_v47 = vpop.f32.mrb[34].mxu0  ;;  %v5393_v48 = vpop.f32.mrb[34].mxu1 }
 0x1ad   : > { %5731 = vst [vmem:[#allocation21_spill] sm:$0xff] %v5391_v47  ;;  %5732 = vst [vmem:[#allocation22_spill] sm:$0xff] %v5393_v48  ;;  %v5395_v49 = vpop.f32.mrb[35].mxu0  ;;  %v5397_v50 = vpop.f32.mrb[35].mxu1 }
 0x1ae   : > { %5733 = vst [vmem:[#allocation23_spill] sm:$0xff] %v5395_v49  ;;  %5734 = vst [vmem:[#allocation24_spill] sm:$0xff] %v5397_v50 }
 0x1b0   : > { %v5399_v51 = vpop.f32.mrb[36].mxu0  ;;  %v5401_v52 = vpop.f32.mrb[36].mxu1 }
 0x1b1   : > { %5735 = vst [vmem:[#allocation25_spill] sm:$0xff] %v5399_v51  ;;  %5736 = vst [vmem:[#allocation26_spill] sm:$0xff] %v5401_v52  ;;  %v5403_v53 = vpop.f32.mrb[37].mxu0  ;;  %v5405_v43 = vpop.f32.mrb[37].mxu1 }
 0x1b2   : > { %5737 = vst [vmem:[#allocation27_spill] sm:$0xff] %v5403_v53  ;;  %5738 = vst [vmem:[#allocation28_spill] sm:$0xff] %v5405_v43 }
 0x1b4   : > { %v5407_v44 = vpop.f32.mrb[38].mxu0  ;;  %v5409_v45 = vpop.f32.mrb[38].mxu1 }
 0x1b5   : > { %5739 = vst [vmem:[#allocation29_spill] sm:$0xff] %v5407_v44  ;;  %5740 = vst [vmem:[#allocation30_spill] sm:$0xff] %v5409_v45  ;;  %v5411_v46 = vpop.f32.mrb[39].mxu0  ;;  %v5413_v47 = vpop.f32.mrb[39].mxu1 }
 0x1b6   : > { %5741 = vst [vmem:[#allocation31_spill] sm:$0xff] %v5411_v46  ;;  %5742 = vst [vmem:[#allocation32_spill] sm:$0xff] %v5413_v47 }
 0x1b8   : > { %v5415_v48 = vpop.f32.mrb[40].mxu0  ;;  %v5417_v49 = vpop.f32.mrb[40].mxu1 }
 0x1b9   : > { %5743 = vst [vmem:[#allocation33_spill] sm:$0xff] %v5415_v48  ;;  %5744 = vst [vmem:[#allocation34_spill] sm:$0xff] %v5417_v49  ;;  %v5419_v50 = vpop.f32.mrb[41].mxu0  ;;  %v5421_v51 = vpop.f32.mrb[41].mxu1 }
 0x1ba   : > { %5745 = vst [vmem:[#allocation35_spill] sm:$0xff] %v5419_v50  ;;  %5746 = vst [vmem:[#allocation36_spill] sm:$0xff] %v5421_v51 }
 0x1bc   : > { %v5423_v52 = vpop.f32.mrb[42].mxu0  ;;  %v5425_v53 = vpop.f32.mrb[42].mxu1 }
 0x1bd   : > { %5747 = vst [vmem:[#allocation37_spill] sm:$0xff] %v5423_v52  ;;  %5748 = vst [vmem:[#allocation38_spill] sm:$0xff] %v5425_v53  ;;  %v5427_v43 = vpop.f32.mrb[43].mxu0  ;;  %v5429_v44 = vpop.f32.mrb[43].mxu1 }
 0x1be   : > { %5749 = vst [vmem:[#allocation39_spill] sm:$0xff] %v5427_v43  ;;  %5750 = vst [vmem:[#allocation40_spill] sm:$0xff] %v5429_v44 }
 0x1c0   : > { %v5431_v45 = vpop.f32.mrb[44].mxu0  ;;  %v5433_v47 = vpop.f32.mrb[44].mxu1 }
 0x1c1   : > { %5751 = vst [vmem:[#allocation41_spill] sm:$0xff] %v5431_v45  ;;  %5752 = vst [vmem:[#allocation42_spill] sm:$0xff] %v5433_v47  ;;  %v5435_v48 = vpop.f32.mrb[45].mxu0  ;;  %v5437_v49 = vpop.f32.mrb[45].mxu1 }
 0x1c2   : > { %5753 = vst [vmem:[#allocation43_spill] sm:$0xff] %v5435_v48  ;;  %5754 = vst [vmem:[#allocation44_spill] sm:$0xff] %v5437_v49 }
 0x1c4   : > { %v5439_v50 = vpop.f32.mrb[46].mxu0  ;;  %v5441_v51 = vpop.f32.mrb[46].mxu1 }
 0x1c5   : > { %5755 = vst [vmem:[#allocation45_spill] sm:$0xff] %v5439_v50  ;;  %5756 = vst [vmem:[#allocation46_spill] sm:$0xff] %v5441_v51  ;;  %v5443_v52 = vpop.f32.mrb[47].mxu0  ;;  %v5445_v53 = vpop.f32.mrb[47].mxu1 }
 0x1c6   : > { %5757 = vst [vmem:[#allocation47_spill] sm:$0xff] %v5443_v52  ;;  %5758 = vst [vmem:[#allocation48_spill] sm:$0xff] %v5445_v53 }
 0x1c8   : > { %v5447_v43 = vpop.f32.mrb[48].mxu0  ;;  %v5449_v44 = vpop.f32.mrb[48].mxu1 }
 0x1c9   : > { %5759 = vst [vmem:[#allocation49_spill] sm:$0xff] %v5447_v43  ;;  %5760 = vst [vmem:[#allocation50_spill] sm:$0xff] %v5449_v44  ;;  %v5451_v45 = vpop.f32.mrb[49].mxu0  ;;  %v5453_v46 = vpop.f32.mrb[49].mxu1 }
 0x1ca   : > { %5761 = vst [vmem:[#allocation51_spill] sm:$0xff] %v5451_v45  ;;  %5762 = vst [vmem:[#allocation52_spill] sm:$0xff] %v5453_v46 }
 0x1cc   : > { %v5455_v47 = vpop.f32.mrb[50].mxu0  ;;  %v5457_v48 = vpop.f32.mrb[50].mxu1 }
 0x1cd   : > { %5763 = vst [vmem:[#allocation53_spill] sm:$0xff] %v5455_v47  ;;  %5764 = vst [vmem:[#allocation54_spill] sm:$0xff] %v5457_v48  ;;  %v5459_v49 = vpop.f32.mrb[51].mxu0  ;;  %v5461_v50 = vpop.f32.mrb[51].mxu1 }
 0x1ce   : > { %5765 = vst [vmem:[#allocation55_spill] sm:$0xff] %v5459_v49  ;;  %5766 = vst [vmem:[#allocation56_spill] sm:$0xff] %v5461_v50 }
 0x1d0   : > { %v5465_v51 = vpop.f32.mrb[52].mxu0  ;;  %v5467_v53 = vpop.f32.mrb[52].mxu1 }
 0x1d1   : > { %5767 = vst [vmem:[#allocation57_spill] sm:$0xff] %v5465_v51  ;;  %5768 = vst [vmem:[#allocation58_spill] sm:$0xff] %v5467_v53  ;;  %v5469_v43 = vpop.f32.mrb[53].mxu0  ;;  %v5471_v44 = vpop.f32.mrb[53].mxu1  ;;  %v5479_v53 = vld [vmem:[%s5711_s2] ss:$0 sm:$0xff] }
 0x1d2   : > { %5769 = vst [vmem:[#allocation59_spill] sm:$0xff] %v5469_v43  ;;  %5770 = vst [vmem:[#allocation60_spill] sm:$0xff] %v5471_v44 }
 0x1d4   : > { %v4013_v46 = vpop.f32.mrb[54].mxu0  ;;  %v4175_v45 = vpop.f32.mrb[54].mxu1 }
 0x1d5   : > { %v3085_v47 = vmax.f32 %v5253_v54, %v4013_v46  ;;  %v2273_v48 = vpop.f32.mrb[55].mxu0  ;;  %v2813_v49 = vpop.f32.mrb[55].mxu1 }
 0x1d6   : > { %v3082_v50 = vmax.f32 %v5257_v56, %v2273_v48 }
 0x1d7   : > { %v3086_v52 = vmax.f32 %v3085_v47, %v5255_v55 }
 0x1d8   : > { %v4016_v43 = vpop.f32.mrb[56].mxu0  ;;  %v3083_v44 = vmax.f32 %v3082_v50, %v5260_v57  ;;  %v4178_v51 = vpop.f32.mrb[56].mxu1 }
 0x1d9   : > { %v3087_v42 = vmax.f32 %v3086_v52, %v4175_v45  ;;  %v3091_v54 = vmax.f32 %v5263_v58, %v4016_v43  ;;  %v2283_v46 = vpop.f32.mrb[57].mxu0  ;;  %v2823_v41 = vpop.f32.mrb[57].mxu1 }
 0x1da   : > { %v3084_v39 = vmax.f32 %v3083_v44, %v2813_v49  ;;  %v3088_v56 = vmax.f32 %v5267_v60, %v2283_v46 }
 0x1db   : > { %v3252_v55 = vadd.f32 %v5479_v53, %v3087_v42  ;;  %v3092_v47 = vmax.f32 %v3091_v54, %v5265_v59 }
 0x1dc   : > { %v3251_v57 = vadd.f32 %v5479_v53, %v3084_v39  ;;  %v4019_v45 = vpop.f32.mrb[58].mxu0  ;;  %v3089_v58 = vmax.f32 %v3088_v56, %v5269_v61  ;;  %v4181_v43 = vpop.f32.mrb[58].mxu1 }
 0x1dd   : > { %v3306_v44 = vmax.f32 %v3252_v55, 0.0  ;;  %v3093_v48 = vmax.f32 %v3092_v47, %v4178_v51  ;;  %v3097_v60 = vmax.f32 %v5271_v62, %v4019_v45  ;;  %v2293_v42 = vpop.f32.mrb[59].mxu0  ;;  %v2833_v49 = vpop.f32.mrb[59].mxu1 }
 0x1de   : > { %v3305_v59 = vmax.f32 %v3251_v57, 0.0  ;;  %v3090_v50 = vmax.f32 %v3089_v58, %v2823_v41  ;;  %v3094_v52 = vmax.f32 %v5275_v0, %v2293_v42 }
 0x1df   : > { %3360 = vst [vmem:[%s5489_s20 + $0x8] sm:$0xff] %v3306_v44  ;;  %v3254_v54 = vadd.f32 %v5479_v53, %v3093_v48  ;;  %v3098_v39 = vmax.f32 %v3097_v60, %v5273_v63 }
 0x1e0   : > { %3359 = vst [vmem:[%s5489_s20] sm:$0xff] %v3305_v59  ;;  %v3253_v61 = vadd.f32 %v5479_v53, %v3090_v50  ;;  %v4022_v46 = vpop.f32.mrb[60].mxu0  ;;  %v3095_v51 = vmax.f32 %v3094_v52, %v5277_v1  ;;  %v4184_v62 = vpop.f32.mrb[60].mxu1 }
 0x1e1   : > { %v3308_v56 = vmax.f32 %v3254_v54, 0.0  ;;  %v3099_v55 = vmax.f32 %v3098_v39, %v4181_v43  ;;  %v3103_v41 = vmax.f32 %v5279_v2, %v4022_v46  ;;  %v2303_v47 = vpop.f32.mrb[61].mxu0  ;;  %v2843_v0 = vpop.f32.mrb[61].mxu1 }
 0x1e2   : > { %v3307_v57 = vmax.f32 %v3253_v61, 0.0  ;;  %v3096_v45 = vmax.f32 %v3095_v51, %v2833_v49  ;;  %v3100_v58 = vmax.f32 %v5283_v4, %v2303_v47 }
 0x1e3   : > { %3362 = vst [vmem:[%s5489_s20 + $0x18] sm:$0xff] %v3308_v56  ;;  %v3256_v63 = vadd.f32 %v5479_v53, %v3099_v55  ;;  %v3104_v44 = vmax.f32 %v3103_v41, %v5281_v3 }
 0x1e4   : > { %3361 = vst [vmem:[%s5489_s20 + $0x10] sm:$0xff] %v3307_v57  ;;  %v3255_v1 = vadd.f32 %v5479_v53, %v3096_v45  ;;  %v4025_v48 = vpop.f32.mrb[62].mxu0  ;;  %v3101_v43 = vmax.f32 %v3100_v58, %v5285_v5  ;;  %v4187_v2 = vpop.f32.mrb[62].mxu1 }
 0x1e5   : > { %v3310_v60 = vmax.f32 %v3256_v63, 0.0  ;;  %v3105_v42 = vmax.f32 %v3104_v44, %v4184_v62  ;;  %v3109_v49 = vmax.f32 %v5287_v6, %v4025_v48  ;;  %v2313_v59 = vpop.f32.mrb[63].mxu0  ;;  %v2853_v4 = vpop.f32.mrb[63].mxu1 }
 0x1e6   : > { %v3309_v50 = vmax.f32 %v3255_v1, 0.0  ;;  %v3102_v52 = vmax.f32 %v3101_v43, %v2843_v0  ;;  %v3106_v54 = vmax.f32 %v5291_v8, %v2313_v59 }
 0x1e7   : > { %3364 = vst [vmem:[%s5489_s20 + $0x28] sm:$0xff] %v3310_v60  ;;  %v3258_v3 = vadd.f32 %v5479_v53, %v3105_v42  ;;  %v3110_v39 = vmax.f32 %v3109_v49, %v5289_v7 }
 0x1e8   : > { %3363 = vst [vmem:[%s5489_s20 + $0x20] sm:$0xff] %v3309_v50  ;;  %v3257_v5 = vadd.f32 %v5479_v53, %v3102_v52  ;;  %v4028_v61 = vpop.f32.mrb[64].mxu0  ;;  %v3107_v46 = vmax.f32 %v3106_v54, %v5293_v9  ;;  %v4190_v6 = vpop.f32.mrb[64].mxu1 }
 0x1e9   : > { %v3312_v51 = vmax.f32 %v3258_v3, 0.0  ;;  %v3111_v62 = vmax.f32 %v3110_v39, %v4187_v2  ;;  %v3115_v56 = vmax.f32 %v5295_v10, %v4028_v61  ;;  %v2323_v55 = vpop.f32.mrb[65].mxu0  ;;  %v2863_v8 = vpop.f32.mrb[65].mxu1 }
 0x1ea   : > { %v3311_v41 = vmax.f32 %v3257_v5, 0.0  ;;  %v3108_v47 = vmax.f32 %v3107_v46, %v2853_v4  ;;  %v3112_v0 = vmax.f32 %v5299_v12, %v2323_v55 }
 0x1eb   : > { %3366 = vst [vmem:[%s5489_s20 + $0x38] sm:$0xff] %v3312_v51  ;;  %v3260_v7 = vadd.f32 %v5479_v53, %v3111_v62  ;;  %v3116_v57 = vmax.f32 %v3115_v56, %v5297_v11 }
 0x1ec   : > { %3365 = vst [vmem:[%s5489_s20 + $0x30] sm:$0xff] %v3311_v41  ;;  %v3259_v9 = vadd.f32 %v5479_v53, %v3108_v47  ;;  %v4031_v45 = vpop.f32.mrb[66].mxu0  ;;  %v3113_v58 = vmax.f32 %v3112_v0, %v5301_v13  ;;  %v4193_v10 = vpop.f32.mrb[66].mxu1 }
 0x1ed   : > { %v3314_v63 = vmax.f32 %v3260_v7, 0.0  ;;  %v3117_v44 = vmax.f32 %v3116_v57, %v4190_v6  ;;  %v3121_v1 = vmax.f32 %v5303_v14, %v4031_v45  ;;  %v2333_v48 = vpop.f32.mrb[67].mxu0  ;;  %v2873_v12 = vpop.f32.mrb[67].mxu1 }
 0x1ee   : > { %v3313_v43 = vmax.f32 %v3259_v9, 0.0  ;;  %v3114_v2 = vmax.f32 %v3113_v58, %v2863_v8  ;;  %v3118_v60 = vmax.f32 %v5307_v16, %v2333_v48 }
 0x1ef   : > { %3368 = vst [vmem:[%s5489_s20 + $0x48] sm:$0xff] %v3314_v63  ;;  %v3262_v11 = vadd.f32 %v5479_v53, %v3117_v44  ;;  %v3122_v42 = vmax.f32 %v3121_v1, %v5305_v15 }
 0x1f0   : > { %3367 = vst [vmem:[%s5489_s20 + $0x40] sm:$0xff] %v3313_v43  ;;  %v3261_v13 = vadd.f32 %v5479_v53, %v3114_v2  ;;  %v4034_v49 = vpop.f32.mrb[68].mxu0  ;;  %v3119_v59 = vmax.f32 %v3118_v60, %v5309_v17  ;;  %v4196_v14 = vpop.f32.mrb[68].mxu1 }
 0x1f1   : > { %v3316_v4 = vmax.f32 %v3262_v11, 0.0  ;;  %v3123_v50 = vmax.f32 %v3122_v42, %v4193_v10  ;;  %v3127_v52 = vmax.f32 %v5311_v18, %v4034_v49  ;;  %v2343_v54 = vpop.f32.mrb[69].mxu0  ;;  %v2883_v16 = vpop.f32.mrb[69].mxu1 }
 0x1f2   : > { %v3315_v3 = vmax.f32 %v3261_v13, 0.0  ;;  %v3120_v39 = vmax.f32 %v3119_v59, %v2873_v12  ;;  %v3124_v5 = vmax.f32 %v5315_v20, %v2343_v54 }
 0x1f3   : > { %3370 = vst [vmem:[%s5489_s20 + $0x58] sm:$0xff] %v3316_v4  ;;  %v3264_v15 = vadd.f32 %v5479_v53, %v3123_v50  ;;  %v3128_v61 = vmax.f32 %v3127_v52, %v5313_v19 }
 0x1f4   : > { %3369 = vst [vmem:[%s5489_s20 + $0x50] sm:$0xff] %v3315_v3  ;;  %v3263_v17 = vadd.f32 %v5479_v53, %v3120_v39  ;;  %v4037_v46 = vpop.f32.mrb[70].mxu0  ;;  %v3125_v6 = vmax.f32 %v3124_v5, %v5317_v21  ;;  %v4199_v18 = vpop.f32.mrb[70].mxu1 }
 0x1f5   : > { %v3318_v51 = vmax.f32 %v3264_v15, 0.0  ;;  %v3129_v62 = vmax.f32 %v3128_v61, %v4196_v14  ;;  %v3133_v56 = vmax.f32 %v5319_v22, %v4037_v46  ;;  %v2353_v55 = vpop.f32.mrb[71].mxu0  ;;  %v2893_v20 = vpop.f32.mrb[71].mxu1 }
 0x1f6   : > { %v3317_v8 = vmax.f32 %v3263_v17, 0.0  ;;  %v3126_v41 = vmax.f32 %v3125_v6, %v2883_v16  ;;  %v3130_v47 = vmax.f32 %v5323_v24, %v2353_v55 }
 0x1f7   : > { %3372 = vst [vmem:[%s5489_s20 + $0x68] sm:$0xff] %v3318_v51  ;;  %v3266_v19 = vadd.f32 %v5479_v53, %v3129_v62  ;;  %v3134_v0 = vmax.f32 %v3133_v56, %v5321_v23 }
 0x1f8   : > { %3371 = vst [vmem:[%s5489_s20 + $0x60] sm:$0xff] %v3317_v8  ;;  %v3265_v21 = vadd.f32 %v5479_v53, %v3126_v41  ;;  %v4040_v7 = vpop.f32.mrb[72].mxu0  ;;  %v3131_v57 = vmax.f32 %v3130_v47, %v5325_v25  ;;  %v4202_v22 = vpop.f32.mrb[72].mxu1  ;;  %v5771_v8 = vld [vmem:[#allocation3_spill] sm:$0xff] }
 0x1f9   : > { %v3320_v9 = vmax.f32 %v3266_v19, 0.0  ;;  %v3135_v45 = vmax.f32 %v3134_v0, %v4199_v18  ;;  %v3139_v58 = vmax.f32 %v5327_v26, %v4040_v7  ;;  %v2363_v10 = vpop.f32.mrb[73].mxu0  ;;  %v2903_v24 = vpop.f32.mrb[73].mxu1  ;;  %v5772_v19 = vld [vmem:[#allocation4_spill] sm:$0xff] }
 0x1fa   : > { %v3319_v63 = vmax.f32 %v3265_v21, 0.0  ;;  %v3132_v44 = vmax.f32 %v3131_v57, %v2893_v20  ;;  %v3136_v1 = vmax.f32 %v5331_v28, %v2363_v10  ;;  %v5773_v57 = vld [vmem:[#allocation5_spill] sm:$0xff]  ;;  %v5774_v10 = vld [vmem:[#allocation7_spill] sm:$0xff] }
 0x1fb   : > { %3374 = vst [vmem:[%s5489_s20 + $0x78] sm:$0xff] %v3320_v9  ;;  %v3268_v23 = vadd.f32 %v5479_v53, %v3135_v45  ;;  %v3140_v48 = vmax.f32 %v3139_v58, %v5329_v27 }
 0x1fc   : > { %3373 = vst [vmem:[%s5489_s20 + $0x70] sm:$0xff] %v3319_v63  ;;  %v3267_v25 = vadd.f32 %v5479_v53, %v3132_v44  ;;  %v4043_v12 = vpop.f32.mrb[74].mxu0  ;;  %v3137_v43 = vmax.f32 %v3136_v1, %v5333_v29  ;;  %v4205_v26 = vpop.f32.mrb[74].mxu1  ;;  %v5775_v44 = vld [vmem:[#allocation6_spill] sm:$0xff] }
 0x1fd   : > { %v3322_v2 = vmax.f32 %v3268_v23, 0.0  ;;  %v3141_v60 = vmax.f32 %v3140_v48, %v4202_v22  ;;  %v3145_v11 = vmax.f32 %v5335_v30, %v4043_v12  ;;  %v2373_v42 = vpop.f32.mrb[75].mxu0  ;;  %v2913_v28 = vpop.f32.mrb[75].mxu1 }
 0x1fe   : > { %v3321_v13 = vmax.f32 %v3267_v25, 0.0  ;;  %v3138_v49 = vmax.f32 %v3137_v43, %v2903_v24  ;;  %v3142_v59 = vmax.f32 %v5339_v32, %v2373_v42  ;;  %v5776_v25 = vld [vmem:[#allocation8_spill] sm:$0xff] }
 0x1ff   : > { %3376 = vst [vmem:[%s5489_s20 + $0x88] sm:$0xff] %v3322_v2  ;;  %v3270_v27 = vadd.f32 %v5479_v53, %v3141_v60  ;;  %v3146_v14 = vmax.f32 %v3145_v11, %v5337_v31  ;;  %v5777_v60 = vld [vmem:[#allocation9_spill] sm:$0xff] }
 0x200   : > { %3375 = vst [vmem:[%s5489_s20 + $0x80] sm:$0xff] %v3321_v13  ;;  %v3269_v29 = vadd.f32 %v5479_v53, %v3138_v49  ;;  %v4046_v4 = vpop.f32.mrb[76].mxu0  ;;  %v3143_v50 = vmax.f32 %v3142_v59, %v5341_v33  ;;  %v4208_v30 = vpop.f32.mrb[76].mxu1  ;;  %v5778_v59 = vld [vmem:[#allocation11_spill] sm:$0xff] }
 0x201   : > { %v3324_v52 = vmax.f32 %v3270_v27, 0.0  ;;  %v3147_v54 = vmax.f32 %v3146_v14, %v4205_v26  ;;  %v3151_v16 = vmax.f32 %v5343_v34, %v4046_v4  ;;  %v2383_v3 = vpop.f32.mrb[77].mxu0  ;;  %v2923_v32 = vpop.f32.mrb[77].mxu1 }
 0x202   : > { %v3323_v39 = vmax.f32 %v3269_v29, 0.0  ;;  %v3144_v5 = vmax.f32 %v3143_v50, %v2913_v28  ;;  %v3148_v15 = vmax.f32 %v5347_v36, %v2383_v3  ;;  %v5779_v29 = vld [vmem:[#allocation10_spill] sm:$0xff] }
 0x203   : > { %3378 = vst [vmem:[%s5489_s20 + $0x98] sm:$0xff] %v3324_v52  ;;  %v3272_v31 = vadd.f32 %v5479_v53, %v3147_v54  ;;  %v3152_v61 = vmax.f32 %v3151_v16, %v5345_v35  ;;  %v5780_v52 = vld [vmem:[#allocation12_spill] sm:$0xff] }
 0x204   : > { %3377 = vst [vmem:[%s5489_s20 + $0x90] sm:$0xff] %v3323_v39  ;;  %v3271_v33 = vadd.f32 %v5479_v53, %v3144_v5  ;;  %v4049_v17 = vpop.f32.mrb[78].mxu0  ;;  %v3149_v46 = vmax.f32 %v3148_v15, %v5349_v37  ;;  %v4211_v34 = vpop.f32.mrb[78].mxu1  ;;  %v5781_v39 = vld [vmem:[#allocation13_spill] sm:$0xff] }
 0x205   : > { %v3326_v6 = vmax.f32 %v3272_v31, 0.0  ;;  %v3153_v18 = vmax.f32 %v3152_v61, %v4208_v30  ;;  %v3157_v51 = vmax.f32 %v5351_v38, %v4049_v17  ;;  %v2393_v62 = vpop.f32.mrb[79].mxu0  ;;  %v2933_v36 = vpop.f32.mrb[79].mxu1  ;;  %v5782_v17 = vld [vmem:[#allocation15_spill] sm:$0xff] }
 0x206   : > { %v3325_v56 = vmax.f32 %v3271_v33, 0.0  ;;  %v3150_v55 = vmax.f32 %v3149_v46, %v2923_v32  ;;  %v3154_v20 = vmax.f32 %v5355_v40, %v2393_v62 }
 0x207   : > { %3380 = vst [vmem:[%s5489_s20 + $0xa8] sm:$0xff] %v3326_v6  ;;  %v3274_v35 = vadd.f32 %v5479_v53, %v3153_v18  ;;  %v3158_v41 = vmax.f32 %v3157_v51, %v5771_v8  ;;  %v5783_v6 = vld [vmem:[#allocation14_spill] sm:$0xff]  ;;  %v5785_v8 = vld [vmem:[#allocation17_spill] sm:$0xff] }
 0x208   : > { %3379 = vst [vmem:[%s5489_s20 + $0xa0] sm:$0xff] %v3325_v56  ;;  %v3273_v37 = vadd.f32 %v5479_v53, %v3150_v55  ;;  %v4052_v47 = vpop.f32.mrb[80].mxu0  ;;  %v3155_v0 = vmax.f32 %v3154_v20, %v5772_v19  ;;  %v4214_v38 = vpop.f32.mrb[80].mxu1 }
 0x209   : > { %v3328_v21 = vmax.f32 %v3274_v35, 0.0  ;;  %v3159_v7 = vmax.f32 %v3158_v41, %v4211_v34  ;;  %v3163_v22 = vmax.f32 %v5773_v57, %v4052_v47  ;;  %v2403_v9 = vpop.f32.mrb[81].mxu0  ;;  %v2943_v40 = vpop.f32.mrb[81].mxu1  ;;  %v5787_v57 = vld [vmem:[#allocation18_spill] sm:$0xff] }
 0x20a   : > { %v3327_v45 = vmax.f32 %v3273_v37, 0.0  ;;  %v3156_v58 = vmax.f32 %v3155_v0, %v2933_v36  ;;  %v3160_v24 = vmax.f32 %v5774_v10, %v2403_v9  ;;  %v5784_v36 = vld [vmem:[#allocation16_spill] sm:$0xff] }
 0x20b   : > { %3382 = vst [vmem:[%s5489_s20 + $0xb8] sm:$0xff] %v3328_v21  ;;  %v3276_v63 = vadd.f32 %v5479_v53, %v3159_v7  ;;  %v3164_v1 = vmax.f32 %v3163_v22, %v5775_v44  ;;  %v5789_v44 = vld [vmem:[#allocation21_spill] sm:$0xff] }
 0x20c   : > { %3381 = vst [vmem:[%s5489_s20 + $0xb0] sm:$0xff] %v3327_v45  ;;  %v3275_v23 = vadd.f32 %v5479_v53, %v3156_v58  ;;  %v4055_v48 = vpop.f32.mrb[82].mxu0  ;;  %v3161_v12 = vmax.f32 %v3160_v24, %v5776_v25  ;;  %v4217_v43 = vpop.f32.mrb[82].mxu1  ;;  %v5788_v45 = vld [vmem:[#allocation20_spill] sm:$0xff] }
 0x20d   : > { %v3330_v26 = vmax.f32 %v3276_v63, 0.0  ;;  %v3165_v2 = vmax.f32 %v3164_v1, %v4214_v38  ;;  %v3169_v11 = vmax.f32 %v5777_v60, %v4055_v48  ;;  %v2413_v42 = vpop.f32.mrb[83].mxu0  ;;  %v2953_v28 = vpop.f32.mrb[83].mxu1  ;;  %v5786_v38 = vld [vmem:[#allocation19_spill] sm:$0xff]  ;;  %v5791_v60 = vld [vmem:[#allocation22_spill] sm:$0xff] }
 0x20e   : > { %v3329_v13 = vmax.f32 %v3275_v23, 0.0  ;;  %v3162_v49 = vmax.f32 %v3161_v12, %v2943_v40  ;;  %v3166_v27 = vmax.f32 %v5778_v59, %v2413_v42 }
 0x20f   : > { %3384 = vst [vmem:[%s5489_s20 + $0xc8] sm:$0xff] %v3330_v26  ;;  %v3278_v14 = vadd.f32 %v5479_v53, %v3165_v2  ;;  %v3170_v4 = vmax.f32 %v3169_v11, %v5779_v29  ;;  %v5793_v29 = vld [vmem:[#allocation25_spill] sm:$0xff] }
 0x210   : > { %3383 = vst [vmem:[%s5489_s20 + $0xc0] sm:$0xff] %v3329_v13  ;;  %v3277_v50 = vadd.f32 %v5479_v53, %v3162_v49  ;;  %v4058_v30 = vpop.f32.mrb[84].mxu0  ;;  %v3167_v54 = vmax.f32 %v3166_v27, %v5780_v52  ;;  %v4220_v16 = vpop.f32.mrb[84].mxu1  ;;  %v5792_v13 = vld [vmem:[#allocation24_spill] sm:$0xff] }
 0x211   : > { %v3332_v3 = vmax.f32 %v3278_v14, 0.0  ;;  %v3171_v32 = vmax.f32 %v3170_v4, %v4217_v43  ;;  %v3175_v5 = vmax.f32 %v5781_v39, %v4058_v30  ;;  %v2423_v15 = vpop.f32.mrb[85].mxu0  ;;  %v2963_v31 = vpop.f32.mrb[85].mxu1  ;;  %v5790_v43 = vld [vmem:[#allocation23_spill] sm:$0xff]  ;;  %v5795_v39 = vld [vmem:[#allocation26_spill] sm:$0xff] }
 0x212   : > { %v3331_v61 = vmax.f32 %v3277_v50, 0.0  ;;  %v3168_v33 = vmax.f32 %v3167_v54, %v2953_v28  ;;  %v3172_v46 = vmax.f32 %v5782_v17, %v2423_v15 }
 0x213   : > { %3386 = vst [vmem:[%s5489_s20 + $0xd8] sm:$0xff] %v3332_v3  ;;  %v3280_v34 = vadd.f32 %v5479_v53, %v3171_v32  ;;  %v3176_v18 = vmax.f32 %v3175_v5, %v5783_v6  ;;  %v5797_v6 = vld [vmem:[#allocation29_spill] sm:$0xff] }
 0x214   : > { %3385 = vst [vmem:[%s5489_s20 + $0xd0] sm:$0xff] %v3331_v61  ;;  %v3279_v51 = vadd.f32 %v5479_v53, %v3168_v33  ;;  %v4061_v62 = vpop.f32.mrb[86].mxu0  ;;  %v3173_v56 = vmax.f32 %v3172_v46, %v5784_v36  ;;  %v4223_v55 = vpop.f32.mrb[86].mxu1  ;;  %v5796_v61 = vld [vmem:[#allocation28_spill] sm:$0xff] }
 0x215   : > { %v3334_v20 = vmax.f32 %v3280_v34, 0.0  ;;  %v3177_v35 = vmax.f32 %v3176_v18, %v4220_v16  ;;  %v3181_v41 = vmax.f32 %v5785_v8, %v4061_v62  ;;  %v2433_v37 = vpop.f32.mrb[87].mxu0  ;;  %v2973_v47 = vpop.f32.mrb[87].mxu1  ;;  %v5794_v16 = vld [vmem:[#allocation27_spill] sm:$0xff]  ;;  %v5799_v8 = vld [vmem:[#allocation30_spill] sm:$0xff] }
 0x216   : > { %v3333_v19 = vmax.f32 %v3279_v51, 0.0  ;;  %v3174_v0 = vmax.f32 %v3173_v56, %v2963_v31  ;;  %v3178_v21 = vmax.f32 %v5786_v38, %v2433_v37 }
 0x217   : > { %3388 = vst [vmem:[%s5489_s20 + $0xe8] sm:$0xff] %v3334_v20  ;;  %v3282_v7 = vadd.f32 %v5479_v53, %v3177_v35  ;;  %v3182_v22 = vmax.f32 %v3181_v41, %v5787_v57  ;;  %v5801_v57 = vld [vmem:[#allocation33_spill] sm:$0xff] }
 0x218   : > { %3387 = vst [vmem:[%s5489_s20 + $0xe0] sm:$0xff] %v3333_v19  ;;  %v3281_v9 = vadd.f32 %v5479_v53, %v3174_v0  ;;  %v4064_v40 = vpop.f32.mrb[88].mxu0  ;;  %v3179_v58 = vmax.f32 %v3178_v21, %v5788_v45  ;;  %v4226_v10 = vpop.f32.mrb[88].mxu1  ;;  %v5800_v19 = vld [vmem:[#allocation32_spill] sm:$0xff] }
 0x219   : > { %v3336_v24 = vmax.f32 %v3282_v7, 0.0  ;;  %v3183_v63 = vmax.f32 %v3182_v22, %v4223_v55  ;;  %v3187_v1 = vmax.f32 %v5789_v44, %v4064_v40  ;;  %v2443_v23 = vpop.f32.mrb[89].mxu0  ;;  %v2983_v48 = vpop.f32.mrb[89].mxu1  ;;  %v5798_v55 = vld [vmem:[#allocation31_spill] sm:$0xff]  ;;  %v5803_v44 = vld [vmem:[#allocation34_spill] sm:$0xff] }
 0x21a   : > { %v3335_v25 = vmax.f32 %v3281_v9, 0.0  ;;  %v3180_v12 = vmax.f32 %v3179_v58, %v2973_v47  ;;  %v3184_v26 = vmax.f32 %v5790_v43, %v2443_v23 }
 0x21b   : > { %3390 = vst [vmem:[%s5489_s20 + $0xf8] sm:$0xff] %v3336_v24  ;;  %v3284_v2 = vadd.f32 %v5479_v53, %v3183_v63  ;;  %v3188_v11 = vmax.f32 %v3187_v1, %v5791_v60  ;;  %v5805_v60 = vld [vmem:[#allocation37_spill] sm:$0xff] }
 0x21c   : > { %3389 = vst [vmem:[%s5489_s20 + $0xf0] sm:$0xff] %v3335_v25  ;;  %v3283_v42 = vadd.f32 %v5479_v53, %v3180_v12  ;;  %v4067_v28 = vpop.f32.mrb[90].mxu0  ;;  %v3185_v49 = vmax.f32 %v3184_v26, %v5792_v13  ;;  %v4229_v59 = vpop.f32.mrb[90].mxu1  ;;  %v5804_v25 = vld [vmem:[#allocation36_spill] sm:$0xff] }
 0x21d   : > { %v3338_v27 = vmax.f32 %v3284_v2, 0.0  ;;  %v3189_v14 = vmax.f32 %v3188_v11, %v4226_v10  ;;  %v3193_v4 = vmax.f32 %v5793_v29, %v4067_v28  ;;  %v2453_v50 = vpop.f32.mrb[91].mxu0  ;;  %v2993_v30 = vpop.f32.mrb[91].mxu1  ;;  %v5802_v10 = vld [vmem:[#allocation35_spill] sm:$0xff]  ;;  %v5807_v29 = vld [vmem:[#allocation38_spill] sm:$0xff] }
 0x21e   : > { %v3337_v52 = vmax.f32 %v3283_v42, 0.0  ;;  %v3186_v54 = vmax.f32 %v3185_v49, %v2983_v48  ;;  %v3190_v3 = vmax.f32 %v5794_v16, %v2453_v50 }
 0x21f   : > { %3392 = vst [vmem:[%s5489_s20 + $0x108] sm:$0xff] %v3338_v27  ;;  %v3286_v32 = vadd.f32 %v5479_v53, %v3189_v14  ;;  %v3194_v5 = vmax.f32 %v3193_v4, %v5795_v39  ;;  %v5809_v39 = vld [vmem:[#allocation41_spill] sm:$0xff] }
 0x220   : > { %3391 = vst [vmem:[%s5489_s20 + $0x100] sm:$0xff] %v3337_v52  ;;  %v3285_v15 = vadd.f32 %v5479_v53, %v3186_v54  ;;  %v4070_v31 = vpop.f32.mrb[92].mxu0  ;;  %v3191_v33 = vmax.f32 %v3190_v3, %v5796_v61  ;;  %v4232_v17 = vpop.f32.mrb[92].mxu1  ;;  %v5808_v52 = vld [vmem:[#allocation40_spill] sm:$0xff] }
 0x221   : > { %v3340_v46 = vmax.f32 %v3286_v32, 0.0  ;;  %v3195_v34 = vmax.f32 %v3194_v5, %v4229_v59  ;;  %v3199_v18 = vmax.f32 %v5797_v6, %v4070_v31  ;;  %v2463_v51 = vpop.f32.mrb[93].mxu0  ;;  %v3003_v62 = vpop.f32.mrb[93].mxu1  ;;  %v5806_v59 = vld [vmem:[#allocation39_spill] sm:$0xff]  ;;  %v5811_v6 = vld [vmem:[#allocation42_spill] sm:$0xff] }
 0x222   : > { %v3339_v36 = vmax.f32 %v3285_v15, 0.0  ;;  %v3192_v56 = vmax.f32 %v3191_v33, %v2993_v30  ;;  %v3196_v20 = vmax.f32 %v5798_v55, %v2463_v51 }
 0x223   : > { %3394 = vst [vmem:[%s5489_s20 + $0x118] sm:$0xff] %v3340_v46  ;;  %v3288_v35 = vadd.f32 %v5479_v53, %v3195_v34  ;;  %v3200_v41 = vmax.f32 %v3199_v18, %v5799_v8  ;;  %v5813_v8 = vld [vmem:[#allocation45_spill] sm:$0xff] }
 0x224   : > { %3393 = vst [vmem:[%s5489_s20 + $0x110] sm:$0xff] %v3339_v36  ;;  %v3287_v37 = vadd.f32 %v5479_v53, %v3192_v56  ;;  %v4073_v47 = vpop.f32.mrb[94].mxu0  ;;  %v3197_v0 = vmax.f32 %v3196_v20, %v5800_v19  ;;  %v4235_v38 = vpop.f32.mrb[94].mxu1  ;;  %v5812_v36 = vld [vmem:[#allocation44_spill] sm:$0xff] }
 0x225   : > { %v3342_v21 = vmax.f32 %v3288_v35, 0.0  ;;  %v3201_v7 = vmax.f32 %v3200_v41, %v4232_v17  ;;  %v3205_v22 = vmax.f32 %v5801_v57, %v4073_v47  ;;  %v2473_v9 = vpop.f32.mrb[95].mxu0  ;;  %v3013_v40 = vpop.f32.mrb[95].mxu1  ;;  %v5810_v17 = vld [vmem:[#allocation43_spill] sm:$0xff]  ;;  %v5815_v57 = vld [vmem:[#allocation46_spill] sm:$0xff] }
 0x226   : > { %v3341_v45 = vmax.f32 %v3287_v37, 0.0  ;;  %v3198_v58 = vmax.f32 %v3197_v0, %v3003_v62  ;;  %v3202_v24 = vmax.f32 %v5802_v10, %v2473_v9 }
 0x227   : > { %3396 = vst [vmem:[%s5489_s20 + $0x128] sm:$0xff] %v3342_v21  ;;  %v3290_v63 = vadd.f32 %v5479_v53, %v3201_v7  ;;  %v3206_v1 = vmax.f32 %v3205_v22, %v5803_v44  ;;  %v5817_v44 = vld [vmem:[#allocation49_spill] sm:$0xff] }
 0x228   : > { %3395 = vst [vmem:[%s5489_s20 + $0x120] sm:$0xff] %v3341_v45  ;;  %v3289_v23 = vadd.f32 %v5479_v53, %v3198_v58  ;;  %v4076_v48 = vpop.f32.mrb[96].mxu0  ;;  %v3203_v12 = vmax.f32 %v3202_v24, %v5804_v25  ;;  %v4238_v43 = vpop.f32.mrb[96].mxu1  ;;  %v5816_v45 = vld [vmem:[#allocation48_spill] sm:$0xff] }
 0x229   : > { %v3344_v26 = vmax.f32 %v3290_v63, 0.0  ;;  %v3207_v2 = vmax.f32 %v3206_v1, %v4235_v38  ;;  %v3211_v11 = vmax.f32 %v5805_v60, %v4076_v48  ;;  %v2483_v42 = vpop.f32.mrb[97].mxu0  ;;  %v3023_v28 = vpop.f32.mrb[97].mxu1  ;;  %v5814_v38 = vld [vmem:[#allocation47_spill] sm:$0xff]  ;;  %v5819_v60 = vld [vmem:[#allocation50_spill] sm:$0xff] }
 0x22a   : > { %v3343_v13 = vmax.f32 %v3289_v23, 0.0  ;;  %v3204_v49 = vmax.f32 %v3203_v12, %v3013_v40  ;;  %v3208_v27 = vmax.f32 %v5806_v59, %v2483_v42 }
 0x22b   : > { %3398 = vst [vmem:[%s5489_s20 + $0x138] sm:$0xff] %v3344_v26  ;;  %v3292_v14 = vadd.f32 %v5479_v53, %v3207_v2  ;;  %v3212_v4 = vmax.f32 %v3211_v11, %v5807_v29  ;;  %v5821_v29 = vld [vmem:[#allocation53_spill] sm:$0xff] }
 0x22c   : > { %3397 = vst [vmem:[%s5489_s20 + $0x130] sm:$0xff] %v3343_v13  ;;  %v3291_v50 = vadd.f32 %v5479_v53, %v3204_v49  ;;  %v4079_v30 = vpop.f32.mrb[98].mxu0  ;;  %v3209_v54 = vmax.f32 %v3208_v27, %v5808_v52  ;;  %v4241_v16 = vpop.f32.mrb[98].mxu1  ;;  %v5820_v13 = vld [vmem:[#allocation52_spill] sm:$0xff] }
 0x22d   : > { %v3346_v3 = vmax.f32 %v3292_v14, 0.0  ;;  %v3213_v32 = vmax.f32 %v3212_v4, %v4238_v43  ;;  %v3217_v5 = vmax.f32 %v5809_v39, %v4079_v30  ;;  %v2493_v15 = vpop.f32.mrb[99].mxu0  ;;  %v3033_v31 = vpop.f32.mrb[99].mxu1  ;;  %v5818_v43 = vld [vmem:[#allocation51_spill] sm:$0xff]  ;;  %v5823_v39 = vld [vmem:[#allocation54_spill] sm:$0xff] }
 0x22e   : > { %v3345_v61 = vmax.f32 %v3291_v50, 0.0  ;;  %v3210_v33 = vmax.f32 %v3209_v54, %v3023_v28  ;;  %v3214_v46 = vmax.f32 %v5810_v17, %v2493_v15 }
 0x22f   : > { %3400 = vst [vmem:[%s5489_s20 + $0x148] sm:$0xff] %v3346_v3  ;;  %v3294_v34 = vadd.f32 %v5479_v53, %v3213_v32  ;;  %v3218_v18 = vmax.f32 %v3217_v5, %v5811_v6  ;;  %v5825_v6 = vld [vmem:[#allocation57_spill] sm:$0xff] }
 0x230   : > { %3399 = vst [vmem:[%s5489_s20 + $0x140] sm:$0xff] %v3345_v61  ;;  %v3293_v51 = vadd.f32 %v5479_v53, %v3210_v33  ;;  %v4082_v62 = vpop.f32.mrb[100].mxu0  ;;  %v3215_v56 = vmax.f32 %v3214_v46, %v5812_v36  ;;  %v4244_v55 = vpop.f32.mrb[100].mxu1  ;;  %v5824_v61 = vld [vmem:[#allocation56_spill] sm:$0xff] }
 0x231   : > { %v3348_v20 = vmax.f32 %v3294_v34, 0.0  ;;  %v3219_v35 = vmax.f32 %v3218_v18, %v4241_v16  ;;  %v3223_v41 = vmax.f32 %v5813_v8, %v4082_v62  ;;  %v2503_v37 = vpop.f32.mrb[101].mxu0  ;;  %v3043_v47 = vpop.f32.mrb[101].mxu1  ;;  %v5822_v16 = vld [vmem:[#allocation55_spill] sm:$0xff]  ;;  %v5827_v8 = vld [vmem:[#allocation58_spill] sm:$0xff] }
 0x232   : > { %v3347_v19 = vmax.f32 %v3293_v51, 0.0  ;;  %v3216_v0 = vmax.f32 %v3215_v56, %v3033_v31  ;;  %v3220_v21 = vmax.f32 %v5814_v38, %v2503_v37 }
 0x233   : > { %3402 = vst [vmem:[%s5489_s20 + $0x158] sm:$0xff] %v3348_v20  ;;  %v3296_v7 = vadd.f32 %v5479_v53, %v3219_v35  ;;  %v3224_v22 = vmax.f32 %v3223_v41, %v5815_v57 }
 0x234   : > { %3401 = vst [vmem:[%s5489_s20 + $0x150] sm:$0xff] %v3347_v19  ;;  %v3295_v9 = vadd.f32 %v5479_v53, %v3216_v0  ;;  %v4085_v40 = vpop.f32.mrb[102].mxu0  ;;  %v3221_v58 = vmax.f32 %v3220_v21, %v5816_v45  ;;  %v4247_v10 = vpop.f32.mrb[102].mxu1 }
 0x235   : > { %v3350_v24 = vmax.f32 %v3296_v7, 0.0  ;;  %v3225_v63 = vmax.f32 %v3224_v22, %v4244_v55  ;;  %v3229_v1 = vmax.f32 %v5817_v44, %v4085_v40  ;;  %v2513_v23 = vpop.f32.mrb[103].mxu0  ;;  %v3053_v48 = vpop.f32.mrb[103].mxu1  ;;  %v5826_v55 = vld [vmem:[#allocation59_spill] sm:$0xff] }
 0x236   : > { %v3349_v25 = vmax.f32 %v3295_v9, 0.0  ;;  %v3222_v12 = vmax.f32 %v3221_v58, %v3043_v47  ;;  %v3226_v26 = vmax.f32 %v5818_v43, %v2513_v23  ;;  %v5828_v47 = vld [vmem:[#allocation60_spill] sm:$0xff] }
 0x237   : > { %3404 = vst [vmem:[%s5489_s20 + $0x168] sm:$0xff] %v3350_v24  ;;  %v3298_v2 = vadd.f32 %v5479_v53, %v3225_v63  ;;  %v3230_v11 = vmax.f32 %v3229_v1, %v5819_v60 }
 0x238   : > { %3403 = vst [vmem:[%s5489_s20 + $0x160] sm:$0xff] %v3349_v25  ;;  %v3297_v42 = vadd.f32 %v5479_v53, %v3222_v12  ;;  %v4088_v28 = vpop.f32.mrb[104].mxu0  ;;  %v3227_v49 = vmax.f32 %v3226_v26, %v5820_v13  ;;  %v4250_v59 = vpop.f32.mrb[104].mxu1 }
 0x239   : > { %v3352_v27 = vmax.f32 %v3298_v2, 0.0  ;;  %v3231_v14 = vmax.f32 %v3230_v11, %v4247_v10  ;;  %v3235_v4 = vmax.f32 %v5821_v29, %v4088_v28  ;;  %v2523_v50 = vpop.f32.mrb[105].mxu0  ;;  %v3063_v30 = vpop.f32.mrb[105].mxu1 }
 0x23a   : > { %v3351_v52 = vmax.f32 %v3297_v42, 0.0  ;;  %v3228_v54 = vmax.f32 %v3227_v49, %v3053_v48  ;;  %v3232_v3 = vmax.f32 %v5822_v16, %v2523_v50 }
 0x23b   : > { %3406 = vst [vmem:[%s5489_s20 + $0x178] sm:$0xff] %v3352_v27  ;;  %v3300_v32 = vadd.f32 %v5479_v53, %v3231_v14  ;;  %v3236_v5 = vmax.f32 %v3235_v4, %v5823_v39 }
 0x23c   : > { %3405 = vst [vmem:[%s5489_s20 + $0x170] sm:$0xff] %v3351_v52  ;;  %v3299_v15 = vadd.f32 %v5479_v53, %v3228_v54  ;;  %v4091_v31 = vpop.f32.mrb[106].mxu0  ;;  %v3233_v33 = vmax.f32 %v3232_v3, %v5824_v61  ;;  %v4253_v17 = vpop.f32.mrb[106].mxu1 }
 0x23d   : > { %v3354_v46 = vmax.f32 %v3300_v32, 0.0  ;;  %v3237_v34 = vmax.f32 %v3236_v5, %v4250_v59  ;;  %v3241_v18 = vmax.f32 %v5825_v6, %v4091_v31  ;;  %v2533_v51 = vpop.f32.mrb[107].mxu0  ;;  %v3073_v62 = vpop.f32.mrb[107].mxu1 }
 0x23e   : > { %v3353_v36 = vmax.f32 %v3299_v15, 0.0  ;;  %v3234_v56 = vmax.f32 %v3233_v33, %v3063_v30  ;;  %v3238_v20 = vmax.f32 %v5826_v55, %v2533_v51 }
 0x23f   : > { %3408 = vst [vmem:[%s5489_s20 + $0x188] sm:$0xff] %v3354_v46  ;;  %v3302_v35 = vadd.f32 %v5479_v53, %v3237_v34  ;;  %v3242_v41 = vmax.f32 %v3241_v18, %v5827_v8 }
 0x240   : > { %3407 = vst [vmem:[%s5489_s20 + $0x180] sm:$0xff] %v3353_v36  ;;  %v3301_v37 = vadd.f32 %v5479_v53, %v3234_v56  ;;  %v3239_v19 = vmax.f32 %v3238_v20, %v5828_v47 }
 0x241   : > { %v3356_v0 = vmax.f32 %v3302_v35, 0.0  ;;  %v3243_v38 = vmax.f32 %v3242_v41, %v4253_v17 }
 0x242   : > { %v3355_v21 = vmax.f32 %v3301_v37, 0.0  ;;  %v3240_v7 = vmax.f32 %v3239_v19, %v3073_v62 }
 0x243   : > { %3410 = vst [vmem:[%s5489_s20 + $0x198] sm:$0xff] %v3356_v0  ;;  %v3304_v57 = vadd.f32 %v5479_v53, %v3243_v38 }
 0x244   : > { %3409 = vst [vmem:[%s5489_s20 + $0x190] sm:$0xff] %v3355_v21  ;;  %v3303_v22 = vadd.f32 %v5479_v53, %v3240_v7 }
 0x245   : > { %v3358_v9 = vmax.f32 %v3304_v57, 0.0 }
 0x246   : > { %v3357_v40 = vmax.f32 %v3303_v22, 0.0 }
 0x247   : > { %3412 = vst [vmem:[%s5489_s20 + $0x1a8] sm:$0xff] %v3358_v9 }
 0x248   : > { %3411 = vst [vmem:[%s5489_s20 + $0x1a0] sm:$0xff] %v3357_v40 }
 0x249 PF: > { %p10_p9 = scmp.ge.s32.totalorder %s4353_s16, 4   ;;  %s5829_s12 = smov %s4310_s13 }
 0x24a   : > { %s5830_s13 = smov %s4362_s19  ;;  %s5831_s14 = smov %s4353_s16 }
 0x24b   :  { %12 = sbr.rel (!%p10_p9) target bundleno = 2 (0x2), region = 105 }

// kernel: conv_encoder_forward.4
= control target key start
LH: loop header
LB: loop body
LE: loop exit
PB: predicated region body
PF: predicated region fallthrough
CT: control target
= control target key end

     0   :  { %s824_s12 = smov 0   ;;  %s826_s13 = smov 0   ;;  %s1168_s0 = inlined_call_operand.vmem [shape: f32[4,96,256], index: 0, kind: input, shape index: {}]   ;;  %s1169_s1 = inlined_call_operand.vmem [shape: f32[256,128], index: 1, kind: input, shape index: {}]   ;;  %s1170_s2 = inlined_call_operand.vmem [shape: f32[1,128], index: 2, kind: input, shape index: {}]   ;;  %s1171_s3 = inlined_call_operand.vmem [shape: f32[96,128], index: 3, kind: output, shape index: {}]  }
   0x1   :  { %s828_s14 = smov 0  }
   0x2 LB: > { %s658_s15 = sadd.s32 4294967295, %s801_s14   ;;  %s841_s16 = sadd.s32 1, %s801_s14   ;;  %s801_s14 = sphi %s828_s14, %s1174_s14   ;;  %s797_s13 = sphi %s826_s13, %s1173_s13   ;;  %s793_s12 = sphi %s824_s12, %s1172_s12  }
   0x3   : > { %s17_s17 = ssub.s32 %s801_s14, %s841_s16  ;;  %s20_s18 = sadd.s32 1, %s797_s13 }
   0x4   : > { %p18_p0 = scmp.eq.s32.totalorder %s17_s17, 0  ;;  %p27_p1 = scmp.ne.s32.totalorder %s797_s13, %s793_s12 }
   0x5   : > { %p28_p2 = scmp.eq.s32.totalorder %s801_s14, 0  ;;  %p661_p4 = scmp.ge.s32.totalorder %s801_s14, 2 }
   0x6   : > { %s850_s19 = scalar_select %p18_p0, %s797_s13, %s20_s18  }
   0x7   : > { %p29_p3 = por %p28_p2, %p27_p1  ;;  %127 = sbr.rel (%p661_p4) target bundleno = 43 (0x2b), region = 24 }
   0xe   : > { %130 = sbr.rel (!%p29_p3) target bundleno = 43 (0x2b), region = 28  ;;  %s132_s20 = sand.u32 (%p29_p3), 1, %s797_s13  }
   0xf   : > { %s671_s21 = smul.u32 (%p29_p3), 96, %s801_s14 }
  0x10   : > { %s752_s22 = smul.u32 (%p29_p3), 384, %s132_s20 }
  0x11   : > { %s858_s25 = scalar_lea.vmem (%p29_p3), %s1168_s0, %s671_s21 }
  0x12   : > { %v151_v0 = vld [vmem:[%s858_s25] sm:$0xff] (%p29_p3)  ;;  %v153_v1 = vld [vmem:[%s858_s25 + $0x8] sm:$0xff] (%p29_p3)  ;;  %v155_v2 = vld [vmem:[%s858_s25 + $0x10] sm:$0xff] (%p29_p3)  ;;  %s863_s26 = scalar_lea.vmem (%p29_p3), [#allocation2], %s752_s22 }
  0x13   : > { %152 = vst [vmem:[%s863_s26] sm:$0xff] (%p29_p3), %v151_v0  ;;  %154 = vst [vmem:[%s863_s26 + $0x8] sm:$0xff] (%p29_p3), %v153_v1  ;;  %v157_v3 = vld [vmem:[%s858_s25 + $0x18] sm:$0xff] (%p29_p3)  ;;  %v159_v4 = vld [vmem:[%s858_s25 + $0x20] sm:$0xff] (%p29_p3) }
  0x14   : > { %156 = vst [vmem:[%s863_s26 + $0x10] sm:$0xff] (%p29_p3), %v155_v2  ;;  %v161_v5 = vld [vmem:[%s858_s25 + $0x28] sm:$0xff] (%p29_p3)  ;;  %158 = vst [vmem:[%s863_s26 + $0x18] sm:$0xff] (%p29_p3), %v157_v3  ;;  %v163_v6 = vld [vmem:[%s858_s25 + $0x30] sm:$0xff] (%p29_p3) }
  0x15   : > { %160 = vst [vmem:[%s863_s26 + $0x20] sm:$0xff] %v159_v4  ;;  %162 = vst [vmem:[%s863_s26 + $0x28] sm:$0xff] %v161_v5  ;;  %v165_v7 = vld [vmem:[%s858_s25 + $0x38] sm:$0xff]  ;;  %v167_v8 = vld [vmem:[%s858_s25 + $0x40] sm:$0xff] }
  0x16   : > { %164 = vst [vmem:[%s863_s26 + $0x30] sm:$0xff] %v163_v6  ;;  %166 = vst [vmem:[%s863_s26 + $0x38] sm:$0xff] %v165_v7  ;;  %v169_v9 = vld [vmem:[%s858_s25 + $0x48] sm:$0xff]  ;;  %v171_v10 = vld [vmem:[%s858_s25 + $0x50] sm:$0xff] }
  0x17   : > { %168 = vst [vmem:[%s863_s26 + $0x40] sm:$0xff] %v167_v8  ;;  %v173_v11 = vld [vmem:[%s858_s25 + $0x58] sm:$0xff]  ;;  %170 = vst [vmem:[%s863_s26 + $0x48] sm:$0xff] %v169_v9  ;;  %v175_v12 = vld [vmem:[%s858_s25 + $0xc0] sm:$0xff] }
  0x18   : > { %172 = vst [vmem:[%s863_s26 + $0x50] sm:$0xff] %v171_v10  ;;  %174 = vst [vmem:[%s863_s26 + $0x58] sm:$0xff] %v173_v11  ;;  %v177_v13 = vld [vmem:[%s858_s25 + $0xc8] sm:$0xff]  ;;  %v179_v14 = vld [vmem:[%s858_s25 + $0xd0] sm:$0xff] }
  0x19   : > { %176 = vst [vmem:[%s863_s26 + $0x60] sm:$0xff] %v175_v12  ;;  %178 = vst [vmem:[%s863_s26 + $0x68] sm:$0xff] %v177_v13  ;;  %v181_v15 = vld [vmem:[%s858_s25 + $0xd8] sm:$0xff]  ;;  %v183_v16 = vld [vmem:[%s858_s25 + $0xe0] sm:$0xff] }
  0x1a   : > { %180 = vst [vmem:[%s863_s26 + $0x70] sm:$0xff] %v179_v14  ;;  %v185_v17 = vld [vmem:[%s858_s25 + $0xe8] sm:$0xff]  ;;  %182 = vst [vmem:[%s863_s26 + $0x78] sm:$0xff] %v181_v15  ;;  %v187_v18 = vld [vmem:[%s858_s25 + $0xf0] sm:$0xff] }
  0x1b   : > { %184 = vst [vmem:[%s863_s26 + $0x80] sm:$0xff] %v183_v16  ;;  %186 = vst [vmem:[%s863_s26 + $0x88] sm:$0xff] %v185_v17  ;;  %v189_v19 = vld [vmem:[%s858_s25 + $0xf8] sm:$0xff]  ;;  %v191_v20 = vld [vmem:[%s858_s25 + $0x100] sm:$0xff] }
  0x1c   : > { %188 = vst [vmem:[%s863_s26 + $0x90] sm:$0xff] %v187_v18  ;;  %190 = vst [vmem:[%s863_s26 + $0x98] sm:$0xff] %v189_v19  ;;  %v193_v21 = vld [vmem:[%s858_s25 + $0x108] sm:$0xff]  ;;  %v195_v22 = vld [vmem:[%s858_s25 + $0x110] sm:$0xff] }
  0x1d   : > { %192 = vst [vmem:[%s863_s26 + $0xa0] sm:$0xff] %v191_v20  ;;  %v197_v23 = vld [vmem:[%s858_s25 + $0x118] sm:$0xff]  ;;  %194 = vst [vmem:[%s863_s26 + $0xa8] sm:$0xff] %v193_v21  ;;  %v199_v24 = vld [vmem:[%s858_s25 + $0x180] sm:$0xff] }
  0x1e   : > { %196 = vst [vmem:[%s863_s26 + $0xb0] sm:$0xff] %v195_v22  ;;  %198 = vst [vmem:[%s863_s26 + $0xb8] sm:$0xff] %v197_v23  ;;  %v201_v25 = vld [vmem:[%s858_s25 + $0x188] sm:$0xff]  ;;  %v203_v26 = vld [vmem:[%s858_s25 + $0x190] sm:$0xff] }
  0x1f   : > { %200 = vst [vmem:[%s863_s26 + $0xc0] sm:$0xff] %v199_v24  ;;  %202 = vst [vmem:[%s863_s26 + $0xc8] sm:$0xff] %v201_v25  ;;  %v205_v27 = vld [vmem:[%s858_s25 + $0x198] sm:$0xff]  ;;  %v207_v28 = vld [vmem:[%s858_s25 + $0x1a0] sm:$0xff] }
  0x20   : > { %204 = vst [vmem:[%s863_s26 + $0xd0] sm:$0xff] %v203_v26  ;;  %v209_v29 = vld [vmem:[%s858_s25 + $0x1a8] sm:$0xff]  ;;  %206 = vst [vmem:[%s863_s26 + $0xd8] sm:$0xff] %v205_v27  ;;  %v211_v30 = vld [vmem:[%s858_s25 + $0x1b0] sm:$0xff] }
  0x21   : > { %208 = vst [vmem:[%s863_s26 + $0xe0] sm:$0xff] %v207_v28  ;;  %210 = vst [vmem:[%s863_s26 + $0xe8] sm:$0xff] %v209_v29  ;;  %v213_v31 = vld [vmem:[%s858_s25 + $0x1b8] sm:$0xff]  ;;  %v215_v32 = vld [vmem:[%s858_s25 + $0x1c0] sm:$0xff] }
  0x22   : > { %212 = vst [vmem:[%s863_s26 + $0xf0] sm:$0xff] %v211_v30  ;;  %214 = vst [vmem:[%s863_s26 + $0xf8] sm:$0xff] %v213_v31  ;;  %v217_v33 = vld [vmem:[%s858_s25 + $0x1c8] sm:$0xff]  ;;  %v219_v34 = vld [vmem:[%s858_s25 + $0x1d0] sm:$0xff] }
  0x23   : > { %216 = vst [vmem:[%s863_s26 + $0x100] sm:$0xff] %v215_v32  ;;  %v221_v35 = vld [vmem:[%s858_s25 + $0x1d8] sm:$0xff]  ;;  %218 = vst [vmem:[%s863_s26 + $0x108] sm:$0xff] %v217_v33  ;;  %v223_v36 = vld [vmem:[%s858_s25 + $0x240] sm:$0xff] }
  0x24   : > { %220 = vst [vmem:[%s863_s26 + $0x110] sm:$0xff] %v219_v34  ;;  %222 = vst [vmem:[%s863_s26 + $0x118] sm:$0xff] %v221_v35  ;;  %v225_v37 = vld [vmem:[%s858_s25 + $0x248] sm:$0xff]  ;;  %v227_v38 = vld [vmem:[%s858_s25 + $0x250] sm:$0xff] }
  0x25   : > { %224 = vst [vmem:[%s863_s26 + $0x120] sm:$0xff] %v223_v36  ;;  %226 = vst [vmem:[%s863_s26 + $0x128] sm:$0xff] %v225_v37  ;;  %v229_v39 = vld [vmem:[%s858_s25 + $0x258] sm:$0xff]  ;;  %v231_v40 = vld [vmem:[%s858_s25 + $0x260] sm:$0xff] }
  0x26   : > { %228 = vst [vmem:[%s863_s26 + $0x130] sm:$0xff] %v227_v38  ;;  %v233_v41 = vld [vmem:[%s858_s25 + $0x268] sm:$0xff]  ;;  %230 = vst [vmem:[%s863_s26 + $0x138] sm:$0xff] %v229_v39  ;;  %v235_v42 = vld [vmem:[%s858_s25 + $0x270] sm:$0xff] }
  0x27   : > { %232 = vst [vmem:[%s863_s26 + $0x140] sm:$0xff] %v231_v40  ;;  %234 = vst [vmem:[%s863_s26 + $0x148] sm:$0xff] %v233_v41  ;;  %v237_v43 = vld [vmem:[%s858_s25 + $0x278] sm:$0xff]  ;;  %v239_v44 = vld [vmem:[%s858_s25 + $0x280] sm:$0xff] }
  0x28   : > { %236 = vst [vmem:[%s863_s26 + $0x150] sm:$0xff] %v235_v42  ;;  %238 = vst [vmem:[%s863_s26 + $0x158] sm:$0xff] %v237_v43  ;;  %v241_v45 = vld [vmem:[%s858_s25 + $0x288] sm:$0xff]  ;;  %v243_v46 = vld [vmem:[%s858_s25 + $0x290] sm:$0xff] }
  0x29   : > { %240 = vst [vmem:[%s863_s26 + $0x160] sm:$0xff] %v239_v44  ;;  %v245_v47 = vld [vmem:[%s858_s25 + $0x298] sm:$0xff]  ;;  %242 = vst [vmem:[%s863_s26 + $0x168] sm:$0xff] %v241_v45 }
  0x2a   : > { %244 = vst [vmem:[%s863_s26 + $0x170] sm:$0xff] %v243_v46  ;;  %246 = vst [vmem:[%s863_s26 + $0x178] sm:$0xff] %v245_v47 }
  0x2b PF: > { %p664_p5 = scmp.ge.s32.totalorder %s801_s14, 1  ;;  %p251_p6 = scmp.lt.s32.totalorder %s801_s14, 3 }
  0x2d   : > { %p252_p7 = pnand %p664_p5, %p251_p6 }
  0x2e   : > { %v336_v48 = vld [vmem:[%s1169_s1] sm:$0xff] (!%p252_p7)  ;;  %v337_v49 = vld [vmem:[%s1169_s1 + $0x8] sm:$0xff] (!%p252_p7)  ;;  %v338_v50 = vld [vmem:[%s1169_s1 + $0x10] sm:$0xff] (!%p252_p7)  ;;  %s258_s6 = sand.u32 (!%p252_p7), 1, %s793_s12   ;;  %v803_v51 = vmov (!%p252_p7), 0.0|0.0  }
  0x2f   : > { %255 = sbr.rel (%p252_p7) target bundleno = 379 (0x17b), region = 51  ;;  %672 = vmatprep.subr.bf16.mxu0 (!%p252_p7), %v803_v51  ;;  %v673_v52 = vpack.c.bf16 (!%p252_p7), %v337_v49, %v336_v48  ;;  %720 = vmatprep.subr.bf16.mxu1 (!%p252_p7), %v803_v51  ;;  %v339_v53 = vld [vmem:[%s1169_s1 + $0x18] sm:$0xff] (!%p252_p7)  ;;  %v340_v55 = vld [vmem:[%s1169_s1 + $0x20] sm:$0xff] (!%p252_p7)  ;;  %v341_v56 = vld [vmem:[%s1169_s1 + $0x28] sm:$0xff] (!%p252_p7) }
  0x30   : > { %v676_v54 = vpack.c.bf16 (!%p252_p7), %v339_v53, %v338_v50  ;;  %s753_s9 = smul.u32 (!%p252_p7), 384, %s258_s6  ;;  %v679_v57 = vpack.c.bf16 (!%p252_p7), %v341_v56, %v340_v55  ;;  %v342_v58 = vld [vmem:[%s1169_s1 + $0x30] sm:$0xff] (!%p252_p7)  ;;  %v343_v59 = vld [vmem:[%s1169_s1 + $0x38] sm:$0xff] (!%p252_p7)  ;;  %v344_v63 = vld [vmem:[%s1169_s1 + $0x40] sm:$0xff] (!%p252_p7) }
  0x31   : > { %674 = vmatpush1.bf16.msra.mxu0 (!%p252_p7), %v673_v52  ;;  %736 = vmatpush1.bf16.msra.mxu1 (!%p252_p7), %v673_v52  ;;  %v682_v61 = vpack.c.bf16 (!%p252_p7), %v343_v59, %v342_v58  ;;  %v345_v0 = vld [vmem:[%s1169_s1 + $0x48] sm:$0xff] (!%p252_p7)  ;;  %v346_v2 = vld [vmem:[%s1169_s1 + $0x50] sm:$0xff] (!%p252_p7)  ;;  %v347_v3 = vld [vmem:[%s1169_s1 + $0x58] sm:$0xff] (!%p252_p7) }
  0x32   : > { %675 = vmatprep.subr.bf16.mxu0 (!%p252_p7), %v803_v51  ;;  %721 = vmatprep.subr.bf16.mxu1 (!%p252_p7), %v803_v51  ;;  %s991_s23 = scalar_lea.vmem (!%p252_p7), [#allocation2], %s753_s9  ;;  %v685_v1 = vpack.c.bf16 (!%p252_p7), %v345_v0, %v344_v63  ;;  %v688_v4 = vpack.c.bf16 (!%p252_p7), %v347_v3, %v346_v2  ;;  %v348_v5 = vld [vmem:[%s1169_s1 + $0x60] sm:$0xff] (!%p252_p7)  ;;  %v349_v6 = vld [vmem:[%s1169_s1 + $0x68] sm:$0xff] (!%p252_p7)  ;;  %v350_v8 = vld [vmem:[%s1169_s1 + $0x70] sm:$0xff] (!%p252_p7) }
  0x33   : > { %v289_v60 = vld [vmem:[%s991_s23 + $0x8] sm:$0xff] (!%p252_p7)  ;;  %v691_v7 = vpack.c.bf16 (!%p252_p7), %v349_v6, %v348_v5  ;;  %v351_v9 = vld [vmem:[%s1169_s1 + $0x78] sm:$0xff] (!%p252_p7)  ;;  %v352_v11 = vld [vmem:[%s1169_s1 + $0x80] sm:$0xff] (!%p252_p7) }
  0x34   : > { %v313_v62 = vld [vmem:[%s991_s23 + $0xc8] sm:$0xff] (!%p252_p7)  ;;  %432 = vmatprep.mubr.f32.mxu0 (!%p252_p7), %v289_v60  ;;  %v694_v10 = vpack.c.bf16 (!%p252_p7), %v351_v9, %v350_v8  ;;  %v354_v14 = vld [vmem:[%s1169_s1 + $0x90] sm:$0xff] (!%p252_p7)  ;;  %v355_v15 = vld [vmem:[%s1169_s1 + $0x98] sm:$0xff] (!%p252_p7) }
  0x35   : > { %677 = vmatpush1.bf16.msra.mxu0 (!%p252_p7), %v676_v54  ;;  %737 = vmatpush1.bf16.msra.mxu1 (!%p252_p7), %v676_v54  ;;  %v353_v12 = vld [vmem:[%s1169_s1 + $0x88] sm:$0xff] (!%p252_p7)  ;;  %v700_v16 = vpack.c.bf16 (!%p252_p7), %v355_v15, %v354_v14  ;;  %v356_v17 = vld [vmem:[%s1169_s1 + $0xa0] sm:$0xff] (!%p252_p7)  ;;  %v358_v20 = vld [vmem:[%s1169_s1 + $0xb0] sm:$0xff] (!%p252_p7) }
  0x36   : > { %678 = vmatprep.subr.bf16.mxu0 %v803_v51  ;;  %722 = vmatprep.subr.bf16.mxu1 %v803_v51  ;;  %v697_v13 = vpack.c.bf16 %v353_v12, %v352_v11  ;;  %v357_v18 = vld [vmem:[%s1169_s1 + $0xa8] sm:$0xff]  ;;  %v359_v21 = vld [vmem:[%s1169_s1 + $0xb8] sm:$0xff]  ;;  %v360_v23 = vld [vmem:[%s1169_s1 + $0xc0] sm:$0xff] }
  0x37   : > { %492 = vmatprep.mubr.f32.mxu1 %v313_v62  ;;  %v703_v19 = vpack.c.bf16 %v357_v18, %v356_v17  ;;  %v706_v22 = vpack.c.bf16 %v359_v21, %v358_v20  ;;  %v361_v24 = vld [vmem:[%s1169_s1 + $0xc8] sm:$0xff]  ;;  %v362_v26 = vld [vmem:[%s1169_s1 + $0xd0] sm:$0xff]  ;;  %v363_v27 = vld [vmem:[%s1169_s1 + $0xd8] sm:$0xff] }
  0x38   : > { %v709_v25 = vpack.c.bf16 %v361_v24, %v360_v23  ;;  %v712_v28 = vpack.c.bf16 %v363_v27, %v362_v26  ;;  %v364_v29 = vld [vmem:[%s1169_s1 + $0xe0] sm:$0xff]  ;;  %v365_v30 = vld [vmem:[%s1169_s1 + $0xe8] sm:$0xff]  ;;  %v366_v32 = vld [vmem:[%s1169_s1 + $0xf0] sm:$0xff] }
  0x39   : > { %680 = vmatpush1.bf16.msra.mxu0 %v679_v57  ;;  %738 = vmatpush1.bf16.msra.mxu1 %v679_v57  ;;  %v715_v31 = vpack.c.bf16 %v365_v30, %v364_v29  ;;  %v367_v33 = vld [vmem:[%s1169_s1 + $0xf8] sm:$0xff]  ;;  %v288_v35 = vld [vmem:[%s991_s23] sm:$0xff]  ;;  %v290_v39 = vld [vmem:[%s991_s23 + $0x10] sm:$0xff] }
  0x3a   : > { %681 = vmatprep.subr.bf16.mxu0 %v803_v51  ;;  %723 = vmatprep.subr.bf16.mxu1 %v803_v51  ;;  %v718_v34 = vpack.c.bf16 %v367_v33, %v366_v32  ;;  %v312_v36 = vld [vmem:[%s991_s23 + $0xc0] sm:$0xff]  ;;  %v291_v37 = vld [vmem:[%s991_s23 + $0x18] sm:$0xff]  ;;  %v314_v40 = vld [vmem:[%s991_s23 + $0xd0] sm:$0xff] }
  0x3b   : > { %v315_v38 = vld [vmem:[%s991_s23 + $0xd8] sm:$0xff]  ;;  %v293_v41 = vld [vmem:[%s991_s23 + $0x28] sm:$0xff]  ;;  %v292_v43 = vld [vmem:[%s991_s23 + $0x20] sm:$0xff] }
  0x3c   : > { %v317_v42 = vld [vmem:[%s991_s23 + $0xe8] sm:$0xff]  ;;  %v316_v44 = vld [vmem:[%s991_s23 + $0xe0] sm:$0xff]  ;;  %v295_v45 = vld [vmem:[%s991_s23 + $0x38] sm:$0xff] }
  0x3d   : > { %683 = vmatpush1.bf16.msra.mxu0 %v682_v61  ;;  %739 = vmatpush1.bf16.msra.mxu1 %v682_v61  ;;  %v319_v46 = vld [vmem:[%s991_s23 + $0xf8] sm:$0xff]  ;;  %v294_v47 = vld [vmem:[%s991_s23 + $0x30] sm:$0xff]  ;;  %v297_v49 = vld [vmem:[%s991_s23 + $0x48] sm:$0xff] }
  0x3e   : > { %684 = vmatprep.subr.bf16.mxu0 %v803_v51  ;;  %724 = vmatprep.subr.bf16.mxu1 %v803_v51  ;;  %v318_v48 = vld [vmem:[%s991_s23 + $0xf0] sm:$0xff]  ;;  %v321_v50 = vld [vmem:[%s991_s23 + $0x108] sm:$0xff]  ;;  %v320_v52 = vld [vmem:[%s991_s23 + $0x100] sm:$0xff] }
  0x3f   : > { %v299_v53 = vld [vmem:[%s991_s23 + $0x58] sm:$0xff]  ;;  %v298_v55 = vld [vmem:[%s991_s23 + $0x50] sm:$0xff]  ;;  %v301_v57 = vld [vmem:[%s991_s23 + $0x68] sm:$0xff] }
  0x40   : > { %v323_v54 = vld [vmem:[%s991_s23 + $0x118] sm:$0xff]  ;;  %v322_v56 = vld [vmem:[%s991_s23 + $0x110] sm:$0xff]  ;;  %v325_v58 = vld [vmem:[%s991_s23 + $0x128] sm:$0xff] }
  0x41   : > { %686 = vmatpush1.bf16.msra.mxu0 %v685_v1  ;;  %740 = vmatpush1.bf16.msra.mxu1 %v685_v1  ;;  %v300_v59 = vld [vmem:[%s991_s23 + $0x60] sm:$0xff]  ;;  %v303_v61 = vld [vmem:[%s991_s23 + $0x78] sm:$0xff]  ;;  %v302_v63 = vld [vmem:[%s991_s23 + $0x70] sm:$0xff] }
  0x42   : > { %687 = vmatprep.subr.bf16.mxu0 %v803_v51  ;;  %725 = vmatprep.subr.bf16.mxu1 %v803_v51  ;;  %v324_v60 = vld [vmem:[%s991_s23 + $0x120] sm:$0xff]  ;;  %v327_v62 = vld [vmem:[%s991_s23 + $0x138] sm:$0xff]  ;;  %v326_v0 = vld [vmem:[%s991_s23 + $0x130] sm:$0xff] }
  0x43   : > { %v305_v1 = vld [vmem:[%s991_s23 + $0x88] sm:$0xff]  ;;  %v304_v3 = vld [vmem:[%s991_s23 + $0x80] sm:$0xff]  ;;  %v307_v5 = vld [vmem:[%s991_s23 + $0x98] sm:$0xff] }
  0x44   : > { %v329_v2 = vld [vmem:[%s991_s23 + $0x148] sm:$0xff]  ;;  %v331_v6 = vld [vmem:[%s991_s23 + $0x158] sm:$0xff]  ;;  %v330_v8 = vld [vmem:[%s991_s23 + $0x150] sm:$0xff] }
  0x45   : > { %689 = vmatpush1.bf16.msra.mxu0 %v688_v4  ;;  %741 = vmatpush1.bf16.msra.mxu1 %v688_v4  ;;  %v328_v4 = vld [vmem:[%s991_s23 + $0x140] sm:$0xff]  ;;  %v309_v9 = vld [vmem:[%s991_s23 + $0xa8] sm:$0xff]  ;;  %v335_v14 = vld [vmem:[%s991_s23 + $0x178] sm:$0xff] }
  0x46   : > { %690 = vmatprep.subr.bf16.mxu0 %v803_v51  ;;  %726 = vmatprep.subr.bf16.mxu1 %v803_v51  ;;  %v308_v11 = vld [vmem:[%s991_s23 + $0xa0] sm:$0xff]  ;;  %v310_v15 = vld [vmem:[%s991_s23 + $0xb0] sm:$0xff] }
  0x47   : > { %v332_v12 = vld [vmem:[%s991_s23 + $0x160] sm:$0xff] }
  0x49   : > { %692 = vmatpush1.bf16.msra.mxu0 %v691_v7  ;;  %742 = vmatpush1.bf16.msra.mxu1 %v691_v7  ;;  %v306_v7 = vld [vmem:[%s991_s23 + $0x90] sm:$0xff] }
  0x4a   : > { %693 = vmatprep.subr.bf16.mxu0 %v803_v51  ;;  %727 = vmatprep.subr.bf16.mxu1 %v803_v51 }
  0x4d   : > { %695 = vmatpush1.bf16.msra.mxu0 %v694_v10  ;;  %743 = vmatpush1.bf16.msra.mxu1 %v694_v10  ;;  %v333_v10 = vld [vmem:[%s991_s23 + $0x168] sm:$0xff] }
  0x4e   : > { %696 = vmatprep.subr.bf16.mxu0 %v803_v51  ;;  %728 = vmatprep.subr.bf16.mxu1 %v803_v51 }
  0x51   : > { %698 = vmatpush1.bf16.msra.mxu0 %v697_v13  ;;  %744 = vmatpush1.bf16.msra.mxu1 %v697_v13  ;;  %v311_v13 = vld [vmem:[%s991_s23 + $0xb8] sm:$0xff] }
  0x52   : > { %699 = vmatprep.subr.bf16.mxu0 %v803_v51  ;;  %729 = vmatprep.subr.bf16.mxu1 %v803_v51 }
  0x55   : > { %701 = vmatpush1.bf16.msra.mxu0 %v700_v16  ;;  %745 = vmatpush1.bf16.msra.mxu1 %v700_v16  ;;  %v334_v16 = vld [vmem:[%s991_s23 + $0x170] sm:$0xff] }
  0x56   : > { %702 = vmatprep.subr.bf16.mxu0 %v803_v51  ;;  %730 = vmatprep.subr.bf16.mxu1 %v803_v51 }
  0x59   : > { %704 = vmatpush1.bf16.msra.mxu0 %v703_v19  ;;  %746 = vmatpush1.bf16.msra.mxu1 %v703_v19 }
  0x5a   : > { %705 = vmatprep.subr.bf16.mxu0 %v803_v51  ;;  %731 = vmatprep.subr.bf16.mxu1 %v803_v51 }
  0x5d   : > { %707 = vmatpush1.bf16.msra.mxu0 %v706_v22  ;;  %747 = vmatpush1.bf16.msra.mxu1 %v706_v22 }
  0x5e   : > { %708 = vmatprep.subr.bf16.mxu0 %v803_v51  ;;  %732 = vmatprep.subr.bf16.mxu1 %v803_v51 }
  0x61   : > { %710 = vmatpush1.bf16.msra.mxu0 %v709_v25  ;;  %748 = vmatpush1.bf16.msra.mxu1 %v709_v25 }
  0x62   : > { %711 = vmatprep.subr.bf16.mxu0 %v803_v51  ;;  %733 = vmatprep.subr.bf16.mxu1 %v803_v51 }
  0x65   : > { %713 = vmatpush1.bf16.msra.mxu0 %v712_v28  ;;  %749 = vmatpush1.bf16.msra.mxu1 %v712_v28 }
  0x66   : > { %714 = vmatprep.subr.bf16.mxu0 %v803_v51  ;;  %734 = vmatprep.subr.bf16.mxu1 %v803_v51 }
  0x69   : > { %716 = vmatpush1.bf16.msra.mxu0 %v715_v31  ;;  %750 = vmatpush1.bf16.msra.mxu1 %v715_v31 }
  0x6a   : > { %717 = vmatprep.subr.bf16.mxu0 %v803_v51  ;;  %735 = vmatprep.subr.bf16.mxu1 %v803_v51  ;;  %v296_v51 = vld [vmem:[%s991_s23 + $0x40] sm:$0xff]  ;;  %s282_s23 = smul.u32 6, %s658_s15 }
  0x6c   : > { %p283_p8 = scmp.lt.s32.totalorder %s282_s23, 11 }
  0x6d   : > { %719 = vmatpush1.bf16.msra.mxu0 %v718_v34  ;;  %751 = vmatpush1.bf16.msra.mxu1 %v718_v34 }
  0x6e   : > { %s1176_s23 = smov (!%p283_p8, %s282_s23), 11 }
  0x6f   : > { %s665_s14 = sshll.u32 %s1176_s23, 3 }
  0x70   : > { %433 = vmatmul.mubr.f32.vlgmr.msra.gmra.mrb[0].mxu0 %v288_v35  ;;  %493 = vmatmul.mubr.f32.vlgmr.msra.gmra.mrb[0].mxu1 %v312_v36  ;;  %s1149_s6 = scalar_lea.vmem %s1171_s3, %s665_s14 }
  0x71   : > { %437 = vmatprep.mubr.f32.mxu0 %v291_v37  ;;  %497 = vmatprep.mubr.f32.mxu1 %v315_v38 }
  0x74   : > { %438 = vmatmul.mubr.f32.gmra.mrb[2].mxu0 %v290_v39  ;;  %498 = vmatmul.mubr.f32.gmra.mrb[2].mxu1 %v314_v40 }
  0x75   : > { %442 = vmatprep.mubr.f32.mxu0 %v293_v41  ;;  %502 = vmatprep.mubr.f32.mxu1 %v317_v42 }
  0x78   : > { %443 = vmatmul.mubr.f32.gmra.mrb[4].mxu0 %v292_v43  ;;  %503 = vmatmul.mubr.f32.gmra.mrb[4].mxu1 %v316_v44 }
  0x79   : > { %447 = vmatprep.mubr.f32.mxu0 %v295_v45  ;;  %507 = vmatprep.mubr.f32.mxu1 %v319_v46 }
  0x7c   : > { %448 = vmatmul.mubr.f32.gmra.mrb[6].mxu0 %v294_v47  ;;  %508 = vmatmul.mubr.f32.gmra.mrb[6].mxu1 %v318_v48  ;;  %v666_v47 = vld [vmem:[%s1170_s2] ss:$0 sm:$0xff] }
  0x7d   : > { %452 = vmatprep.mubr.f32.mxu0 %v297_v49  ;;  %512 = vmatprep.mubr.f32.mxu1 %v321_v50 }
  0x80   : > { %453 = vmatmul.mubr.f32.gmra.mrb[8].mxu0 %v296_v51  ;;  %513 = vmatmul.mubr.f32.gmra.mrb[8].mxu1 %v320_v52 }
  0x81   : > { %457 = vmatprep.mubr.f32.mxu0 %v299_v53  ;;  %517 = vmatprep.mubr.f32.mxu1 %v323_v54 }
  0x84   : > { %458 = vmatmul.mubr.f32.gmra.mrb[10].mxu0 %v298_v55  ;;  %518 = vmatmul.mubr.f32.gmra.mrb[10].mxu1 %v322_v56 }
  0x85   : > { %462 = vmatprep.mubr.f32.mxu0 %v301_v57  ;;  %522 = vmatprep.mubr.f32.mxu1 %v325_v58 }
  0x88   : > { %463 = vmatmul.mubr.f32.gmra.mrb[12].mxu0 %v300_v59  ;;  %523 = vmatmul.mubr.f32.gmra.mrb[12].mxu1 %v324_v60 }
  0x89   : > { %467 = vmatprep.mubr.f32.mxu0 %v303_v61  ;;  %527 = vmatprep.mubr.f32.mxu1 %v327_v62 }
  0x8c   : > { %468 = vmatmul.mubr.f32.gmra.mrb[14].mxu0 %v302_v63  ;;  %528 = vmatmul.mubr.f32.gmra.mrb[14].mxu1 %v326_v0 }
  0x8d   : > { %472 = vmatprep.mubr.f32.mxu0 %v305_v1  ;;  %532 = vmatprep.mubr.f32.mxu1 %v329_v2 }
  0x90   : > { %473 = vmatmul.mubr.f32.gmra.mrb[16].mxu0 %v304_v3  ;;  %533 = vmatmul.mubr.f32.gmra.mrb[16].mxu1 %v328_v4 }
  0x91   : > { %477 = vmatprep.mubr.f32.mxu0 %v307_v5  ;;  %537 = vmatprep.mubr.f32.mxu1 %v331_v6 }
  0x94   : > { %478 = vmatmul.mubr.f32.gmra.mrb[18].mxu0 %v306_v7  ;;  %538 = vmatmul.mubr.f32.gmra.mrb[18].mxu1 %v330_v8 }
  0x95   : > { %482 = vmatprep.mubr.f32.mxu0 %v309_v9  ;;  %542 = vmatprep.mubr.f32.mxu1 %v333_v10 }
  0x98   : > { %483 = vmatmul.mubr.f32.gmra.mrb[20].mxu0 %v308_v11  ;;  %543 = vmatmul.mubr.f32.gmra.mrb[20].mxu1 %v332_v12 }
  0x99   : > { %487 = vmatprep.mubr.f32.mxu0 %v311_v13  ;;  %547 = vmatprep.mubr.f32.mxu1 %v335_v14 }
  0x9c   : > { %488 = vmatmul.mubr.f32.gmra.mrb[22].mxu0 %v310_v15  ;;  %548 = vmatmul.mubr.f32.gmra.mrb[22].mxu1 %v334_v16 }
 0x143   : > { %v434_v17 = vpop.f32.mrb[0].mxu0  ;;  %v494_v18 = vpop.f32.mrb[0].mxu1 }
 0x144   : > { %v436_v19 = vpop.f32.mrb[1].mxu0  ;;  %v496_v20 = vpop.f32.mrb[1].mxu1 }
 0x147   : > { %v439_v21 = vpop.f32.mrb[2].mxu0  ;;  %v499_v22 = vpop.f32.mrb[2].mxu1 }
 0x148   : > { %v441_v23 = vpop.f32.mrb[3].mxu0  ;;  %v501_v24 = vpop.f32.mrb[3].mxu1 }
 0x14b   : > { %v444_v25 = vpop.f32.mrb[4].mxu0  ;;  %v504_v26 = vpop.f32.mrb[4].mxu1 }
 0x14c   : > { %v446_v27 = vpop.f32.mrb[5].mxu0  ;;  %v506_v28 = vpop.f32.mrb[5].mxu1 }
 0x14f   : > { %v449_v29 = vpop.f32.mrb[6].mxu0  ;;  %v509_v30 = vpop.f32.mrb[6].mxu1 }
 0x150   : > { %v451_v31 = vpop.f32.mrb[7].mxu0  ;;  %v511_v32 = vpop.f32.mrb[7].mxu1 }
 0x153   : > { %v454_v33 = vpop.f32.mrb[8].mxu0  ;;  %v514_v34 = vpop.f32.mrb[8].mxu1 }
 0x154   : > { %v456_v35 = vpop.f32.mrb[9].mxu0  ;;  %v516_v36 = vpop.f32.mrb[9].mxu1 }
 0x157   : > { %v1141_v37 = vpop.f32.mrb[10].mxu0  ;;  %v519_v38 = vpop.f32.mrb[10].mxu1 }
 0x158   : > { %v461_v39 = vpop.f32.mrb[11].mxu0  ;;  %v521_v40 = vpop.f32.mrb[11].mxu1 }
 0x15b   : > { %v464_v41 = vpop.f32.mrb[12].mxu0  ;;  %v524_v42 = vpop.f32.mrb[12].mxu1 }
 0x15c   : > { %v553_v43 = vmax.f32 %v434_v17, %v464_v41  ;;  %v466_v44 = vpop.f32.mrb[13].mxu0  ;;  %v526_v45 = vpop.f32.mrb[13].mxu1 }
 0x15e   : > { %v554_v46 = vmax.f32 %v553_v43, %v494_v18 }
 0x15f   : > { %v469_v48 = vpop.f32.mrb[14].mxu0  ;;  %v529_v49 = vpop.f32.mrb[14].mxu1 }
 0x160   : > { %v555_v50 = vmax.f32 %v554_v46, %v524_v42  ;;  %v556_v51 = vmax.f32 %v439_v21, %v469_v48  ;;  %v471_v52 = vpop.f32.mrb[15].mxu0  ;;  %v531_v53 = vpop.f32.mrb[15].mxu1 }
 0x162   : > { %v578_v54 = vadd.f32 %v666_v47, %v555_v50  ;;  %v557_v55 = vmax.f32 %v556_v51, %v499_v22 }
 0x163   : > { %v474_v56 = vpop.f32.mrb[16].mxu0  ;;  %v534_v57 = vpop.f32.mrb[16].mxu1 }
 0x164   : > { %v584_v58 = vmax.f32 %v578_v54, 0.0  ;;  %v558_v59 = vmax.f32 %v557_v55, %v529_v49  ;;  %v559_v60 = vmax.f32 %v444_v25, %v474_v56  ;;  %v476_v61 = vpop.f32.mrb[17].mxu0  ;;  %v536_v62 = vpop.f32.mrb[17].mxu1 }
 0x166   : > { %590 = vst [vmem:[%s1149_s6] sm:$0xff] %v584_v58  ;;  %v579_v63 = vadd.f32 %v666_v47, %v558_v59  ;;  %v560_v0 = vmax.f32 %v559_v60, %v504_v26 }
 0x167   : > { %v479_v1 = vpop.f32.mrb[18].mxu0  ;;  %v539_v2 = vpop.f32.mrb[18].mxu1 }
 0x168   : > { %v585_v3 = vmax.f32 %v579_v63, 0.0  ;;  %v561_v4 = vmax.f32 %v560_v0, %v534_v57  ;;  %v562_v5 = vmax.f32 %v449_v29, %v479_v1  ;;  %v481_v6 = vpop.f32.mrb[19].mxu0  ;;  %v541_v7 = vpop.f32.mrb[19].mxu1 }
 0x16a   : > { %591 = vst [vmem:[%s1149_s6 + $0x8] sm:$0xff] %v585_v3  ;;  %v580_v8 = vadd.f32 %v666_v47, %v561_v4  ;;  %v563_v9 = vmax.f32 %v562_v5, %v509_v30 }
 0x16b   : > { %v484_v10 = vpop.f32.mrb[20].mxu0  ;;  %v544_v11 = vpop.f32.mrb[20].mxu1 }
 0x16c   : > { %v586_v12 = vmax.f32 %v580_v8, 0.0  ;;  %v564_v13 = vmax.f32 %v563_v9, %v539_v2  ;;  %v565_v14 = vmax.f32 %v454_v33, %v484_v10  ;;  %v486_v15 = vpop.f32.mrb[21].mxu0  ;;  %v546_v16 = vpop.f32.mrb[21].mxu1 }
 0x16e   : > { %592 = vst [vmem:[%s1149_s6 + $0x10] sm:$0xff] %v586_v12  ;;  %v581_v17 = vadd.f32 %v666_v47, %v564_v13  ;;  %v566_v18 = vmax.f32 %v565_v14, %v514_v34 }
 0x16f   : > { %v489_v19 = vpop.f32.mrb[22].mxu0  ;;  %v549_v20 = vpop.f32.mrb[22].mxu1 }
 0x170   : > { %v587_v21 = vmax.f32 %v581_v17, 0.0  ;;  %v567_v22 = vmax.f32 %v566_v18, %v544_v11  ;;  %v568_v23 = vmax.f32 %v1141_v37, %v489_v19  ;;  %v491_v24 = vpop.f32.mrb[23].mxu0  ;;  %v551_v25 = vpop.f32.mrb[23].mxu1 }
 0x172   : > { %593 = vst [vmem:[%s1149_s6 + $0x18] sm:$0xff] %v587_v21  ;;  %v582_v26 = vadd.f32 %v666_v47, %v567_v22  ;;  %v569_v27 = vmax.f32 %v568_v23, %v519_v38 }
 0x174   : > { %v588_v28 = vmax.f32 %v582_v26, 0.0  ;;  %v570_v29 = vmax.f32 %v569_v27, %v549_v20 }
 0x176   : > { %594 = vst [vmem:[%s1149_s6 + $0x20] sm:$0xff] %v588_v28  ;;  %v583_v30 = vadd.f32 %v666_v47, %v570_v29 }
 0x178   : > { %v589_v31 = vmax.f32 %v583_v30, 0.0 }
 0x17a   : > { %595 = vst [vmem:[%s1149_s6 + $0x28] sm:$0xff] %v589_v31 }
 0x17b PF: > { %p10_p9 = scmp.ge.s32.totalorder %s841_s16, 4   ;;  %s1172_s12 = smov %s797_s13 }
 0x17c   : > { %s1173_s13 = smov %s850_s19  ;;  %s1174_s14 = smov %s841_s16 }
 0x17d   :  { %12 = sbr.rel (!%p10_p9) target bundleno = 2 (0x2), region = 90 }

// kernel: conv_encoder_forward.5
= control target key start
LH: loop header
LB: loop body
LE: loop exit
PB: predicated region body
PF: predicated region fallthrough
CT: control target
= control target key end

     0   :  { %v532_v3 = vmov 0.0   ;;  %vm115_vm0 = vcmask 523264   ;;  %vm372_vm1 = vcmask 261120   ;;  %s917_s1 = inlined_call_operand.vmem [shape: f32[320,256], index: 1, kind: input, shape index: {}]   ;;  %s918_s0 = inlined_call_operand.vmem [shape: f32[8,320], index: 0, kind: input, shape index: {}]   ;;  %s919_s3 = inlined_call_operand.vmem [shape: f32[256,32], index: 3, kind: input, shape index: {}]   ;;  %s920_s2 = inlined_call_operand.vmem [shape: f32[1,256], index: 2, kind: input, shape index: {}]   ;;  %s921_s4 = inlined_call_operand.vmem [shape: f32[1,32], index: 4, kind: input, shape index: {}]   ;;  %s922_s5 = inlined_call_operand.vmem [shape: f32[8,32], index: 5, kind: output, shape index: {}]  }
   0x1   :  { %v24_v0 = vld [vmem:[%s917_s1 + $0x8] sm:$0xff]  ;;  %v26_v1 = vld [vmem:[%s917_s1 + $0x18] sm:$0xff]  ;;  %v23_v2 = vld [vmem:[%s917_s1] sm:$0xff]  ;;  %254 = vmatprep.mubr.f32.mxu1 %v532_v3 }
   0x2   :  { %v415_v4 = vpack.c.bf16 %v26_v1, %v24_v0  ;;  %v25_v5 = vld [vmem:[%s917_s1 + $0x10] sm:$0xff]  ;;  %v28_v6 = vld [vmem:[%s917_s1 + $0x28] sm:$0xff]  ;;  %v30_v7 = vld [vmem:[%s917_s1 + $0x38] sm:$0xff] }
   0x3   :  { %v417_v8 = vpack.c.bf16 %v25_v5, %v23_v2  ;;  %v419_v9 = vpack.c.bf16 %v30_v7, %v28_v6  ;;  %v27_v10 = vld [vmem:[%s917_s1 + $0x20] sm:$0xff]  ;;  %v29_v11 = vld [vmem:[%s917_s1 + $0x30] sm:$0xff]  ;;  %v32_v12 = vld [vmem:[%s917_s1 + $0x48] sm:$0xff] }
   0x4   :  { %416 = vmatprep.subr.bf16.mxu0 %v415_v4  ;;  %v34_v13 = vld [vmem:[%s917_s1 + $0x58] sm:$0xff]  ;;  %v421_v14 = vpack.c.bf16 %v29_v11, %v27_v10  ;;  %v31_v16 = vld [vmem:[%s917_s1 + $0x40] sm:$0xff]  ;;  %v33_v17 = vld [vmem:[%s917_s1 + $0x50] sm:$0xff] }
   0x5   :  { %418 = vmatpush1.bf16.msra.mxu0 %v417_v8  ;;  %v423_v15 = vpack.c.bf16 %v34_v13, %v32_v12  ;;  %v36_v18 = vld [vmem:[%s917_s1 + $0x68] sm:$0xff]  ;;  %v38_v19 = vld [vmem:[%s917_s1 + $0x78] sm:$0xff]  ;;  %v425_v20 = vpack.c.bf16 %v33_v17, %v31_v16  ;;  %v35_v22 = vld [vmem:[%s917_s1 + $0x60] sm:$0xff] }
   0x6   :  { %420 = vmatprep.subr.bf16.mxu0 %v419_v9  ;;  %v427_v21 = vpack.c.bf16 %v38_v19, %v36_v18  ;;  %v37_v23 = vld [vmem:[%s917_s1 + $0x70] sm:$0xff]  ;;  %v40_v24 = vld [vmem:[%s917_s1 + $0x88] sm:$0xff]  ;;  %v42_v25 = vld [vmem:[%s917_s1 + $0x98] sm:$0xff] }
   0x7   :  { %v429_v26 = vpack.c.bf16 %v37_v23, %v35_v22  ;;  %v431_v27 = vpack.c.bf16 %v42_v25, %v40_v24  ;;  %v39_v28 = vld [vmem:[%s917_s1 + $0x80] sm:$0xff]  ;;  %v41_v29 = vld [vmem:[%s917_s1 + $0x90] sm:$0xff]  ;;  %v44_v30 = vld [vmem:[%s917_s1 + $0xa8] sm:$0xff] }
   0x8   :  { %v46_v31 = vld [vmem:[%s917_s1 + $0xb8] sm:$0xff]  ;;  %v433_v32 = vpack.c.bf16 %v41_v29, %v39_v28  ;;  %v43_v33 = vld [vmem:[%s917_s1 + $0xa0] sm:$0xff]  ;;  %v45_v34 = vld [vmem:[%s917_s1 + $0xb0] sm:$0xff] }
   0x9   :  { %422 = vmatpush1.bf16.msra.mxu0 %v421_v14  ;;  %v435_v35 = vpack.c.bf16 %v46_v31, %v44_v30  ;;  %v48_v36 = vld [vmem:[%s917_s1 + $0xc8] sm:$0xff]  ;;  %v90_v38 = vld [vmem:[%s917_s1 + $0x218] sm:$0xff]  ;;  %v87_v41 = vld [vmem:[%s917_s1 + $0x200] sm:$0xff]  ;;  %v437_v44 = vpack.c.bf16 %v45_v34, %v43_v33 }
   0xa   :  { %424 = vmatprep.subr.bf16.mxu0 %v423_v15  ;;  %v88_v37 = vld [vmem:[%s917_s1 + $0x208] sm:$0xff]  ;;  %v50_v39 = vld [vmem:[%s917_s1 + $0xd8] sm:$0xff]  ;;  %v89_v42 = vld [vmem:[%s917_s1 + $0x210] sm:$0xff] }
   0xb   :  { %v479_v40 = vpack.c.bf16 %v90_v38, %v88_v37  ;;  %v481_v43 = vpack.c.bf16 %v89_v42, %v87_v41  ;;  %v92_v45 = vld [vmem:[%s917_s1 + $0x228] sm:$0xff]  ;;  %v94_v46 = vld [vmem:[%s917_s1 + $0x238] sm:$0xff]  ;;  %v91_v47 = vld [vmem:[%s917_s1 + $0x220] sm:$0xff]  ;;  %v439_v48 = vpack.c.bf16 %v50_v39, %v48_v36 }
   0xc   :  { %v47_v49 = vld [vmem:[%s917_s1 + $0xc0] sm:$0xff]  ;;  %v49_v50 = vld [vmem:[%s917_s1 + $0xd0] sm:$0xff]  ;;  %v483_v51 = vpack.c.bf16 %v94_v46, %v92_v45  ;;  %v52_v53 = vld [vmem:[%s917_s1 + $0xe8] sm:$0xff] }
   0xd   :  { %426 = vmatpush1.bf16.msra.mxu0 %v425_v20  ;;  %480 = vmatprep.subr.bf16.mxu1 %v479_v40  ;;  %v93_v52 = vld [vmem:[%s917_s1 + $0x230] sm:$0xff]  ;;  %v54_v54 = vld [vmem:[%s917_s1 + $0xf8] sm:$0xff]  ;;  %v96_v56 = vld [vmem:[%s917_s1 + $0x248] sm:$0xff]  ;;  %v441_v60 = vpack.c.bf16 %v49_v50, %v47_v49 }
   0xe   :  { %428 = vmatprep.subr.bf16.mxu0 %v427_v21  ;;  %482 = vmatpush1.bf16.msra.mxu1 %v481_v43  ;;  %v485_v55 = vpack.c.bf16 %v93_v52, %v91_v47  ;;  %v98_v57 = vld [vmem:[%s917_s1 + $0x258] sm:$0xff]  ;;  %v95_v58 = vld [vmem:[%s917_s1 + $0x240] sm:$0xff]  ;;  %v97_v59 = vld [vmem:[%s917_s1 + $0x250] sm:$0xff]  ;;  %v443_v1 = vpack.c.bf16 %v54_v54, %v52_v53 }
   0xf   :  { %484 = vmatprep.subr.bf16.mxu1 %v483_v51  ;;  %v51_v61 = vld [vmem:[%s917_s1 + $0xe0] sm:$0xff]  ;;  %v53_v62 = vld [vmem:[%s917_s1 + $0xf0] sm:$0xff]  ;;  %v56_v63 = vld [vmem:[%s917_s1 + $0x108] sm:$0xff]  ;;  %v487_v0 = vpack.c.bf16 %v98_v57, %v96_v56  ;;  %v489_v3 = vpack.c.bf16 %v97_v59, %v95_v58 }
  0x10   :  { %v58_v2 = vld [vmem:[%s917_s1 + $0x118] sm:$0xff]  ;;  %v100_v4 = vld [vmem:[%s917_s1 + $0x268] sm:$0xff]  ;;  %v99_v7 = vld [vmem:[%s917_s1 + $0x260] sm:$0xff]  ;;  %v445_v11 = vpack.c.bf16 %v53_v62, %v51_v61 }
  0x11   :  { %430 = vmatpush1.bf16.msra.mxu0 %v429_v26  ;;  %v102_v5 = vld [vmem:[%s917_s1 + $0x278] sm:$0xff]  ;;  %v101_v8 = vld [vmem:[%s917_s1 + $0x270] sm:$0xff]  ;;  %v21_v9 = vld [vmem:[%s918_s0 + $0x8] sm:$0xff]  ;;  %v447_v13 = vpack.c.bf16 %v58_v2, %v56_v63 }
  0x12   :  { %432 = vmatprep.subr.bf16.mxu0 %v431_v27  ;;  %486 = vmatpush1.bf16.msra.mxu1 %v485_v55  ;;  %v491_v6 = vpack.c.bf16 %v102_v5, %v100_v4  ;;  %v279_v10 = vld [vmem:[%s919_s3 + $0x80] sm:$0xff]  ;;  %v280_v12 = vld [vmem:[%s919_s3 + $0x88] sm:$0xff]  ;;  %v57_v15 = vld [vmem:[%s917_s1 + $0x110] sm:$0xff]  ;;  %v493_v17 = vpack.c.bf16 %v101_v8, %v99_v7 }
  0x13   :  { %488 = vmatprep.subr.bf16.mxu1 %v487_v0  ;;  %183 = vmatprep.mubr.f32.mxu0 %v21_v9  ;;  %v55_v14 = vld [vmem:[%s917_s1 + $0x100] sm:$0xff]  ;;  %v60_v16 = vld [vmem:[%s917_s1 + $0x128] sm:$0xff]  ;;  %v62_v18 = vld [vmem:[%s917_s1 + $0x138] sm:$0xff]  ;;  %v495_v19 = vpack.c.bf16 %v280_v12, %v279_v10 }
  0x14   :  { %v263_v20 = vld [vmem:[%s919_s3] sm:$0xff]  ;;  %v264_v21 = vld [vmem:[%s919_s3 + $0x8] sm:$0xff]  ;;  %v281_v22 = vld [vmem:[%s919_s3 + $0x90] sm:$0xff]  ;;  %v449_v24 = vpack.c.bf16 %v57_v15, %v55_v14  ;;  %v451_v26 = vpack.c.bf16 %v62_v18, %v60_v16 }
  0x15   :  { %434 = vmatpush1.bf16.msra.mxu0 %v433_v32  ;;  %v282_v23 = vld [vmem:[%s919_s3 + $0x98] sm:$0xff]  ;;  %v59_v25 = vld [vmem:[%s917_s1 + $0x120] sm:$0xff]  ;;  %v61_v27 = vld [vmem:[%s917_s1 + $0x130] sm:$0xff]  ;;  %v497_v30 = vpack.c.bf16 %v264_v21, %v263_v20 }
  0x16   :  { %436 = vmatprep.subr.bf16.mxu0 %v435_v35  ;;  %490 = vmatpush1.bf16.msra.mxu1 %v489_v3  ;;  %v64_v28 = vld [vmem:[%s917_s1 + $0x148] sm:$0xff]  ;;  %v22_v29 = vld [vmem:[%s918_s0 + $0x10] sm:$0xff]  ;;  %v66_v31 = vld [vmem:[%s917_s1 + $0x158] sm:$0xff]  ;;  %v499_v32 = vpack.c.bf16 %v282_v23, %v281_v22  ;;  %v453_v37 = vpack.c.bf16 %v61_v27, %v59_v25 }
  0x17   :  { %492 = vmatprep.subr.bf16.mxu1 %v491_v6  ;;  %v265_v33 = vld [vmem:[%s919_s3 + $0x10] sm:$0xff]  ;;  %v266_v34 = vld [vmem:[%s919_s3 + $0x18] sm:$0xff]  ;;  %v283_v35 = vld [vmem:[%s919_s3 + $0xa0] sm:$0xff]  ;;  %v455_v38 = vpack.c.bf16 %v66_v31, %v64_v28 }
  0x18   :  { %v284_v36 = vld [vmem:[%s919_s3 + $0xa8] sm:$0xff]  ;;  %v63_v39 = vld [vmem:[%s917_s1 + $0x140] sm:$0xff]  ;;  %v65_v40 = vld [vmem:[%s917_s1 + $0x150] sm:$0xff]  ;;  %v501_v42 = vpack.c.bf16 %v266_v34, %v265_v33 }
  0x19   :  { %438 = vmatpush1.bf16.msra.mxu0 %v437_v44  ;;  %v68_v41 = vld [vmem:[%s917_s1 + $0x168] sm:$0xff]  ;;  %v70_v43 = vld [vmem:[%s917_s1 + $0x178] sm:$0xff]  ;;  %v503_v44 = vpack.c.bf16 %v284_v36, %v283_v35  ;;  %v267_v45 = vld [vmem:[%s919_s3 + $0x20] sm:$0xff]  ;;  %v457_v49 = vpack.c.bf16 %v65_v40, %v63_v39 }
  0x1a   :  { %440 = vmatprep.subr.bf16.mxu0 %v439_v48  ;;  %494 = vmatpush1.bf16.msra.mxu1 %v493_v17  ;;  %v268_v46 = vld [vmem:[%s919_s3 + $0x28] sm:$0xff]  ;;  %v285_v47 = vld [vmem:[%s919_s3 + $0xb0] sm:$0xff]  ;;  %v286_v48 = vld [vmem:[%s919_s3 + $0xb8] sm:$0xff]  ;;  %v459_v50 = vpack.c.bf16 %v70_v43, %v68_v41 }
  0x1b   :  { %496 = vmatprep.subr.bf16.mxu1 %v495_v19  ;;  %v67_v51 = vld [vmem:[%s917_s1 + $0x160] sm:$0xff]  ;;  %v69_v52 = vld [vmem:[%s917_s1 + $0x170] sm:$0xff]  ;;  %v72_v53 = vld [vmem:[%s917_s1 + $0x188] sm:$0xff]  ;;  %v505_v54 = vpack.c.bf16 %v268_v46, %v267_v45  ;;  %v507_v56 = vpack.c.bf16 %v286_v48, %v285_v47  ;;  %v105_v46 = vlaneseq }
  0x1c   :  { %v74_v55 = vld [vmem:[%s917_s1 + $0x198] sm:$0xff]  ;;  %v269_v57 = vld [vmem:[%s919_s3 + $0x30] sm:$0xff]  ;;  %v287_v59 = vld [vmem:[%s919_s3 + $0xc0] sm:$0xff]  ;;  %v461_v61 = vpack.c.bf16 %v69_v52, %v67_v51 }
  0x1d   :  { %442 = vmatpush1.bf16.msra.mxu0 %v441_v60  ;;  %378 = vmatmul.mubr.msk.f32.vlgmr.msra.gmra.mrb[0].mxu1 %vm115_vm0, %v22_v29  ;;  %v270_v58 = vld [vmem:[%s919_s3 + $0x38] sm:$0xff]  ;;  %v288_v60 = vld [vmem:[%s919_s3 + $0xc8] sm:$0xff]  ;;  %v463_v62 = vpack.c.bf16 %v74_v55, %v72_v53  ;;  %v71_v63 = vld [vmem:[%s917_s1 + $0x180] sm:$0xff]  ;;  %v106_v47 = vshrl.u32 %v105_v46, 7 }
  0x1e   :  { %444 = vmatprep.subr.bf16.mxu0 %v443_v1  ;;  %498 = vmatpush3.bf16.msra.mxu1 %v497_v30  ;;  %v73_v0 = vld [vmem:[%s917_s1 + $0x190] sm:$0xff]  ;;  %v76_v1 = vld [vmem:[%s917_s1 + $0x1a8] sm:$0xff]  ;;  %v509_v2 = vpack.c.bf16 %v270_v58, %v269_v57  ;;  %v78_v3 = vld [vmem:[%s917_s1 + $0x1b8] sm:$0xff]  ;;  %v511_v4 = vpack.c.bf16 %v288_v60, %v287_v59 }
  0x1f   :  { %500 = vmatprep.subr.bf16.mxu1 %v499_v32  ;;  %v271_v5 = vld [vmem:[%s919_s3 + $0x40] sm:$0xff]  ;;  %v272_v6 = vld [vmem:[%s919_s3 + $0x48] sm:$0xff]  ;;  %v289_v7 = vld [vmem:[%s919_s3 + $0xd0] sm:$0xff]  ;;  %v465_v9 = vpack.c.bf16 %v73_v0, %v71_v63  ;;  %v467_v10 = vpack.c.bf16 %v78_v3, %v76_v1  ;;  %v107_v48 = vsub.s32 0, %v106_v47 }
  0x20   :  { %v290_v8 = vld [vmem:[%s919_s3 + $0xd8] sm:$0xff]  ;;  %v77_v12 = vld [vmem:[%s917_s1 + $0x1b0] sm:$0xff]  ;;  %v513_v14 = vpack.c.bf16 %v272_v6, %v271_v5  ;;  %v79_v21 = vld [vmem:[%s917_s1 + $0x1c0] sm:$0xff] }
  0x21   :  { %446 = vmatpush1.bf16.msra.mxu0 %v445_v11  ;;  %v75_v11 = vld [vmem:[%s917_s1 + $0x1a0] sm:$0xff]  ;;  %v82_v15 = vld [vmem:[%s917_s1 + $0x1d8] sm:$0xff]  ;;  %v515_v16 = vpack.c.bf16 %v290_v8, %v289_v7  ;;  %v273_v17 = vld [vmem:[%s919_s3 + $0x50] sm:$0xff] }
  0x22   :  { %448 = vmatprep.subr.bf16.mxu0 %v447_v13  ;;  %502 = vmatpush3.bf16.msra.mxu1 %v501_v42  ;;  %v80_v13 = vld [vmem:[%s917_s1 + $0x1c8] sm:$0xff]  ;;  %v274_v18 = vld [vmem:[%s919_s3 + $0x58] sm:$0xff]  ;;  %v469_v19 = vpack.c.bf16 %v77_v12, %v75_v11  ;;  %v81_v22 = vld [vmem:[%s917_s1 + $0x1d0] sm:$0xff] }
  0x23   :  { %504 = vmatprep.subr.bf16.mxu1 %v503_v44  ;;  %v471_v20 = vpack.c.bf16 %v82_v15, %v80_v13  ;;  %v517_v23 = vpack.c.bf16 %v274_v18, %v273_v17  ;;  %v86_v25 = vld [vmem:[%s917_s1 + $0x1f8] sm:$0xff]  ;;  %v83_v28 = vld [vmem:[%s917_s1 + $0x1e0] sm:$0xff]  ;;  %v85_v29 = vld [vmem:[%s917_s1 + $0x1f0] sm:$0xff] }
  0x24   :  { %v477_v30 = vpack.c.bf16 %v85_v29, %v83_v28  ;;  %v20_v31 = vld [vmem:[%s918_s0] sm:$0xff]  ;;  %v292_v33 = vld [vmem:[%s919_s3 + $0xe8] sm:$0xff]  ;;  %v294_v39 = vld [vmem:[%s919_s3 + $0xf8] sm:$0xff] }
  0x25   :  { %450 = vmatpush1.bf16.msra.mxu0 %v449_v24  ;;  %v84_v24 = vld [vmem:[%s917_s1 + $0x1e8] sm:$0xff]  ;;  %v291_v32 = vld [vmem:[%s919_s3 + $0xe0] sm:$0xff]  ;;  %v277_v41 = vld [vmem:[%s919_s3 + $0x70] sm:$0xff] }
  0x26   :  { %452 = vmatprep.subr.bf16.mxu0 %v451_v26  ;;  %506 = vmatpush3.bf16.msra.mxu1 %v505_v54  ;;  %v473_v26 = vpack.c.bf16 %v81_v22, %v79_v21  ;;  %v475_v27 = vpack.c.bf16 %v86_v25, %v84_v24  ;;  %v519_v34 = vpack.c.bf16 %v292_v33, %v291_v32  ;;  %v275_v35 = vld [vmem:[%s919_s3 + $0x60] sm:$0xff]  ;;  %v276_v36 = vld [vmem:[%s919_s3 + $0x68] sm:$0xff]  ;;  %v278_v42 = vld [vmem:[%s919_s3 + $0x78] sm:$0xff] }
  0x27   :  { %508 = vmatprep.subr.bf16.mxu1 %v507_v56  ;;  %v525_v43 = vpack.c.bf16 %v278_v42, %v277_v41 }
  0x29   :  { %454 = vmatpush1.bf16.msra.mxu0 %v453_v37  ;;  %v521_v37 = vpack.c.bf16 %v276_v36, %v275_v35 }
  0x2a   :  { %456 = vmatprep.subr.bf16.mxu0 %v455_v38  ;;  %510 = vmatpush3.bf16.msra.mxu1 %v509_v2  ;;  %v293_v38 = vld [vmem:[%s919_s3 + $0xf0] sm:$0xff] }
  0x2b   :  { %512 = vmatprep.subr.bf16.mxu1 %v511_v4  ;;  %v523_v40 = vpack.c.bf16 %v294_v39, %v293_v38 }
  0x2d   :  { %458 = vmatpush1.bf16.msra.mxu0 %v457_v49  ;;  %v103_v49 = vld [vmem:[%s920_s2] sm:$0x3] }
  0x2e   :  { %460 = vmatprep.subr.bf16.mxu0 %v459_v50  ;;  %514 = vmatpush3.bf16.msra.mxu1 %v513_v14  ;;  %v111_v50 = vsub.s32 1, %v106_v47  ;;  %v108_v51 = vrot.slane %v103_v49, %v107_v48 }
  0x2f   :  { %516 = vmatprep.subr.bf16.mxu1 %v515_v16 }
  0x30   :  { %v112_v52 = vrot.slane %v103_v49, %v111_v50 }
  0x31   :  { %462 = vmatpush1.bf16.msra.mxu0 %v461_v61 }
  0x32   :  { %464 = vmatprep.subr.bf16.mxu0 %v463_v62  ;;  %518 = vmatpush3.bf16.msra.mxu1 %v517_v23  ;;  %v379_v62 = vld [vmem:[%s921_s4] ss:$0 sm:$0xff] }
  0x33   :  { %520 = vmatprep.subr.bf16.mxu1 %v519_v34 }
  0x35   :  { %466 = vmatpush1.bf16.msra.mxu0 %v465_v9 }
  0x36   :  { %468 = vmatprep.subr.bf16.mxu0 %v467_v10  ;;  %522 = vmatpush3.bf16.msra.mxu1 %v521_v37 }
  0x37   :  { %524 = vmatprep.subr.bf16.mxu1 %v523_v40 }
  0x39   :  { %470 = vmatpush1.bf16.msra.mxu0 %v469_v19 }
  0x3a   :  { %472 = vmatprep.subr.bf16.mxu0 %v471_v20  ;;  %526 = vmatpush3.bf16.msra.mxu1 %v525_v43 }
  0x3d   :  { %474 = vmatpush1.bf16.msra.mxu0 %v473_v26 }
  0x3e   :  { %476 = vmatprep.subr.bf16.mxu0 %v475_v27 }
  0x41   :  { %478 = vmatpush1.bf16.msra.mxu0 %v477_v30 }
  0x44   :  { %184 = vmatmul.mubr.f32.vlgmr.msra.gmra.mrb[0].mxu0 %v20_v31 }
  0xf0   :  { %v256_v44 = vpop.f32.mrb[0].mxu1 }
  0xf1   :  { %v258_v45 = vpop.f32.mrb[1].mxu1 }
 0x117   :  { %v185_v53 = vpop.f32.mrb[0].mxu0 }
 0x118   :  { %v186_v54 = vadd.f32 %v185_v53, %v108_v51  ;;  %v187_v55 = vpop.f32.mrb[1].mxu0 }
 0x119   :  { %v188_v56 = vadd.f32 %v187_v55, %v112_v52 }
 0x11a   :  { %v257_v57 = vadd.f32 %v256_v44, %v186_v54 }
 0x11b   :  { %v259_v58 = vadd.f32 %v258_v45, %v188_v56 }
 0x11c   :  { %v261_v60 = vmax.f32 %v257_v57, 0.0 }
 0x11d   :  { %v262_v59 = vmax.f32 %v259_v58, 0.0 }
 0x11f   :  { %366 = vmatprep.mubr.f32.mxu1 %v262_v59 }
 0x120   :  { %367 = vmatmul.mubr.f32.vlgmr.msra.gmra.mrb[2].mxu1 %v261_v60 }
 0x1f3   :  { %v412_v61 = vpop.f32.mrb[2].mxu1 }
 0x1f4   :  { %v413_v63 = vpop.f32.mrb[3].mxu1 }
 0x1f5   :  { %v414_v0 = vadd.f32 %v413_v63, %v412_v61 }
 0x1f7   :  { %v369_v1 = vadd.f32 %v414_v0, %v379_v62 }
 0x1f9   :  { %373 = vst.msk [vmem:[%s922_s5] sm:$0xff] %vm372_vm1, %v369_v1 }

</bundles_post_ra>
